<compile_context>
chip_gen: v6e
topology: v6e:2x2x1
jax: 0.10.0
libtpu: 0.0.40
codegen_flags: <defaults>
</compile_context>

<pallas_src>
import functools

import jax
import jax.numpy as jnp
from jax.experimental import pallas as pl
from jax.experimental.pallas import tpu as pltpu


def _gate_block(hidden):
    """Per-(direction, gate) lane-block width: hidden rounded up to 128."""
    return -(-hidden // 128) * 128


# ----------------------------------------------------------------------------
# Fused Pallas kernel (all layers, both directions, residual epilogue)
# ----------------------------------------------------------------------------
def _make_fused_bilstm_kernel(size, layers, T, B):
    H = size
    GB = _gate_block(H)           # 128 for H=32

    def sig(v):                   # sigmoid via tanh: single EUP push
        return 0.5 * jnp.tanh(0.5 * v) + 0.5

    def kernel(*refs):
        # refs: [x2d, (wih_pack, b_pack, whh_f_pack, whh_b_pack) * L, out, hn, cn]
        x_ref = refs[0]
        w_refs = refs[1:1 + 4 * layers]
        out_ref = refs[1 + 4 * layers]
        hn_ref = refs[2 + 4 * layers]
        cn_ref = refs[3 + 4 * layers]

        x = x_ref[...]                          # (T*B, H)
        layer_in = x
        out_f = None
        out_b = None

        for l in range(layers):                 # static python loop (L small)
            wih, b, whh_f, whh_b = w_refs[4 * l: 4 * l + 4]

            # ---- hoisted input projection, both directions fused:
            #      gx: (T*B, 8*GB); block (dir*4 + gate) at cols [blk, blk+H)
            gx = jnp.dot(layer_in, wih[...],
                         preferred_element_type=jnp.float32) + b[...]

            whh_f_v = whh_f[...]                # (H, 4*GB), gate-padded
            whh_b_v = whh_b[...]

            h_f = jnp.zeros((B, H), jnp.float32)
            c_f = jnp.zeros((B, H), jnp.float32)
            h_b = jnp.zeros((B, H), jnp.float32)
            c_b = jnp.zeros((B, H), jnp.float32)

            outs_f = [None] * T
            outs_b = [None] * T

            # ---- fully unrolled time loop; fwd and bwd chains interleaved.
            for t in range(T):
                rf = t * B                      # fwd rows for timestep t
                rb = (T - 1 - t) * B            # bwd rows for timestep T-1-t

                rec_f = jnp.dot(h_f, whh_f_v,
                                preferred_element_type=jnp.float32)
                rec_b = jnp.dot(h_b, whh_b_v,
                                preferred_element_type=jnp.float32)

                pre_f = gx[rf:rf + B, 0:4 * GB] + rec_f
                pre_b = gx[rb:rb + B, 4 * GB:8 * GB] + rec_b

                # every slice starts at a 128-lane boundary -> no lane rotates
                i_f = sig(pre_f[:, 0 * GB:0 * GB + H])
                f_f = sig(pre_f[:, 1 * GB:1 * GB + H])
                g_f = jnp.tanh(pre_f[:, 2 * GB:2 * GB + H])
                o_f = sig(pre_f[:, 3 * GB:3 * GB + H])

                i_b = sig(pre_b[:, 0 * GB:0 * GB + H])
                f_b = sig(pre_b[:, 1 * GB:1 * GB + H])
                g_b = jnp.tanh(pre_b[:, 2 * GB:2 * GB + H])
                o_b = sig(pre_b[:, 3 * GB:3 * GB + H])

                c_f = f_f * c_f + i_f * g_f
                h_f = o_f * jnp.tanh(c_f)
                c_b = f_b * c_b + i_b * g_b
                h_b = o_b * jnp.tanh(c_b)

                outs_f[t] = h_f
                outs_b[T - 1 - t] = h_b

            # final states written exactly once (PyTorch ordering: l_fwd, l_bwd)
            hn_ref[2 * l] = h_f
            hn_ref[2 * l + 1] = h_b
            cn_ref[2 * l] = c_f
            cn_ref[2 * l + 1] = c_b

            out_f = jnp.concatenate(outs_f, axis=0)     # (T*B, H), vreg-resident
            out_b = jnp.concatenate(outs_b, axis=0)     # (T*B, H)

            if l < layers - 1:
                # next layer's input: fwd cols [:H], bwd cols [H:2H]
                layer_in = jnp.concatenate([out_f, out_b], axis=-1)

        # ---- residual epilogue (no concat / re-slice needed)
        out_ref[...] = out_f + out_b + x

    return kernel


# ----------------------------------------------------------------------------
# Wrapper
# ----------------------------------------------------------------------------
def bidirectional_lstm_forward(inputs, packed_params, size, layers):
    """Matches PyTorch:
         output, (hn, cn) = nn.LSTM(size, size, layers, bidirectional=True)(inputs, None)
         output = output[..., :H] + output[..., H:] + inputs
    """
    T, B, H = inputs.shape
    assert H == size
    x2d = inputs.reshape(T * B, H)              # row order: (t0b0, t0b1, ...)

    flat_args = [x2d]
    for l in range(layers):
        flat_args += list(packed_params[l])

    vmem = pl.BlockSpec(memory_space=pltpu.MemorySpace.VMEM)
    kernel = _make_fused_bilstm_kernel(size, layers, T, B)

    out2d, hn, cn = pl.pallas_call(
        kernel,
        out_shape=(
            jax.ShapeDtypeStruct((T * B, size), jnp.float32),
            jax.ShapeDtypeStruct((2 * layers, B, size), jnp.float32),
            jax.ShapeDtypeStruct((2 * layers, B, size), jnp.float32),
        ),
        in_specs=[vmem] * len(flat_args),
        out_specs=(vmem, vmem, vmem),
        compiler_params=pltpu.CompilerParams(
            vmem_limit_bytes=32 * 1024 * 1024),
    )(*flat_args)

    return out2d.reshape(T, B, size), hn, cn


# ----------------------------------------------------------------------------
# Parameter init (PyTorch layout) + packing into the kernel's padded layout
# ----------------------------------------------------------------------------
def init_params(key, size, layers):
    """PyTorch-style uniform(-1/sqrt(H), 1/sqrt(H)); PyTorch weight layout."""
    stdv = 1.0 / jnp.sqrt(jnp.float32(size))
    params = []
    for l in range(layers):
        d_in = size if l == 0 else 2 * size
        layer_p = {}
        for dname in ("f", "b"):
            key, k1, k2, k3, k4 = jax.random.split(key, 5)
            layer_p["w_ih_" + dname] = jax.random.uniform(
                k1, (4 * size, d_in), jnp.float32, -stdv, stdv)
            layer_p["w_hh_" + dname] = jax.random.uniform(
                k2, (4 * size, size), jnp.float32, -stdv, stdv)
            layer_p["b_ih_" + dname] = jax.random.uniform(
                k3, (4 * size,), jnp.float32, -stdv, stdv)
            layer_p["b_hh_" + dname] = jax.random.uniform(
                k4, (4 * size,), jnp.float32, -stdv, stdv)
        params.append(layer_p)
    return params


def pack_params(params, size, layers):
    """Pack into lane-aligned padded layout:
         wih_pack:  (d_in, 8*GB)  block (dir*4+gate) holds W_ih[gate].T in cols [blk, blk+H)
         b_pack:    (1, 8*GB)     combined b_ih + b_hh in the same blocks
         whh_pack:  (H, 4*GB)     per direction, block (gate) holds W_hh[gate].T
    """
    H = size
    GB = _gate_block(H)
    packed = []
    for l in range(layers):
        d_in = size if l == 0 else 2 * size
        p = params[l]
        wih_pack = jnp.zeros((d_in, 8 * GB), jnp.float32)
        b_pack = jnp.zeros((1, 8 * GB), jnp.float32)
        whh_packs = []
        for d, dname in enumerate(("f", "b")):
            w_ih = p["w_ih_" + dname]                       # (4H, d_in)
            w_hh = p["w_hh_" + dname]                       # (4H, H)
            bias = p["b_ih_" + dname] + p["b_hh_" + dname]  # (4H,)
            whh_pack = jnp.zeros((H, 4 * GB), jnp.float32)
            for g in range(4):
                blk = (d * 4 + g) * GB
                wih_pack = wih_pack.at[:, blk:blk + H].set(
                    w_ih[g * H:(g + 1) * H, :].T)
                b_pack = b_pack.at[:, blk:blk + H].set(
                    bias[g * H:(g + 1) * H][None, :])
                whh_pack = whh_pack.at[:, g * GB:g * GB + H].set(
                    w_hh[g * H:(g + 1) * H, :].T)
            whh_packs.append(whh_pack)
        packed.append((wih_pack, b_pack, whh_packs[0], whh_packs[1]))
    return packed


# ----------------------------------------------------------------------------
# Pure-JAX reference (same math) for a correctness sanity check
# ----------------------------------------------------------------------------
def _ref_dir(x, w_ih, w_hh, b_ih, b_hh, hidden):
    T, B, _ = x.shape
    h = jnp.zeros((B, hidden), jnp.float32)
    c = jnp.zeros((B, hidden), jnp.float32)
    w_ih_t, w_hh_t = w_ih.T, w_hh.T
    b = (b_ih + b_hh)[None, :]
    outs = []
    for t in range(T):
        gates = x[t] @ w_ih_t + h @ w_hh_t + b
        i = jax.nn.sigmoid(gates[:, 0 * hidden:1 * hidden])
        f = jax.nn.sigmoid(gates[:, 1 * hidden:2 * hidden])
        g = jnp.tanh(gates[:, 2 * hidden:3 * hidden])
        o = jax.nn.sigmoid(gates[:, 3 * hidden:4 * hidden])
        c = f * c + i * g
        h = o * jnp.tanh(c)
        outs.append(h)
    return jnp.stack(outs, 0), h, c


def _ref_forward(inputs, params, size, layers):
    layer_in = inputs
    hns, cns = [], []
    for l in range(layers):
        p = params[l]
        of, hf, cf = _ref_dir(layer_in, p["w_ih_f"], p["w_hh_f"],
                              p["b_ih_f"], p["b_hh_f"], size)
        ob, hb, cb = _ref_dir(jnp.flip(layer_in, 0), p["w_ih_b"], p["w_hh_b"],
                              p["b_ih_b"], p["b_hh_b"], size)
        ob = jnp.flip(ob, 0)
        hns += [hf, hb]
        cns += [cf, cb]
        layer_in = jnp.concatenate([of, ob], -1)
    out = layer_in[:, :, :size] + layer_in[:, :, size:] + inputs
    return out, jnp.stack(hns, 0), jnp.stack(cns, 0)


# ----------------------------------------------------------------------------
if __name__ == "__main__":
    SIZE = 32     # input size == hidden size (required by the skip connection)
    LAYERS = 2
    SEQ = 8
    BATCH = 1     # module hardcodes batch_size = 1

    key = jax.random.PRNGKey(0)
    k_in, k_p = jax.random.split(key)
    inputs = jax.random.normal(k_in, (SEQ, BATCH, SIZE), jnp.float32)
    params = init_params(k_p, SIZE, LAYERS)
    packed = pack_params(params, SIZE, LAYERS)

    fwd = jax.jit(functools.partial(bidirectional_lstm_forward,
                                    size=SIZE, layers=LAYERS))
    output, hn, cn = fwd(inputs, packed)
    jax.block_until_ready((output, hn, cn))

    # sanity check against the pure-JAX reference
    ref_out, ref_hn, ref_cn = _ref_forward(inputs, params, SIZE, LAYERS)
    assert output.shape == (SEQ, BATCH, SIZE)
    assert hn.shape == (LAYERS * 2, BATCH, SIZE)
    assert cn.shape == (LAYERS * 2, BATCH, SIZE)
    assert jnp.max(jnp.abs(output - ref_out)) < 1e-3
    assert jnp.max(jnp.abs(hn - ref_hn)) < 1e-3
    assert jnp.max(jnp.abs(cn - ref_cn)) < 1e-3

    print("KERNEL_OK")
</pallas_src>

<mosaic_0001>
module attributes {stable_mosaic.version = 11 : i64} {
  func.func @kernel(%arg0: memref<8x32xf32, #tpu.memory_space<vmem>>, %arg1: memref<32x1024xf32, #tpu.memory_space<vmem>>, %arg2: memref<1x1024xf32, #tpu.memory_space<vmem>>, %arg3: memref<32x512xf32, #tpu.memory_space<vmem>>, %arg4: memref<32x512xf32, #tpu.memory_space<vmem>>, %arg5: memref<64x1024xf32, #tpu.memory_space<vmem>>, %arg6: memref<1x1024xf32, #tpu.memory_space<vmem>>, %arg7: memref<32x512xf32, #tpu.memory_space<vmem>>, %arg8: memref<32x512xf32, #tpu.memory_space<vmem>>, %arg9: memref<8x32xf32, #tpu.memory_space<vmem>>, %arg10: memref<4x1x32xf32, #tpu.memory_space<vmem>>, %arg11: memref<4x1x32xf32, #tpu.memory_space<vmem>>) attributes {dimension_semantics = [], scalar_prefetch = 0 : i64, scratch_operands = 0 : i64, tpu.core_type = #tpu.core_type<tc>} {
    %c0 = arith.constant 0 : index
    %c0_0 = arith.constant 0 : index
    %0 = vector.load %arg0[%c0, %c0_0] : memref<8x32xf32, #tpu.memory_space<vmem>>, vector<8x32xf32>
    %c0_1 = arith.constant 0 : index
    %c0_2 = arith.constant 0 : index
    %1 = vector.load %arg1[%c0_1, %c0_2] : memref<32x1024xf32, #tpu.memory_space<vmem>>, vector<32x1024xf32>
    %cst = arith.constant dense<0.000000e+00> : vector<8x1024xf32>
    %2 = tpu.matmul %0, %1, %cst {dimension_numbers = #tpu.dot_dimension_numbers<[1], [0], [0], [1], [0, 0, 1, 1], [], []>} : vector<8x32xf32>, vector<32x1024xf32>, vector<8x1024xf32> -> vector<8x1024xf32>
    %c0_3 = arith.constant 0 : index
    %c0_4 = arith.constant 0 : index
    %3 = vector.load %arg2[%c0_3, %c0_4] : memref<1x1024xf32, #tpu.memory_space<vmem>>, vector<1x1024xf32>
    %4 = vector.broadcast %3 : vector<1x1024xf32> to vector<8x1024xf32>
    %5 = arith.addf %2, %4 : vector<8x1024xf32>
    %c0_5 = arith.constant 0 : index
    %c0_6 = arith.constant 0 : index
    %6 = vector.load %arg3[%c0_5, %c0_6] : memref<32x512xf32, #tpu.memory_space<vmem>>, vector<32x512xf32>
    %c0_7 = arith.constant 0 : index
    %c0_8 = arith.constant 0 : index
    %7 = vector.load %arg4[%c0_7, %c0_8] : memref<32x512xf32, #tpu.memory_space<vmem>>, vector<32x512xf32>
    %cst_9 = arith.constant 0.000000e+00 : f32
    %8 = vector.broadcast %cst_9 : f32 to vector<1x32xf32>
    %cst_10 = arith.constant 0.000000e+00 : f32
    %9 = vector.broadcast %cst_10 : f32 to vector<1x32xf32>
    %cst_11 = arith.constant 0.000000e+00 : f32
    %10 = vector.broadcast %cst_11 : f32 to vector<1x32xf32>
    %cst_12 = arith.constant 0.000000e+00 : f32
    %11 = vector.broadcast %cst_12 : f32 to vector<1x32xf32>
    %cst_13 = arith.constant dense<0.000000e+00> : vector<1x512xf32>
    %12 = tpu.matmul %8, %6, %cst_13 {dimension_numbers = #tpu.dot_dimension_numbers<[1], [0], [0], [1], [0, 0, 1, 1], [], []>} : vector<1x32xf32>, vector<32x512xf32>, vector<1x512xf32> -> vector<1x512xf32>
    %cst_14 = arith.constant dense<0.000000e+00> : vector<1x512xf32>
    %13 = tpu.matmul %10, %7, %cst_14 {dimension_numbers = #tpu.dot_dimension_numbers<[1], [0], [0], [1], [0, 0, 1, 1], [], []>} : vector<1x32xf32>, vector<32x512xf32>, vector<1x512xf32> -> vector<1x512xf32>
    %14 = vector.extract_strided_slice %5 {offsets = [0, 0], sizes = [1, 512], strides = [1, 1]} : vector<8x1024xf32> to vector<1x512xf32>
    %15 = arith.addf %14, %12 : vector<1x512xf32>
    %16 = vector.extract_strided_slice %5 {offsets = [7, 512], sizes = [1, 512], strides = [1, 1]} : vector<8x1024xf32> to vector<1x512xf32>
    %17 = arith.addf %16, %13 : vector<1x512xf32>
    %18 = vector.extract_strided_slice %15 {offsets = [0, 0], sizes = [1, 32], strides = [1, 1]} : vector<1x512xf32> to vector<1x32xf32>
    %cst_15 = arith.constant 5.000000e-01 : f32
    %19 = vector.broadcast %cst_15 : f32 to vector<1x32xf32>
    %20 = arith.mulf %19, %18 : vector<1x32xf32>
    %21 = math.tanh %20 : vector<1x32xf32>
    %cst_16 = arith.constant 5.000000e-01 : f32
    %22 = vector.broadcast %cst_16 : f32 to vector<1x32xf32>
    %23 = arith.mulf %22, %21 : vector<1x32xf32>
    %cst_17 = arith.constant 5.000000e-01 : f32
    %24 = vector.broadcast %cst_17 : f32 to vector<1x32xf32>
    %25 = arith.addf %23, %24 : vector<1x32xf32>
    %26 = vector.extract_strided_slice %15 {offsets = [0, 128], sizes = [1, 32], strides = [1, 1]} : vector<1x512xf32> to vector<1x32xf32>
    %cst_18 = arith.constant 5.000000e-01 : f32
    %27 = vector.broadcast %cst_18 : f32 to vector<1x32xf32>
    %28 = arith.mulf %27, %26 : vector<1x32xf32>
    %29 = math.tanh %28 : vector<1x32xf32>
    %cst_19 = arith.constant 5.000000e-01 : f32
    %30 = vector.broadcast %cst_19 : f32 to vector<1x32xf32>
    %31 = arith.mulf %30, %29 : vector<1x32xf32>
    %cst_20 = arith.constant 5.000000e-01 : f32
    %32 = vector.broadcast %cst_20 : f32 to vector<1x32xf32>
    %33 = arith.addf %31, %32 : vector<1x32xf32>
    %34 = vector.extract_strided_slice %15 {offsets = [0, 256], sizes = [1, 32], strides = [1, 1]} : vector<1x512xf32> to vector<1x32xf32>
    %35 = math.tanh %34 : vector<1x32xf32>
    %36 = vector.extract_strided_slice %15 {offsets = [0, 384], sizes = [1, 32], strides = [1, 1]} : vector<1x512xf32> to vector<1x32xf32>
    %cst_21 = arith.constant 5.000000e-01 : f32
    %37 = vector.broadcast %cst_21 : f32 to vector<1x32xf32>
    %38 = arith.mulf %37, %36 : vector<1x32xf32>
    %39 = math.tanh %38 : vector<1x32xf32>
    %cst_22 = arith.constant 5.000000e-01 : f32
    %40 = vector.broadcast %cst_22 : f32 to vector<1x32xf32>
    %41 = arith.mulf %40, %39 : vector<1x32xf32>
    %cst_23 = arith.constant 5.000000e-01 : f32
    %42 = vector.broadcast %cst_23 : f32 to vector<1x32xf32>
    %43 = arith.addf %41, %42 : vector<1x32xf32>
    %44 = vector.extract_strided_slice %17 {offsets = [0, 0], sizes = [1, 32], strides = [1, 1]} : vector<1x512xf32> to vector<1x32xf32>
    %cst_24 = arith.constant 5.000000e-01 : f32
    %45 = vector.broadcast %cst_24 : f32 to vector<1x32xf32>
    %46 = arith.mulf %45, %44 : vector<1x32xf32>
    %47 = math.tanh %46 : vector<1x32xf32>
    %cst_25 = arith.constant 5.000000e-01 : f32
    %48 = vector.broadcast %cst_25 : f32 to vector<1x32xf32>
    %49 = arith.mulf %48, %47 : vector<1x32xf32>
    %cst_26 = arith.constant 5.000000e-01 : f32
    %50 = vector.broadcast %cst_26 : f32 to vector<1x32xf32>
    %51 = arith.addf %49, %50 : vector<1x32xf32>
    %52 = vector.extract_strided_slice %17 {offsets = [0, 128], sizes = [1, 32], strides = [1, 1]} : vector<1x512xf32> to vector<1x32xf32>
    %cst_27 = arith.constant 5.000000e-01 : f32
    %53 = vector.broadcast %cst_27 : f32 to vector<1x32xf32>
    %54 = arith.mulf %53, %52 : vector<1x32xf32>
    %55 = math.tanh %54 : vector<1x32xf32>
    %cst_28 = arith.constant 5.000000e-01 : f32
    %56 = vector.broadcast %cst_28 : f32 to vector<1x32xf32>
    %57 = arith.mulf %56, %55 : vector<1x32xf32>
    %cst_29 = arith.constant 5.000000e-01 : f32
    %58 = vector.broadcast %cst_29 : f32 to vector<1x32xf32>
    %59 = arith.addf %57, %58 : vector<1x32xf32>
    %60 = vector.extract_strided_slice %17 {offsets = [0, 256], sizes = [1, 32], strides = [1, 1]} : vector<1x512xf32> to vector<1x32xf32>
    %61 = math.tanh %60 : vector<1x32xf32>
    %62 = vector.extract_strided_slice %17 {offsets = [0, 384], sizes = [1, 32], strides = [1, 1]} : vector<1x512xf32> to vector<1x32xf32>
    %cst_30 = arith.constant 5.000000e-01 : f32
    %63 = vector.broadcast %cst_30 : f32 to vector<1x32xf32>
    %64 = arith.mulf %63, %62 : vector<1x32xf32>
    %65 = math.tanh %64 : vector<1x32xf32>
    %cst_31 = arith.constant 5.000000e-01 : f32
    %66 = vector.broadcast %cst_31 : f32 to vector<1x32xf32>
    %67 = arith.mulf %66, %65 : vector<1x32xf32>
    %cst_32 = arith.constant 5.000000e-01 : f32
    %68 = vector.broadcast %cst_32 : f32 to vector<1x32xf32>
    %69 = arith.addf %67, %68 : vector<1x32xf32>
    %70 = arith.mulf %33, %9 : vector<1x32xf32>
    %71 = arith.mulf %25, %35 : vector<1x32xf32>
    %72 = arith.addf %70, %71 : vector<1x32xf32>
    %73 = math.tanh %72 : vector<1x32xf32>
    %74 = arith.mulf %43, %73 : vector<1x32xf32>
    %75 = arith.mulf %59, %11 : vector<1x32xf32>
    %76 = arith.mulf %51, %61 : vector<1x32xf32>
    %77 = arith.addf %75, %76 : vector<1x32xf32>
    %78 = math.tanh %77 : vector<1x32xf32>
    %79 = arith.mulf %69, %78 : vector<1x32xf32>
    %cst_33 = arith.constant dense<0.000000e+00> : vector<1x512xf32>
    %80 = tpu.matmul %74, %6, %cst_33 {dimension_numbers = #tpu.dot_dimension_numbers<[1], [0], [0], [1], [0, 0, 1, 1], [], []>} : vector<1x32xf32>, vector<32x512xf32>, vector<1x512xf32> -> vector<1x512xf32>
    %cst_34 = arith.constant dense<0.000000e+00> : vector<1x512xf32>
    %81 = tpu.matmul %79, %7, %cst_34 {dimension_numbers = #tpu.dot_dimension_numbers<[1], [0], [0], [1], [0, 0, 1, 1], [], []>} : vector<1x32xf32>, vector<32x512xf32>, vector<1x512xf32> -> vector<1x512xf32>
    %82 = vector.extract_strided_slice %5 {offsets = [1, 0], sizes = [1, 512], strides = [1, 1]} : vector<8x1024xf32> to vector<1x512xf32>
    %83 = arith.addf %82, %80 : vector<1x512xf32>
    %84 = vector.extract_strided_slice %5 {offsets = [6, 512], sizes = [1, 512], strides = [1, 1]} : vector<8x1024xf32> to vector<1x512xf32>
    %85 = arith.addf %84, %81 : vector<1x512xf32>
    %86 = vector.extract_strided_slice %83 {offsets = [0, 0], sizes = [1, 32], strides = [1, 1]} : vector<1x512xf32> to vector<1x32xf32>
    %cst_35 = arith.constant 5.000000e-01 : f32
    %87 = vector.broadcast %cst_35 : f32 to vector<1x32xf32>
    %88 = arith.mulf %87, %86 : vector<1x32xf32>
    %89 = math.tanh %88 : vector<1x32xf32>
    %cst_36 = arith.constant 5.000000e-01 : f32
    %90 = vector.broadcast %cst_36 : f32 to vector<1x32xf32>
    %91 = arith.mulf %90, %89 : vector<1x32xf32>
    %cst_37 = arith.constant 5.000000e-01 : f32
    %92 = vector.broadcast %cst_37 : f32 to vector<1x32xf32>
    %93 = arith.addf %91, %92 : vector<1x32xf32>
    %94 = vector.extract_strided_slice %83 {offsets = [0, 128], sizes = [1, 32], strides = [1, 1]} : vector<1x512xf32> to vector<1x32xf32>
    %cst_38 = arith.constant 5.000000e-01 : f32
    %95 = vector.broadcast %cst_38 : f32 to vector<1x32xf32>
    %96 = arith.mulf %95, %94 : vector<1x32xf32>
    %97 = math.tanh %96 : vector<1x32xf32>
    %cst_39 = arith.constant 5.000000e-01 : f32
    %98 = vector.broadcast %cst_39 : f32 to vector<1x32xf32>
    %99 = arith.mulf %98, %97 : vector<1x32xf32>
    %cst_40 = arith.constant 5.000000e-01 : f32
    %100 = vector.broadcast %cst_40 : f32 to vector<1x32xf32>
    %101 = arith.addf %99, %100 : vector<1x32xf32>
    %102 = vector.extract_strided_slice %83 {offsets = [0, 256], sizes = [1, 32], strides = [1, 1]} : vector<1x512xf32> to vector<1x32xf32>
    %103 = math.tanh %102 : vector<1x32xf32>
    %104 = vector.extract_strided_slice %83 {offsets = [0, 384], sizes = [1, 32], strides = [1, 1]} : vector<1x512xf32> to vector<1x32xf32>
    %cst_41 = arith.constant 5.000000e-01 : f32
    %105 = vector.broadcast %cst_41 : f32 to vector<1x32xf32>
    %106 = arith.mulf %105, %104 : vector<1x32xf32>
    %107 = math.tanh %106 : vector<1x32xf32>
    %cst_42 = arith.constant 5.000000e-01 : f32
    %108 = vector.broadcast %cst_42 : f32 to vector<1x32xf32>
    %109 = arith.mulf %108, %107 : vector<1x32xf32>
    %cst_43 = arith.constant 5.000000e-01 : f32
    %110 = vector.broadcast %cst_43 : f32 to vector<1x32xf32>
    %111 = arith.addf %109, %110 : vector<1x32xf32>
    %112 = vector.extract_strided_slice %85 {offsets = [0, 0], sizes = [1, 32], strides = [1, 1]} : vector<1x512xf32> to vector<1x32xf32>
    %cst_44 = arith.constant 5.000000e-01 : f32
    %113 = vector.broadcast %cst_44 : f32 to vector<1x32xf32>
    %114 = arith.mulf %113, %112 : vector<1x32xf32>
    %115 = math.tanh %114 : vector<1x32xf32>
    %cst_45 = arith.constant 5.000000e-01 : f32
    %116 = vector.broadcast %cst_45 : f32 to vector<1x32xf32>
    %117 = arith.mulf %116, %115 : vector<1x32xf32>
    %cst_46 = arith.constant 5.000000e-01 : f32
    %118 = vector.broadcast %cst_46 : f32 to vector<1x32xf32>
    %119 = arith.addf %117, %118 : vector<1x32xf32>
    %120 = vector.extract_strided_slice %85 {offsets = [0, 128], sizes = [1, 32], strides = [1, 1]} : vector<1x512xf32> to vector<1x32xf32>
    %cst_47 = arith.constant 5.000000e-01 : f32
    %121 = vector.broadcast %cst_47 : f32 to vector<1x32xf32>
    %122 = arith.mulf %121, %120 : vector<1x32xf32>
    %123 = math.tanh %122 : vector<1x32xf32>
    %cst_48 = arith.constant 5.000000e-01 : f32
    %124 = vector.broadcast %cst_48 : f32 to vector<1x32xf32>
    %125 = arith.mulf %124, %123 : vector<1x32xf32>
    %cst_49 = arith.constant 5.000000e-01 : f32
    %126 = vector.broadcast %cst_49 : f32 to vector<1x32xf32>
    %127 = arith.addf %125, %126 : vector<1x32xf32>
    %128 = vector.extract_strided_slice %85 {offsets = [0, 256], sizes = [1, 32], strides = [1, 1]} : vector<1x512xf32> to vector<1x32xf32>
    %129 = math.tanh %128 : vector<1x32xf32>
    %130 = vector.extract_strided_slice %85 {offsets = [0, 384], sizes = [1, 32], strides = [1, 1]} : vector<1x512xf32> to vector<1x32xf32>
    %cst_50 = arith.constant 5.000000e-01 : f32
    %131 = vector.broadcast %cst_50 : f32 to vector<1x32xf32>
    %132 = arith.mulf %131, %130 : vector<1x32xf32>
    %133 = math.tanh %132 : vector<1x32xf32>
    %cst_51 = arith.constant 5.000000e-01 : f32
    %134 = vector.broadcast %cst_51 : f32 to vector<1x32xf32>
    %135 = arith.mulf %134, %133 : vector<1x32xf32>
    %cst_52 = arith.constant 5.000000e-01 : f32
    %136 = vector.broadcast %cst_52 : f32 to vector<1x32xf32>
    %137 = arith.addf %135, %136 : vector<1x32xf32>
    %138 = arith.mulf %101, %72 : vector<1x32xf32>
    %139 = arith.mulf %93, %103 : vector<1x32xf32>
    %140 = arith.addf %138, %139 : vector<1x32xf32>
    %141 = math.tanh %140 : vector<1x32xf32>
    %142 = arith.mulf %111, %141 : vector<1x32xf32>
    %143 = arith.mulf %127, %77 : vector<1x32xf32>
    %144 = arith.mulf %119, %129 : vector<1x32xf32>
    %145 = arith.addf %143, %144 : vector<1x32xf32>
    %146 = math.tanh %145 : vector<1x32xf32>
    %147 = arith.mulf %137, %146 : vector<1x32xf32>
    %cst_53 = arith.constant dense<0.000000e+00> : vector<1x512xf32>
    %148 = tpu.matmul %142, %6, %cst_53 {dimension_numbers = #tpu.dot_dimension_numbers<[1], [0], [0], [1], [0, 0, 1, 1], [], []>} : vector<1x32xf32>, vector<32x512xf32>, vector<1x512xf32> -> vector<1x512xf32>
    %cst_54 = arith.constant dense<0.000000e+00> : vector<1x512xf32>
    %149 = tpu.matmul %147, %7, %cst_54 {dimension_numbers = #tpu.dot_dimension_numbers<[1], [0], [0], [1], [0, 0, 1, 1], [], []>} : vector<1x32xf32>, vector<32x512xf32>, vector<1x512xf32> -> vector<1x512xf32>
    %150 = vector.extract_strided_slice %5 {offsets = [2, 0], sizes = [1, 512], strides = [1, 1]} : vector<8x1024xf32> to vector<1x512xf32>
    %151 = arith.addf %150, %148 : vector<1x512xf32>
    %152 = vector.extract_strided_slice %5 {offsets = [5, 512], sizes = [1, 512], strides = [1, 1]} : vector<8x1024xf32> to vector<1x512xf32>
    %153 = arith.addf %152, %149 : vector<1x512xf32>
    %154 = vector.extract_strided_slice %151 {offsets = [0, 0], sizes = [1, 32], strides = [1, 1]} : vector<1x512xf32> to vector<1x32xf32>
    %cst_55 = arith.constant 5.000000e-01 : f32
    %155 = vector.broadcast %cst_55 : f32 to vector<1x32xf32>
    %156 = arith.mulf %155, %154 : vector<1x32xf32>
    %157 = math.tanh %156 : vector<1x32xf32>
    %cst_56 = arith.constant 5.000000e-01 : f32
    %158 = vector.broadcast %cst_56 : f32 to vector<1x32xf32>
    %159 = arith.mulf %158, %157 : vector<1x32xf32>
    %cst_57 = arith.constant 5.000000e-01 : f32
    %160 = vector.broadcast %cst_57 : f32 to vector<1x32xf32>
    %161 = arith.addf %159, %160 : vector<1x32xf32>
    %162 = vector.extract_strided_slice %151 {offsets = [0, 128], sizes = [1, 32], strides = [1, 1]} : vector<1x512xf32> to vector<1x32xf32>
    %cst_58 = arith.constant 5.000000e-01 : f32
    %163 = vector.broadcast %cst_58 : f32 to vector<1x32xf32>
    %164 = arith.mulf %163, %162 : vector<1x32xf32>
    %165 = math.tanh %164 : vector<1x32xf32>
    %cst_59 = arith.constant 5.000000e-01 : f32
    %166 = vector.broadcast %cst_59 : f32 to vector<1x32xf32>
    %167 = arith.mulf %166, %165 : vector<1x32xf32>
    %cst_60 = arith.constant 5.000000e-01 : f32
    %168 = vector.broadcast %cst_60 : f32 to vector<1x32xf32>
    %169 = arith.addf %167, %168 : vector<1x32xf32>
    %170 = vector.extract_strided_slice %151 {offsets = [0, 256], sizes = [1, 32], strides = [1, 1]} : vector<1x512xf32> to vector<1x32xf32>
    %171 = math.tanh %170 : vector<1x32xf32>
    %172 = vector.extract_strided_slice %151 {offsets = [0, 384], sizes = [1, 32], strides = [1, 1]} : vector<1x512xf32> to vector<1x32xf32>
    %cst_61 = arith.constant 5.000000e-01 : f32
    %173 = vector.broadcast %cst_61 : f32 to vector<1x32xf32>
    %174 = arith.mulf %173, %172 : vector<1x32xf32>
    %175 = math.tanh %174 : vector<1x32xf32>
    %cst_62 = arith.constant 5.000000e-01 : f32
    %176 = vector.broadcast %cst_62 : f32 to vector<1x32xf32>
    %177 = arith.mulf %176, %175 : vector<1x32xf32>
    %cst_63 = arith.constant 5.000000e-01 : f32
    %178 = vector.broadcast %cst_63 : f32 to vector<1x32xf32>
    %179 = arith.addf %177, %178 : vector<1x32xf32>
    %180 = vector.extract_strided_slice %153 {offsets = [0, 0], sizes = [1, 32], strides = [1, 1]} : vector<1x512xf32> to vector<1x32xf32>
    %cst_64 = arith.constant 5.000000e-01 : f32
    %181 = vector.broadcast %cst_64 : f32 to vector<1x32xf32>
    %182 = arith.mulf %181, %180 : vector<1x32xf32>
    %183 = math.tanh %182 : vector<1x32xf32>
    %cst_65 = arith.constant 5.000000e-01 : f32
    %184 = vector.broadcast %cst_65 : f32 to vector<1x32xf32>
    %185 = arith.mulf %184, %183 : vector<1x32xf32>
    %cst_66 = arith.constant 5.000000e-01 : f32
    %186 = vector.broadcast %cst_66 : f32 to vector<1x32xf32>
    %187 = arith.addf %185, %186 : vector<1x32xf32>
    %188 = vector.extract_strided_slice %153 {offsets = [0, 128], sizes = [1, 32], strides = [1, 1]} : vector<1x512xf32> to vector<1x32xf32>
    %cst_67 = arith.constant 5.000000e-01 : f32
    %189 = vector.broadcast %cst_67 : f32 to vector<1x32xf32>
    %190 = arith.mulf %189, %188 : vector<1x32xf32>
    %191 = math.tanh %190 : vector<1x32xf32>
    %cst_68 = arith.constant 5.000000e-01 : f32
    %192 = vector.broadcast %cst_68 : f32 to vector<1x32xf32>
    %193 = arith.mulf %192, %191 : vector<1x32xf32>
    %cst_69 = arith.constant 5.000000e-01 : f32
    %194 = vector.broadcast %cst_69 : f32 to vector<1x32xf32>
    %195 = arith.addf %193, %194 : vector<1x32xf32>
    %196 = vector.extract_strided_slice %153 {offsets = [0, 256], sizes = [1, 32], strides = [1, 1]} : vector<1x512xf32> to vector<1x32xf32>
    %197 = math.tanh %196 : vector<1x32xf32>
    %198 = vector.extract_strided_slice %153 {offsets = [0, 384], sizes = [1, 32], strides = [1, 1]} : vector<1x512xf32> to vector<1x32xf32>
    %cst_70 = arith.constant 5.000000e-01 : f32
    %199 = vector.broadcast %cst_70 : f32 to vector<1x32xf32>
    %200 = arith.mulf %199, %198 : vector<1x32xf32>
    %201 = math.tanh %200 : vector<1x32xf32>
    %cst_71 = arith.constant 5.000000e-01 : f32
    %202 = vector.broadcast %cst_71 : f32 to vector<1x32xf32>
    %203 = arith.mulf %202, %201 : vector<1x32xf32>
    %cst_72 = arith.constant 5.000000e-01 : f32
    %204 = vector.broadcast %cst_72 : f32 to vector<1x32xf32>
    %205 = arith.addf %203, %204 : vector<1x32xf32>
    %206 = arith.mulf %169, %140 : vector<1x32xf32>
    %207 = arith.mulf %161, %171 : vector<1x32xf32>
    %208 = arith.addf %206, %207 : vector<1x32xf32>
    %209 = math.tanh %208 : vector<1x32xf32>
    %210 = arith.mulf %179, %209 : vector<1x32xf32>
    %211 = arith.mulf %195, %145 : vector<1x32xf32>
    %212 = arith.mulf %187, %197 : vector<1x32xf32>
    %213 = arith.addf %211, %212 : vector<1x32xf32>
    %214 = math.tanh %213 : vector<1x32xf32>
    %215 = arith.mulf %205, %214 : vector<1x32xf32>
    %cst_73 = arith.constant dense<0.000000e+00> : vector<1x512xf32>
    %216 = tpu.matmul %210, %6, %cst_73 {dimension_numbers = #tpu.dot_dimension_numbers<[1], [0], [0], [1], [0, 0, 1, 1], [], []>} : vector<1x32xf32>, vector<32x512xf32>, vector<1x512xf32> -> vector<1x512xf32>
    %cst_74 = arith.constant dense<0.000000e+00> : vector<1x512xf32>
    %217 = tpu.matmul %215, %7, %cst_74 {dimension_numbers = #tpu.dot_dimension_numbers<[1], [0], [0], [1], [0, 0, 1, 1], [], []>} : vector<1x32xf32>, vector<32x512xf32>, vector<1x512xf32> -> vector<1x512xf32>
    %218 = vector.extract_strided_slice %5 {offsets = [3, 0], sizes = [1, 512], strides = [1, 1]} : vector<8x1024xf32> to vector<1x512xf32>
    %219 = arith.addf %218, %216 : vector<1x512xf32>
    %220 = vector.extract_strided_slice %5 {offsets = [4, 512], sizes = [1, 512], strides = [1, 1]} : vector<8x1024xf32> to vector<1x512xf32>
    %221 = arith.addf %220, %217 : vector<1x512xf32>
    %222 = vector.extract_strided_slice %219 {offsets = [0, 0], sizes = [1, 32], strides = [1, 1]} : vector<1x512xf32> to vector<1x32xf32>
    %cst_75 = arith.constant 5.000000e-01 : f32
    %223 = vector.broadcast %cst_75 : f32 to vector<1x32xf32>
    %224 = arith.mulf %223, %222 : vector<1x32xf32>
    %225 = math.tanh %224 : vector<1x32xf32>
    %cst_76 = arith.constant 5.000000e-01 : f32
    %226 = vector.broadcast %cst_76 : f32 to vector<1x32xf32>
    %227 = arith.mulf %226, %225 : vector<1x32xf32>
    %cst_77 = arith.constant 5.000000e-01 : f32
    %228 = vector.broadcast %cst_77 : f32 to vector<1x32xf32>
    %229 = arith.addf %227, %228 : vector<1x32xf32>
    %230 = vector.extract_strided_slice %219 {offsets = [0, 128], sizes = [1, 32], strides = [1, 1]} : vector<1x512xf32> to vector<1x32xf32>
    %cst_78 = arith.constant 5.000000e-01 : f32
    %231 = vector.broadcast %cst_78 : f32 to vector<1x32xf32>
    %232 = arith.mulf %231, %230 : vector<1x32xf32>
    %233 = math.tanh %232 : vector<1x32xf32>
    %cst_79 = arith.constant 5.000000e-01 : f32
    %234 = vector.broadcast %cst_79 : f32 to vector<1x32xf32>
    %235 = arith.mulf %234, %233 : vector<1x32xf32>
    %cst_80 = arith.constant 5.000000e-01 : f32
    %236 = vector.broadcast %cst_80 : f32 to vector<1x32xf32>
    %237 = arith.addf %235, %236 : vector<1x32xf32>
    %238 = vector.extract_strided_slice %219 {offsets = [0, 256], sizes = [1, 32], strides = [1, 1]} : vector<1x512xf32> to vector<1x32xf32>
    %239 = math.tanh %238 : vector<1x32xf32>
    %240 = vector.extract_strided_slice %219 {offsets = [0, 384], sizes = [1, 32], strides = [1, 1]} : vector<1x512xf32> to vector<1x32xf32>
    %cst_81 = arith.constant 5.000000e-01 : f32
    %241 = vector.broadcast %cst_81 : f32 to vector<1x32xf32>
    %242 = arith.mulf %241, %240 : vector<1x32xf32>
    %243 = math.tanh %242 : vector<1x32xf32>
    %cst_82 = arith.constant 5.000000e-01 : f32
    %244 = vector.broadcast %cst_82 : f32 to vector<1x32xf32>
    %245 = arith.mulf %244, %243 : vector<1x32xf32>
    %cst_83 = arith.constant 5.000000e-01 : f32
    %246 = vector.broadcast %cst_83 : f32 to vector<1x32xf32>
    %247 = arith.addf %245, %246 : vector<1x32xf32>
    %248 = vector.extract_strided_slice %221 {offsets = [0, 0], sizes = [1, 32], strides = [1, 1]} : vector<1x512xf32> to vector<1x32xf32>
    %cst_84 = arith.constant 5.000000e-01 : f32
    %249 = vector.broadcast %cst_84 : f32 to vector<1x32xf32>
    %250 = arith.mulf %249, %248 : vector<1x32xf32>
    %251 = math.tanh %250 : vector<1x32xf32>
    %cst_85 = arith.constant 5.000000e-01 : f32
    %252 = vector.broadcast %cst_85 : f32 to vector<1x32xf32>
    %253 = arith.mulf %252, %251 : vector<1x32xf32>
    %cst_86 = arith.constant 5.000000e-01 : f32
    %254 = vector.broadcast %cst_86 : f32 to vector<1x32xf32>
    %255 = arith.addf %253, %254 : vector<1x32xf32>
    %256 = vector.extract_strided_slice %221 {offsets = [0, 128], sizes = [1, 32], strides = [1, 1]} : vector<1x512xf32> to vector<1x32xf32>
    %cst_87 = arith.constant 5.000000e-01 : f32
    %257 = vector.broadcast %cst_87 : f32 to vector<1x32xf32>
    %258 = arith.mulf %257, %256 : vector<1x32xf32>
    %259 = math.tanh %258 : vector<1x32xf32>
    %cst_88 = arith.constant 5.000000e-01 : f32
    %260 = vector.broadcast %cst_88 : f32 to vector<1x32xf32>
    %261 = arith.mulf %260, %259 : vector<1x32xf32>
    %cst_89 = arith.constant 5.000000e-01 : f32
    %262 = vector.broadcast %cst_89 : f32 to vector<1x32xf32>
    %263 = arith.addf %261, %262 : vector<1x32xf32>
    %264 = vector.extract_strided_slice %221 {offsets = [0, 256], sizes = [1, 32], strides = [1, 1]} : vector<1x512xf32> to vector<1x32xf32>
    %265 = math.tanh %264 : vector<1x32xf32>
    %266 = vector.extract_strided_slice %221 {offsets = [0, 384], sizes = [1, 32], strides = [1, 1]} : vector<1x512xf32> to vector<1x32xf32>
    %cst_90 = arith.constant 5.000000e-01 : f32
    %267 = vector.broadcast %cst_90 : f32 to vector<1x32xf32>
    %268 = arith.mulf %267, %266 : vector<1x32xf32>
    %269 = math.tanh %268 : vector<1x32xf32>
    %cst_91 = arith.constant 5.000000e-01 : f32
    %270 = vector.broadcast %cst_91 : f32 to vector<1x32xf32>
    %271 = arith.mulf %270, %269 : vector<1x32xf32>
    %cst_92 = arith.constant 5.000000e-01 : f32
    %272 = vector.broadcast %cst_92 : f32 to vector<1x32xf32>
    %273 = arith.addf %271, %272 : vector<1x32xf32>
    %274 = arith.mulf %237, %208 : vector<1x32xf32>
    %275 = arith.mulf %229, %239 : vector<1x32xf32>
    %276 = arith.addf %274, %275 : vector<1x32xf32>
    %277 = math.tanh %276 : vector<1x32xf32>
    %278 = arith.mulf %247, %277 : vector<1x32xf32>
    %279 = arith.mulf %263, %213 : vector<1x32xf32>
    %280 = arith.mulf %255, %265 : vector<1x32xf32>
    %281 = arith.addf %279, %280 : vector<1x32xf32>
    %282 = math.tanh %281 : vector<1x32xf32>
    %283 = arith.mulf %273, %282 : vector<1x32xf32>
    %cst_93 = arith.constant dense<0.000000e+00> : vector<1x512xf32>
    %284 = tpu.matmul %278, %6, %cst_93 {dimension_numbers = #tpu.dot_dimension_numbers<[1], [0], [0], [1], [0, 0, 1, 1], [], []>} : vector<1x32xf32>, vector<32x512xf32>, vector<1x512xf32> -> vector<1x512xf32>
    %cst_94 = arith.constant dense<0.000000e+00> : vector<1x512xf32>
    %285 = tpu.matmul %283, %7, %cst_94 {dimension_numbers = #tpu.dot_dimension_numbers<[1], [0], [0], [1], [0, 0, 1, 1], [], []>} : vector<1x32xf32>, vector<32x512xf32>, vector<1x512xf32> -> vector<1x512xf32>
    %286 = vector.extract_strided_slice %5 {offsets = [4, 0], sizes = [1, 512], strides = [1, 1]} : vector<8x1024xf32> to vector<1x512xf32>
    %287 = arith.addf %286, %284 : vector<1x512xf32>
    %288 = vector.extract_strided_slice %5 {offsets = [3, 512], sizes = [1, 512], strides = [1, 1]} : vector<8x1024xf32> to vector<1x512xf32>
    %289 = arith.addf %288, %285 : vector<1x512xf32>
    %290 = vector.extract_strided_slice %287 {offsets = [0, 0], sizes = [1, 32], strides = [1, 1]} : vector<1x512xf32> to vector<1x32xf32>
    %cst_95 = arith.constant 5.000000e-01 : f32
    %291 = vector.broadcast %cst_95 : f32 to vector<1x32xf32>
    %292 = arith.mulf %291, %290 : vector<1x32xf32>
    %293 = math.tanh %292 : vector<1x32xf32>
    %cst_96 = arith.constant 5.000000e-01 : f32
    %294 = vector.broadcast %cst_96 : f32 to vector<1x32xf32>
    %295 = arith.mulf %294, %293 : vector<1x32xf32>
    %cst_97 = arith.constant 5.000000e-01 : f32
    %296 = vector.broadcast %cst_97 : f32 to vector<1x32xf32>
    %297 = arith.addf %295, %296 : vector<1x32xf32>
    %298 = vector.extract_strided_slice %287 {offsets = [0, 128], sizes = [1, 32], strides = [1, 1]} : vector<1x512xf32> to vector<1x32xf32>
    %cst_98 = arith.constant 5.000000e-01 : f32
    %299 = vector.broadcast %cst_98 : f32 to vector<1x32xf32>
    %300 = arith.mulf %299, %298 : vector<1x32xf32>
    %301 = math.tanh %300 : vector<1x32xf32>
    %cst_99 = arith.constant 5.000000e-01 : f32
    %302 = vector.broadcast %cst_99 : f32 to vector<1x32xf32>
    %303 = arith.mulf %302, %301 : vector<1x32xf32>
    %cst_100 = arith.constant 5.000000e-01 : f32
    %304 = vector.broadcast %cst_100 : f32 to vector<1x32xf32>
    %305 = arith.addf %303, %304 : vector<1x32xf32>
    %306 = vector.extract_strided_slice %287 {offsets = [0, 256], sizes = [1, 32], strides = [1, 1]} : vector<1x512xf32> to vector<1x32xf32>
    %307 = math.tanh %306 : vector<1x32xf32>
    %308 = vector.extract_strided_slice %287 {offsets = [0, 384], sizes = [1, 32], strides = [1, 1]} : vector<1x512xf32> to vector<1x32xf32>
    %cst_101 = arith.constant 5.000000e-01 : f32
    %309 = vector.broadcast %cst_101 : f32 to vector<1x32xf32>
    %310 = arith.mulf %309, %308 : vector<1x32xf32>
    %311 = math.tanh %310 : vector<1x32xf32>
    %cst_102 = arith.constant 5.000000e-01 : f32
    %312 = vector.broadcast %cst_102 : f32 to vector<1x32xf32>
    %313 = arith.mulf %312, %311 : vector<1x32xf32>
    %cst_103 = arith.constant 5.000000e-01 : f32
    %314 = vector.broadcast %cst_103 : f32 to vector<1x32xf32>
    %315 = arith.addf %313, %314 : vector<1x32xf32>
    %316 = vector.extract_strided_slice %289 {offsets = [0, 0], sizes = [1, 32], strides = [1, 1]} : vector<1x512xf32> to vector<1x32xf32>
    %cst_104 = arith.constant 5.000000e-01 : f32
    %317 = vector.broadcast %cst_104 : f32 to vector<1x32xf32>
    %318 = arith.mulf %317, %316 : vector<1x32xf32>
    %319 = math.tanh %318 : vector<1x32xf32>
    %cst_105 = arith.constant 5.000000e-01 : f32
    %320 = vector.broadcast %cst_105 : f32 to vector<1x32xf32>
    %321 = arith.mulf %320, %319 : vector<1x32xf32>
    %cst_106 = arith.constant 5.000000e-01 : f32
    %322 = vector.broadcast %cst_106 : f32 to vector<1x32xf32>
    %323 = arith.addf %321, %322 : vector<1x32xf32>
    %324 = vector.extract_strided_slice %289 {offsets = [0, 128], sizes = [1, 32], strides = [1, 1]} : vector<1x512xf32> to vector<1x32xf32>
    %cst_107 = arith.constant 5.000000e-01 : f32
    %325 = vector.broadcast %cst_107 : f32 to vector<1x32xf32>
    %326 = arith.mulf %325, %324 : vector<1x32xf32>
    %327 = math.tanh %326 : vector<1x32xf32>
    %cst_108 = arith.constant 5.000000e-01 : f32
    %328 = vector.broadcast %cst_108 : f32 to vector<1x32xf32>
    %329 = arith.mulf %328, %327 : vector<1x32xf32>
    %cst_109 = arith.constant 5.000000e-01 : f32
    %330 = vector.broadcast %cst_109 : f32 to vector<1x32xf32>
    %331 = arith.addf %329, %330 : vector<1x32xf32>
    %332 = vector.extract_strided_slice %289 {offsets = [0, 256], sizes = [1, 32], strides = [1, 1]} : vector<1x512xf32> to vector<1x32xf32>
    %333 = math.tanh %332 : vector<1x32xf32>
    %334 = vector.extract_strided_slice %289 {offsets = [0, 384], sizes = [1, 32], strides = [1, 1]} : vector<1x512xf32> to vector<1x32xf32>
    %cst_110 = arith.constant 5.000000e-01 : f32
    %335 = vector.broadcast %cst_110 : f32 to vector<1x32xf32>
    %336 = arith.mulf %335, %334 : vector<1x32xf32>
    %337 = math.tanh %336 : vector<1x32xf32>
    %cst_111 = arith.constant 5.000000e-01 : f32
    %338 = vector.broadcast %cst_111 : f32 to vector<1x32xf32>
    %339 = arith.mulf %338, %337 : vector<1x32xf32>
    %cst_112 = arith.constant 5.000000e-01 : f32
    %340 = vector.broadcast %cst_112 : f32 to vector<1x32xf32>
    %341 = arith.addf %339, %340 : vector<1x32xf32>
    %342 = arith.mulf %305, %276 : vector<1x32xf32>
    %343 = arith.mulf %297, %307 : vector<1x32xf32>
    %344 = arith.addf %342, %343 : vector<1x32xf32>
    %345 = math.tanh %344 : vector<1x32xf32>
    %346 = arith.mulf %315, %345 : vector<1x32xf32>
    %347 = arith.mulf %331, %281 : vector<1x32xf32>
    %348 = arith.mulf %323, %333 : vector<1x32xf32>
    %349 = arith.addf %347, %348 : vector<1x32xf32>
    %350 = math.tanh %349 : vector<1x32xf32>
    %351 = arith.mulf %341, %350 : vector<1x32xf32>
    %cst_113 = arith.constant dense<0.000000e+00> : vector<1x512xf32>
    %352 = tpu.matmul %346, %6, %cst_113 {dimension_numbers = #tpu.dot_dimension_numbers<[1], [0], [0], [1], [0, 0, 1, 1], [], []>} : vector<1x32xf32>, vector<32x512xf32>, vector<1x512xf32> -> vector<1x512xf32>
    %cst_114 = arith.constant dense<0.000000e+00> : vector<1x512xf32>
    %353 = tpu.matmul %351, %7, %cst_114 {dimension_numbers = #tpu.dot_dimension_numbers<[1], [0], [0], [1], [0, 0, 1, 1], [], []>} : vector<1x32xf32>, vector<32x512xf32>, vector<1x512xf32> -> vector<1x512xf32>
    %354 = vector.extract_strided_slice %5 {offsets = [5, 0], sizes = [1, 512], strides = [1, 1]} : vector<8x1024xf32> to vector<1x512xf32>
    %355 = arith.addf %354, %352 : vector<1x512xf32>
    %356 = vector.extract_strided_slice %5 {offsets = [2, 512], sizes = [1, 512], strides = [1, 1]} : vector<8x1024xf32> to vector<1x512xf32>
    %357 = arith.addf %356, %353 : vector<1x512xf32>
    %358 = vector.extract_strided_slice %355 {offsets = [0, 0], sizes = [1, 32], strides = [1, 1]} : vector<1x512xf32> to vector<1x32xf32>
    %cst_115 = arith.constant 5.000000e-01 : f32
    %359 = vector.broadcast %cst_115 : f32 to vector<1x32xf32>
    %360 = arith.mulf %359, %358 : vector<1x32xf32>
    %361 = math.tanh %360 : vector<1x32xf32>
    %cst_116 = arith.constant 5.000000e-01 : f32
    %362 = vector.broadcast %cst_116 : f32 to vector<1x32xf32>
    %363 = arith.mulf %362, %361 : vector<1x32xf32>
    %cst_117 = arith.constant 5.000000e-01 : f32
    %364 = vector.broadcast %cst_117 : f32 to vector<1x32xf32>
    %365 = arith.addf %363, %364 : vector<1x32xf32>
    %366 = vector.extract_strided_slice %355 {offsets = [0, 128], sizes = [1, 32], strides = [1, 1]} : vector<1x512xf32> to vector<1x32xf32>
    %cst_118 = arith.constant 5.000000e-01 : f32
    %367 = vector.broadcast %cst_118 : f32 to vector<1x32xf32>
    %368 = arith.mulf %367, %366 : vector<1x32xf32>
    %369 = math.tanh %368 : vector<1x32xf32>
    %cst_119 = arith.constant 5.000000e-01 : f32
    %370 = vector.broadcast %cst_119 : f32 to vector<1x32xf32>
    %371 = arith.mulf %370, %369 : vector<1x32xf32>
    %cst_120 = arith.constant 5.000000e-01 : f32
    %372 = vector.broadcast %cst_120 : f32 to vector<1x32xf32>
    %373 = arith.addf %371, %372 : vector<1x32xf32>
    %374 = vector.extract_strided_slice %355 {offsets = [0, 256], sizes = [1, 32], strides = [1, 1]} : vector<1x512xf32> to vector<1x32xf32>
    %375 = math.tanh %374 : vector<1x32xf32>
    %376 = vector.extract_strided_slice %355 {offsets = [0, 384], sizes = [1, 32], strides = [1, 1]} : vector<1x512xf32> to vector<1x32xf32>
    %cst_121 = arith.constant 5.000000e-01 : f32
    %377 = vector.broadcast %cst_121 : f32 to vector<1x32xf32>
    %378 = arith.mulf %377, %376 : vector<1x32xf32>
    %379 = math.tanh %378 : vector<1x32xf32>
    %cst_122 = arith.constant 5.000000e-01 : f32
    %380 = vector.broadcast %cst_122 : f32 to vector<1x32xf32>
    %381 = arith.mulf %380, %379 : vector<1x32xf32>
    %cst_123 = arith.constant 5.000000e-01 : f32
    %382 = vector.broadcast %cst_123 : f32 to vector<1x32xf32>
    %383 = arith.addf %381, %382 : vector<1x32xf32>
    %384 = vector.extract_strided_slice %357 {offsets = [0, 0], sizes = [1, 32], strides = [1, 1]} : vector<1x512xf32> to vector<1x32xf32>
    %cst_124 = arith.constant 5.000000e-01 : f32
    %385 = vector.broadcast %cst_124 : f32 to vector<1x32xf32>
    %386 = arith.mulf %385, %384 : vector<1x32xf32>
    %387 = math.tanh %386 : vector<1x32xf32>
    %cst_125 = arith.constant 5.000000e-01 : f32
    %388 = vector.broadcast %cst_125 : f32 to vector<1x32xf32>
    %389 = arith.mulf %388, %387 : vector<1x32xf32>
    %cst_126 = arith.constant 5.000000e-01 : f32
    %390 = vector.broadcast %cst_126 : f32 to vector<1x32xf32>
    %391 = arith.addf %389, %390 : vector<1x32xf32>
    %392 = vector.extract_strided_slice %357 {offsets = [0, 128], sizes = [1, 32], strides = [1, 1]} : vector<1x512xf32> to vector<1x32xf32>
    %cst_127 = arith.constant 5.000000e-01 : f32
    %393 = vector.broadcast %cst_127 : f32 to vector<1x32xf32>
    %394 = arith.mulf %393, %392 : vector<1x32xf32>
    %395 = math.tanh %394 : vector<1x32xf32>
    %cst_128 = arith.constant 5.000000e-01 : f32
    %396 = vector.broadcast %cst_128 : f32 to vector<1x32xf32>
    %397 = arith.mulf %396, %395 : vector<1x32xf32>
    %cst_129 = arith.constant 5.000000e-01 : f32
    %398 = vector.broadcast %cst_129 : f32 to vector<1x32xf32>
    %399 = arith.addf %397, %398 : vector<1x32xf32>
    %400 = vector.extract_strided_slice %357 {offsets = [0, 256], sizes = [1, 32], strides = [1, 1]} : vector<1x512xf32> to vector<1x32xf32>
    %401 = math.tanh %400 : vector<1x32xf32>
    %402 = vector.extract_strided_slice %357 {offsets = [0, 384], sizes = [1, 32], strides = [1, 1]} : vector<1x512xf32> to vector<1x32xf32>
    %cst_130 = arith.constant 5.000000e-01 : f32
    %403 = vector.broadcast %cst_130 : f32 to vector<1x32xf32>
    %404 = arith.mulf %403, %402 : vector<1x32xf32>
    %405 = math.tanh %404 : vector<1x32xf32>
    %cst_131 = arith.constant 5.000000e-01 : f32
    %406 = vector.broadcast %cst_131 : f32 to vector<1x32xf32>
    %407 = arith.mulf %406, %405 : vector<1x32xf32>
    %cst_132 = arith.constant 5.000000e-01 : f32
    %408 = vector.broadcast %cst_132 : f32 to vector<1x32xf32>
    %409 = arith.addf %407, %408 : vector<1x32xf32>
    %410 = arith.mulf %373, %344 : vector<1x32xf32>
    %411 = arith.mulf %365, %375 : vector<1x32xf32>
    %412 = arith.addf %410, %411 : vector<1x32xf32>
    %413 = math.tanh %412 : vector<1x32xf32>
    %414 = arith.mulf %383, %413 : vector<1x32xf32>
    %415 = arith.mulf %399, %349 : vector<1x32xf32>
    %416 = arith.mulf %391, %401 : vector<1x32xf32>
    %417 = arith.addf %415, %416 : vector<1x32xf32>
    %418 = math.tanh %417 : vector<1x32xf32>
    %419 = arith.mulf %409, %418 : vector<1x32xf32>
    %cst_133 = arith.constant dense<0.000000e+00> : vector<1x512xf32>
    %420 = tpu.matmul %414, %6, %cst_133 {dimension_numbers = #tpu.dot_dimension_numbers<[1], [0], [0], [1], [0, 0, 1, 1], [], []>} : vector<1x32xf32>, vector<32x512xf32>, vector<1x512xf32> -> vector<1x512xf32>
    %cst_134 = arith.constant dense<0.000000e+00> : vector<1x512xf32>
    %421 = tpu.matmul %419, %7, %cst_134 {dimension_numbers = #tpu.dot_dimension_numbers<[1], [0], [0], [1], [0, 0, 1, 1], [], []>} : vector<1x32xf32>, vector<32x512xf32>, vector<1x512xf32> -> vector<1x512xf32>
    %422 = vector.extract_strided_slice %5 {offsets = [6, 0], sizes = [1, 512], strides = [1, 1]} : vector<8x1024xf32> to vector<1x512xf32>
    %423 = arith.addf %422, %420 : vector<1x512xf32>
    %424 = vector.extract_strided_slice %5 {offsets = [1, 512], sizes = [1, 512], strides = [1, 1]} : vector<8x1024xf32> to vector<1x512xf32>
    %425 = arith.addf %424, %421 : vector<1x512xf32>
    %426 = vector.extract_strided_slice %423 {offsets = [0, 0], sizes = [1, 32], strides = [1, 1]} : vector<1x512xf32> to vector<1x32xf32>
    %cst_135 = arith.constant 5.000000e-01 : f32
    %427 = vector.broadcast %cst_135 : f32 to vector<1x32xf32>
    %428 = arith.mulf %427, %426 : vector<1x32xf32>
    %429 = math.tanh %428 : vector<1x32xf32>
    %cst_136 = arith.constant 5.000000e-01 : f32
    %430 = vector.broadcast %cst_136 : f32 to vector<1x32xf32>
    %431 = arith.mulf %430, %429 : vector<1x32xf32>
    %cst_137 = arith.constant 5.000000e-01 : f32
    %432 = vector.broadcast %cst_137 : f32 to vector<1x32xf32>
    %433 = arith.addf %431, %432 : vector<1x32xf32>
    %434 = vector.extract_strided_slice %423 {offsets = [0, 128], sizes = [1, 32], strides = [1, 1]} : vector<1x512xf32> to vector<1x32xf32>
    %cst_138 = arith.constant 5.000000e-01 : f32
    %435 = vector.broadcast %cst_138 : f32 to vector<1x32xf32>
    %436 = arith.mulf %435, %434 : vector<1x32xf32>
    %437 = math.tanh %436 : vector<1x32xf32>
    %cst_139 = arith.constant 5.000000e-01 : f32
    %438 = vector.broadcast %cst_139 : f32 to vector<1x32xf32>
    %439 = arith.mulf %438, %437 : vector<1x32xf32>
    %cst_140 = arith.constant 5.000000e-01 : f32
    %440 = vector.broadcast %cst_140 : f32 to vector<1x32xf32>
    %441 = arith.addf %439, %440 : vector<1x32xf32>
    %442 = vector.extract_strided_slice %423 {offsets = [0, 256], sizes = [1, 32], strides = [1, 1]} : vector<1x512xf32> to vector<1x32xf32>
    %443 = math.tanh %442 : vector<1x32xf32>
    %444 = vector.extract_strided_slice %423 {offsets = [0, 384], sizes = [1, 32], strides = [1, 1]} : vector<1x512xf32> to vector<1x32xf32>
    %cst_141 = arith.constant 5.000000e-01 : f32
    %445 = vector.broadcast %cst_141 : f32 to vector<1x32xf32>
    %446 = arith.mulf %445, %444 : vector<1x32xf32>
    %447 = math.tanh %446 : vector<1x32xf32>
    %cst_142 = arith.constant 5.000000e-01 : f32
    %448 = vector.broadcast %cst_142 : f32 to vector<1x32xf32>
    %449 = arith.mulf %448, %447 : vector<1x32xf32>
    %cst_143 = arith.constant 5.000000e-01 : f32
    %450 = vector.broadcast %cst_143 : f32 to vector<1x32xf32>
    %451 = arith.addf %449, %450 : vector<1x32xf32>
    %452 = vector.extract_strided_slice %425 {offsets = [0, 0], sizes = [1, 32], strides = [1, 1]} : vector<1x512xf32> to vector<1x32xf32>
    %cst_144 = arith.constant 5.000000e-01 : f32
    %453 = vector.broadcast %cst_144 : f32 to vector<1x32xf32>
    %454 = arith.mulf %453, %452 : vector<1x32xf32>
    %455 = math.tanh %454 : vector<1x32xf32>
    %cst_145 = arith.constant 5.000000e-01 : f32
    %456 = vector.broadcast %cst_145 : f32 to vector<1x32xf32>
    %457 = arith.mulf %456, %455 : vector<1x32xf32>
    %cst_146 = arith.constant 5.000000e-01 : f32
    %458 = vector.broadcast %cst_146 : f32 to vector<1x32xf32>
    %459 = arith.addf %457, %458 : vector<1x32xf32>
    %460 = vector.extract_strided_slice %425 {offsets = [0, 128], sizes = [1, 32], strides = [1, 1]} : vector<1x512xf32> to vector<1x32xf32>
    %cst_147 = arith.constant 5.000000e-01 : f32
    %461 = vector.broadcast %cst_147 : f32 to vector<1x32xf32>
    %462 = arith.mulf %461, %460 : vector<1x32xf32>
    %463 = math.tanh %462 : vector<1x32xf32>
    %cst_148 = arith.constant 5.000000e-01 : f32
    %464 = vector.broadcast %cst_148 : f32 to vector<1x32xf32>
    %465 = arith.mulf %464, %463 : vector<1x32xf32>
    %cst_149 = arith.constant 5.000000e-01 : f32
    %466 = vector.broadcast %cst_149 : f32 to vector<1x32xf32>
    %467 = arith.addf %465, %466 : vector<1x32xf32>
    %468 = vector.extract_strided_slice %425 {offsets = [0, 256], sizes = [1, 32], strides = [1, 1]} : vector<1x512xf32> to vector<1x32xf32>
    %469 = math.tanh %468 : vector<1x32xf32>
    %470 = vector.extract_strided_slice %425 {offsets = [0, 384], sizes = [1, 32], strides = [1, 1]} : vector<1x512xf32> to vector<1x32xf32>
    %cst_150 = arith.constant 5.000000e-01 : f32
    %471 = vector.broadcast %cst_150 : f32 to vector<1x32xf32>
    %472 = arith.mulf %471, %470 : vector<1x32xf32>
    %473 = math.tanh %472 : vector<1x32xf32>
    %cst_151 = arith.constant 5.000000e-01 : f32
    %474 = vector.broadcast %cst_151 : f32 to vector<1x32xf32>
    %475 = arith.mulf %474, %473 : vector<1x32xf32>
    %cst_152 = arith.constant 5.000000e-01 : f32
    %476 = vector.broadcast %cst_152 : f32 to vector<1x32xf32>
    %477 = arith.addf %475, %476 : vector<1x32xf32>
    %478 = arith.mulf %441, %412 : vector<1x32xf32>
    %479 = arith.mulf %433, %443 : vector<1x32xf32>
    %480 = arith.addf %478, %479 : vector<1x32xf32>
    %481 = math.tanh %480 : vector<1x32xf32>
    %482 = arith.mulf %451, %481 : vector<1x32xf32>
    %483 = arith.mulf %467, %417 : vector<1x32xf32>
    %484 = arith.mulf %459, %469 : vector<1x32xf32>
    %485 = arith.addf %483, %484 : vector<1x32xf32>
    %486 = math.tanh %485 : vector<1x32xf32>
    %487 = arith.mulf %477, %486 : vector<1x32xf32>
    %cst_153 = arith.constant dense<0.000000e+00> : vector<1x512xf32>
    %488 = tpu.matmul %482, %6, %cst_153 {dimension_numbers = #tpu.dot_dimension_numbers<[1], [0], [0], [1], [0, 0, 1, 1], [], []>} : vector<1x32xf32>, vector<32x512xf32>, vector<1x512xf32> -> vector<1x512xf32>
    %cst_154 = arith.constant dense<0.000000e+00> : vector<1x512xf32>
    %489 = tpu.matmul %487, %7, %cst_154 {dimension_numbers = #tpu.dot_dimension_numbers<[1], [0], [0], [1], [0, 0, 1, 1], [], []>} : vector<1x32xf32>, vector<32x512xf32>, vector<1x512xf32> -> vector<1x512xf32>
    %490 = vector.extract_strided_slice %5 {offsets = [7, 0], sizes = [1, 512], strides = [1, 1]} : vector<8x1024xf32> to vector<1x512xf32>
    %491 = arith.addf %490, %488 : vector<1x512xf32>
    %492 = vector.extract_strided_slice %5 {offsets = [0, 512], sizes = [1, 512], strides = [1, 1]} : vector<8x1024xf32> to vector<1x512xf32>
    %493 = arith.addf %492, %489 : vector<1x512xf32>
    %494 = vector.extract_strided_slice %491 {offsets = [0, 0], sizes = [1, 32], strides = [1, 1]} : vector<1x512xf32> to vector<1x32xf32>
    %cst_155 = arith.constant 5.000000e-01 : f32
    %495 = vector.broadcast %cst_155 : f32 to vector<1x32xf32>
    %496 = arith.mulf %495, %494 : vector<1x32xf32>
    %497 = math.tanh %496 : vector<1x32xf32>
    %cst_156 = arith.constant 5.000000e-01 : f32
    %498 = vector.broadcast %cst_156 : f32 to vector<1x32xf32>
    %499 = arith.mulf %498, %497 : vector<1x32xf32>
    %cst_157 = arith.constant 5.000000e-01 : f32
    %500 = vector.broadcast %cst_157 : f32 to vector<1x32xf32>
    %501 = arith.addf %499, %500 : vector<1x32xf32>
    %502 = vector.extract_strided_slice %491 {offsets = [0, 128], sizes = [1, 32], strides = [1, 1]} : vector<1x512xf32> to vector<1x32xf32>
    %cst_158 = arith.constant 5.000000e-01 : f32
    %503 = vector.broadcast %cst_158 : f32 to vector<1x32xf32>
    %504 = arith.mulf %503, %502 : vector<1x32xf32>
    %505 = math.tanh %504 : vector<1x32xf32>
    %cst_159 = arith.constant 5.000000e-01 : f32
    %506 = vector.broadcast %cst_159 : f32 to vector<1x32xf32>
    %507 = arith.mulf %506, %505 : vector<1x32xf32>
    %cst_160 = arith.constant 5.000000e-01 : f32
    %508 = vector.broadcast %cst_160 : f32 to vector<1x32xf32>
    %509 = arith.addf %507, %508 : vector<1x32xf32>
    %510 = vector.extract_strided_slice %491 {offsets = [0, 256], sizes = [1, 32], strides = [1, 1]} : vector<1x512xf32> to vector<1x32xf32>
    %511 = math.tanh %510 : vector<1x32xf32>
    %512 = vector.extract_strided_slice %491 {offsets = [0, 384], sizes = [1, 32], strides = [1, 1]} : vector<1x512xf32> to vector<1x32xf32>
    %cst_161 = arith.constant 5.000000e-01 : f32
    %513 = vector.broadcast %cst_161 : f32 to vector<1x32xf32>
    %514 = arith.mulf %513, %512 : vector<1x32xf32>
    %515 = math.tanh %514 : vector<1x32xf32>
    %cst_162 = arith.constant 5.000000e-01 : f32
    %516 = vector.broadcast %cst_162 : f32 to vector<1x32xf32>
    %517 = arith.mulf %516, %515 : vector<1x32xf32>
    %cst_163 = arith.constant 5.000000e-01 : f32
    %518 = vector.broadcast %cst_163 : f32 to vector<1x32xf32>
    %519 = arith.addf %517, %518 : vector<1x32xf32>
    %520 = vector.extract_strided_slice %493 {offsets = [0, 0], sizes = [1, 32], strides = [1, 1]} : vector<1x512xf32> to vector<1x32xf32>
    %cst_164 = arith.constant 5.000000e-01 : f32
    %521 = vector.broadcast %cst_164 : f32 to vector<1x32xf32>
    %522 = arith.mulf %521, %520 : vector<1x32xf32>
    %523 = math.tanh %522 : vector<1x32xf32>
    %cst_165 = arith.constant 5.000000e-01 : f32
    %524 = vector.broadcast %cst_165 : f32 to vector<1x32xf32>
    %525 = arith.mulf %524, %523 : vector<1x32xf32>
    %cst_166 = arith.constant 5.000000e-01 : f32
    %526 = vector.broadcast %cst_166 : f32 to vector<1x32xf32>
    %527 = arith.addf %525, %526 : vector<1x32xf32>
    %528 = vector.extract_strided_slice %493 {offsets = [0, 128], sizes = [1, 32], strides = [1, 1]} : vector<1x512xf32> to vector<1x32xf32>
    %cst_167 = arith.constant 5.000000e-01 : f32
    %529 = vector.broadcast %cst_167 : f32 to vector<1x32xf32>
    %530 = arith.mulf %529, %528 : vector<1x32xf32>
    %531 = math.tanh %530 : vector<1x32xf32>
    %cst_168 = arith.constant 5.000000e-01 : f32
    %532 = vector.broadcast %cst_168 : f32 to vector<1x32xf32>
    %533 = arith.mulf %532, %531 : vector<1x32xf32>
    %cst_169 = arith.constant 5.000000e-01 : f32
    %534 = vector.broadcast %cst_169 : f32 to vector<1x32xf32>
    %535 = arith.addf %533, %534 : vector<1x32xf32>
    %536 = vector.extract_strided_slice %493 {offsets = [0, 256], sizes = [1, 32], strides = [1, 1]} : vector<1x512xf32> to vector<1x32xf32>
    %537 = math.tanh %536 : vector<1x32xf32>
    %538 = vector.extract_strided_slice %493 {offsets = [0, 384], sizes = [1, 32], strides = [1, 1]} : vector<1x512xf32> to vector<1x32xf32>
    %cst_170 = arith.constant 5.000000e-01 : f32
    %539 = vector.broadcast %cst_170 : f32 to vector<1x32xf32>
    %540 = arith.mulf %539, %538 : vector<1x32xf32>
    %541 = math.tanh %540 : vector<1x32xf32>
    %cst_171 = arith.constant 5.000000e-01 : f32
    %542 = vector.broadcast %cst_171 : f32 to vector<1x32xf32>
    %543 = arith.mulf %542, %541 : vector<1x32xf32>
    %cst_172 = arith.constant 5.000000e-01 : f32
    %544 = vector.broadcast %cst_172 : f32 to vector<1x32xf32>
    %545 = arith.addf %543, %544 : vector<1x32xf32>
    %546 = arith.mulf %509, %480 : vector<1x32xf32>
    %547 = arith.mulf %501, %511 : vector<1x32xf32>
    %548 = arith.addf %546, %547 : vector<1x32xf32>
    %549 = math.tanh %548 : vector<1x32xf32>
    %550 = arith.mulf %519, %549 : vector<1x32xf32>
    %551 = arith.mulf %535, %485 : vector<1x32xf32>
    %552 = arith.mulf %527, %537 : vector<1x32xf32>
    %553 = arith.addf %551, %552 : vector<1x32xf32>
    %554 = math.tanh %553 : vector<1x32xf32>
    %555 = arith.mulf %545, %554 : vector<1x32xf32>
    %c0_173 = arith.constant 0 : index
    %c0_174 = arith.constant 0 : index
    %c0_175 = arith.constant 0 : index
    %556 = vector.load %arg10[%c0_173, %c0_174, %c0_175] : memref<4x1x32xf32, #tpu.memory_space<vmem>>, vector<1x1x32xf32>
    %557 = vector.shape_cast %556 : vector<1x1x32xf32> to vector<1x32xf32>
    %558 = vector.shape_cast %550 : vector<1x32xf32> to vector<1x1x32xf32>
    tpu.vector_store %arg10[%c0_173, %c0_174, %c0_175], %558 {strides = array<i32>} : memref<4x1x32xf32, #tpu.memory_space<vmem>>, vector<1x1x32xf32>,
    %c1 = arith.constant 1 : index
    %c0_176 = arith.constant 0 : index
    %c0_177 = arith.constant 0 : index
    %559 = vector.load %arg10[%c1, %c0_176, %c0_177] : memref<4x1x32xf32, #tpu.memory_space<vmem>>, vector<1x1x32xf32>
    %560 = vector.shape_cast %559 : vector<1x1x32xf32> to vector<1x32xf32>
    %561 = vector.shape_cast %555 : vector<1x32xf32> to vector<1x1x32xf32>
    tpu.vector_store %arg10[%c1, %c0_176, %c0_177], %561 {strides = array<i32>} : memref<4x1x32xf32, #tpu.memory_space<vmem>>, vector<1x1x32xf32>,
    %c0_178 = arith.constant 0 : index
    %c0_179 = arith.constant 0 : index
    %c0_180 = arith.constant 0 : index
    %562 = vector.load %arg11[%c0_178, %c0_179, %c0_180] : memref<4x1x32xf32, #tpu.memory_space<vmem>>, vector<1x1x32xf32>
    %563 = vector.shape_cast %562 : vector<1x1x32xf32> to vector<1x32xf32>
    %564 = vector.shape_cast %548 : vector<1x32xf32> to vector<1x1x32xf32>
    tpu.vector_store %arg11[%c0_178, %c0_179, %c0_180], %564 {strides = array<i32>} : memref<4x1x32xf32, #tpu.memory_space<vmem>>, vector<1x1x32xf32>,
    %c1_181 = arith.constant 1 : index
    %c0_182 = arith.constant 0 : index
    %c0_183 = arith.constant 0 : index
    %565 = vector.load %arg11[%c1_181, %c0_182, %c0_183] : memref<4x1x32xf32, #tpu.memory_space<vmem>>, vector<1x1x32xf32>
    %566 = vector.shape_cast %565 : vector<1x1x32xf32> to vector<1x32xf32>
    %567 = vector.shape_cast %553 : vector<1x32xf32> to vector<1x1x32xf32>
    tpu.vector_store %arg11[%c1_181, %c0_182, %c0_183], %567 {strides = array<i32>} : memref<4x1x32xf32, #tpu.memory_space<vmem>>, vector<1x1x32xf32>,
    %568 = tpu.concatenate %74, %142, %210, %278, %346, %414, %482, %550 in 0 : vector<1x32xf32>, vector<1x32xf32>, vector<1x32xf32>, vector<1x32xf32>, vector<1x32xf32>, vector<1x32xf32>, vector<1x32xf32>, vector<1x32xf32> -> vector<8x32xf32>
    %569 = tpu.concatenate %555, %487, %419, %351, %283, %215, %147, %79 in 0 : vector<1x32xf32>, vector<1x32xf32>, vector<1x32xf32>, vector<1x32xf32>, vector<1x32xf32>, vector<1x32xf32>, vector<1x32xf32>, vector<1x32xf32> -> vector<8x32xf32>
    %570 = tpu.concatenate %568, %569 in 1 : vector<8x32xf32>, vector<8x32xf32> -> vector<8x64xf32>
    %c0_184 = arith.constant 0 : index
    %c0_185 = arith.constant 0 : index
    %571 = vector.load %arg5[%c0_184, %c0_185] : memref<64x1024xf32, #tpu.memory_space<vmem>>, vector<64x1024xf32>
    %cst_186 = arith.constant dense<0.000000e+00> : vector<8x1024xf32>
    %572 = tpu.matmul %570, %571, %cst_186 {dimension_numbers = #tpu.dot_dimension_numbers<[1], [0], [0], [1], [0, 0, 1, 1], [], []>} : vector<8x64xf32>, vector<64x1024xf32>, vector<8x1024xf32> -> vector<8x1024xf32>
    %c0_187 = arith.constant 0 : index
    %c0_188 = arith.constant 0 : index
    %573 = vector.load %arg6[%c0_187, %c0_188] : memref<1x1024xf32, #tpu.memory_space<vmem>>, vector<1x1024xf32>
    %574 = vector.broadcast %573 : vector<1x1024xf32> to vector<8x1024xf32>
    %575 = arith.addf %572, %574 : vector<8x1024xf32>
    %c0_189 = arith.constant 0 : index
    %c0_190 = arith.constant 0 : index
    %576 = vector.load %arg7[%c0_189, %c0_190] : memref<32x512xf32, #tpu.memory_space<vmem>>, vector<32x512xf32>
    %c0_191 = arith.constant 0 : index
    %c0_192 = arith.constant 0 : index
    %577 = vector.load %arg8[%c0_191, %c0_192] : memref<32x512xf32, #tpu.memory_space<vmem>>, vector<32x512xf32>
    %cst_193 = arith.constant 0.000000e+00 : f32
    %578 = vector.broadcast %cst_193 : f32 to vector<1x32xf32>
    %cst_194 = arith.constant 0.000000e+00 : f32
    %579 = vector.broadcast %cst_194 : f32 to vector<1x32xf32>
    %cst_195 = arith.constant 0.000000e+00 : f32
    %580 = vector.broadcast %cst_195 : f32 to vector<1x32xf32>
    %cst_196 = arith.constant 0.000000e+00 : f32
    %581 = vector.broadcast %cst_196 : f32 to vector<1x32xf32>
    %cst_197 = arith.constant dense<0.000000e+00> : vector<1x512xf32>
    %582 = tpu.matmul %578, %576, %cst_197 {dimension_numbers = #tpu.dot_dimension_numbers<[1], [0], [0], [1], [0, 0, 1, 1], [], []>} : vector<1x32xf32>, vector<32x512xf32>, vector<1x512xf32> -> vector<1x512xf32>
    %cst_198 = arith.constant dense<0.000000e+00> : vector<1x512xf32>
    %583 = tpu.matmul %580, %577, %cst_198 {dimension_numbers = #tpu.dot_dimension_numbers<[1], [0], [0], [1], [0, 0, 1, 1], [], []>} : vector<1x32xf32>, vector<32x512xf32>, vector<1x512xf32> -> vector<1x512xf32>
    %584 = vector.extract_strided_slice %575 {offsets = [0, 0], sizes = [1, 512], strides = [1, 1]} : vector<8x1024xf32> to vector<1x512xf32>
    %585 = arith.addf %584, %582 : vector<1x512xf32>
    %586 = vector.extract_strided_slice %575 {offsets = [7, 512], sizes = [1, 512], strides = [1, 1]} : vector<8x1024xf32> to vector<1x512xf32>
    %587 = arith.addf %586, %583 : vector<1x512xf32>
    %588 = vector.extract_strided_slice %585 {offsets = [0, 0], sizes = [1, 32], strides = [1, 1]} : vector<1x512xf32> to vector<1x32xf32>
    %cst_199 = arith.constant 5.000000e-01 : f32
    %589 = vector.broadcast %cst_199 : f32 to vector<1x32xf32>
    %590 = arith.mulf %589, %588 : vector<1x32xf32>
    %591 = math.tanh %590 : vector<1x32xf32>
    %cst_200 = arith.constant 5.000000e-01 : f32
    %592 = vector.broadcast %cst_200 : f32 to vector<1x32xf32>
    %593 = arith.mulf %592, %591 : vector<1x32xf32>
    %cst_201 = arith.constant 5.000000e-01 : f32
    %594 = vector.broadcast %cst_201 : f32 to vector<1x32xf32>
    %595 = arith.addf %593, %594 : vector<1x32xf32>
    %596 = vector.extract_strided_slice %585 {offsets = [0, 128], sizes = [1, 32], strides = [1, 1]} : vector<1x512xf32> to vector<1x32xf32>
    %cst_202 = arith.constant 5.000000e-01 : f32
    %597 = vector.broadcast %cst_202 : f32 to vector<1x32xf32>
    %598 = arith.mulf %597, %596 : vector<1x32xf32>
    %599 = math.tanh %598 : vector<1x32xf32>
    %cst_203 = arith.constant 5.000000e-01 : f32
    %600 = vector.broadcast %cst_203 : f32 to vector<1x32xf32>
    %601 = arith.mulf %600, %599 : vector<1x32xf32>
    %cst_204 = arith.constant 5.000000e-01 : f32
    %602 = vector.broadcast %cst_204 : f32 to vector<1x32xf32>
    %603 = arith.addf %601, %602 : vector<1x32xf32>
    %604 = vector.extract_strided_slice %585 {offsets = [0, 256], sizes = [1, 32], strides = [1, 1]} : vector<1x512xf32> to vector<1x32xf32>
    %605 = math.tanh %604 : vector<1x32xf32>
    %606 = vector.extract_strided_slice %585 {offsets = [0, 384], sizes = [1, 32], strides = [1, 1]} : vector<1x512xf32> to vector<1x32xf32>
    %cst_205 = arith.constant 5.000000e-01 : f32
    %607 = vector.broadcast %cst_205 : f32 to vector<1x32xf32>
    %608 = arith.mulf %607, %606 : vector<1x32xf32>
    %609 = math.tanh %608 : vector<1x32xf32>
    %cst_206 = arith.constant 5.000000e-01 : f32
    %610 = vector.broadcast %cst_206 : f32 to vector<1x32xf32>
    %611 = arith.mulf %610, %609 : vector<1x32xf32>
    %cst_207 = arith.constant 5.000000e-01 : f32
    %612 = vector.broadcast %cst_207 : f32 to vector<1x32xf32>
    %613 = arith.addf %611, %612 : vector<1x32xf32>
    %614 = vector.extract_strided_slice %587 {offsets = [0, 0], sizes = [1, 32], strides = [1, 1]} : vector<1x512xf32> to vector<1x32xf32>
    %cst_208 = arith.constant 5.000000e-01 : f32
    %615 = vector.broadcast %cst_208 : f32 to vector<1x32xf32>
    %616 = arith.mulf %615, %614 : vector<1x32xf32>
    %617 = math.tanh %616 : vector<1x32xf32>
    %cst_209 = arith.constant 5.000000e-01 : f32
    %618 = vector.broadcast %cst_209 : f32 to vector<1x32xf32>
    %619 = arith.mulf %618, %617 : vector<1x32xf32>
    %cst_210 = arith.constant 5.000000e-01 : f32
    %620 = vector.broadcast %cst_210 : f32 to vector<1x32xf32>
    %621 = arith.addf %619, %620 : vector<1x32xf32>
    %622 = vector.extract_strided_slice %587 {offsets = [0, 128], sizes = [1, 32], strides = [1, 1]} : vector<1x512xf32> to vector<1x32xf32>
    %cst_211 = arith.constant 5.000000e-01 : f32
    %623 = vector.broadcast %cst_211 : f32 to vector<1x32xf32>
    %624 = arith.mulf %623, %622 : vector<1x32xf32>
    %625 = math.tanh %624 : vector<1x32xf32>
    %cst_212 = arith.constant 5.000000e-01 : f32
    %626 = vector.broadcast %cst_212 : f32 to vector<1x32xf32>
    %627 = arith.mulf %626, %625 : vector<1x32xf32>
    %cst_213 = arith.constant 5.000000e-01 : f32
    %628 = vector.broadcast %cst_213 : f32 to vector<1x32xf32>
    %629 = arith.addf %627, %628 : vector<1x32xf32>
    %630 = vector.extract_strided_slice %587 {offsets = [0, 256], sizes = [1, 32], strides = [1, 1]} : vector<1x512xf32> to vector<1x32xf32>
    %631 = math.tanh %630 : vector<1x32xf32>
    %632 = vector.extract_strided_slice %587 {offsets = [0, 384], sizes = [1, 32], strides = [1, 1]} : vector<1x512xf32> to vector<1x32xf32>
    %cst_214 = arith.constant 5.000000e-01 : f32
    %633 = vector.broadcast %cst_214 : f32 to vector<1x32xf32>
    %634 = arith.mulf %633, %632 : vector<1x32xf32>
    %635 = math.tanh %634 : vector<1x32xf32>
    %cst_215 = arith.constant 5.000000e-01 : f32
    %636 = vector.broadcast %cst_215 : f32 to vector<1x32xf32>
    %637 = arith.mulf %636, %635 : vector<1x32xf32>
    %cst_216 = arith.constant 5.000000e-01 : f32
    %638 = vector.broadcast %cst_216 : f32 to vector<1x32xf32>
    %639 = arith.addf %637, %638 : vector<1x32xf32>
    %640 = arith.mulf %603, %579 : vector<1x32xf32>
    %641 = arith.mulf %595, %605 : vector<1x32xf32>
    %642 = arith.addf %640, %641 : vector<1x32xf32>
    %643 = math.tanh %642 : vector<1x32xf32>
    %644 = arith.mulf %613, %643 : vector<1x32xf32>
    %645 = arith.mulf %629, %581 : vector<1x32xf32>
    %646 = arith.mulf %621, %631 : vector<1x32xf32>
    %647 = arith.addf %645, %646 : vector<1x32xf32>
    %648 = math.tanh %647 : vector<1x32xf32>
    %649 = arith.mulf %639, %648 : vector<1x32xf32>
    %cst_217 = arith.constant dense<0.000000e+00> : vector<1x512xf32>
    %650 = tpu.matmul %644, %576, %cst_217 {dimension_numbers = #tpu.dot_dimension_numbers<[1], [0], [0], [1], [0, 0, 1, 1], [], []>} : vector<1x32xf32>, vector<32x512xf32>, vector<1x512xf32> -> vector<1x512xf32>
    %cst_218 = arith.constant dense<0.000000e+00> : vector<1x512xf32>
    %651 = tpu.matmul %649, %577, %cst_218 {dimension_numbers = #tpu.dot_dimension_numbers<[1], [0], [0], [1], [0, 0, 1, 1], [], []>} : vector<1x32xf32>, vector<32x512xf32>, vector<1x512xf32> -> vector<1x512xf32>
    %652 = vector.extract_strided_slice %575 {offsets = [1, 0], sizes = [1, 512], strides = [1, 1]} : vector<8x1024xf32> to vector<1x512xf32>
    %653 = arith.addf %652, %650 : vector<1x512xf32>
    %654 = vector.extract_strided_slice %575 {offsets = [6, 512], sizes = [1, 512], strides = [1, 1]} : vector<8x1024xf32> to vector<1x512xf32>
    %655 = arith.addf %654, %651 : vector<1x512xf32>
    %656 = vector.extract_strided_slice %653 {offsets = [0, 0], sizes = [1, 32], strides = [1, 1]} : vector<1x512xf32> to vector<1x32xf32>
    %cst_219 = arith.constant 5.000000e-01 : f32
    %657 = vector.broadcast %cst_219 : f32 to vector<1x32xf32>
    %658 = arith.mulf %657, %656 : vector<1x32xf32>
    %659 = math.tanh %658 : vector<1x32xf32>
    %cst_220 = arith.constant 5.000000e-01 : f32
    %660 = vector.broadcast %cst_220 : f32 to vector<1x32xf32>
    %661 = arith.mulf %660, %659 : vector<1x32xf32>
    %cst_221 = arith.constant 5.000000e-01 : f32
    %662 = vector.broadcast %cst_221 : f32 to vector<1x32xf32>
    %663 = arith.addf %661, %662 : vector<1x32xf32>
    %664 = vector.extract_strided_slice %653 {offsets = [0, 128], sizes = [1, 32], strides = [1, 1]} : vector<1x512xf32> to vector<1x32xf32>
    %cst_222 = arith.constant 5.000000e-01 : f32
    %665 = vector.broadcast %cst_222 : f32 to vector<1x32xf32>
    %666 = arith.mulf %665, %664 : vector<1x32xf32>
    %667 = math.tanh %666 : vector<1x32xf32>
    %cst_223 = arith.constant 5.000000e-01 : f32
    %668 = vector.broadcast %cst_223 : f32 to vector<1x32xf32>
    %669 = arith.mulf %668, %667 : vector<1x32xf32>
    %cst_224 = arith.constant 5.000000e-01 : f32
    %670 = vector.broadcast %cst_224 : f32 to vector<1x32xf32>
    %671 = arith.addf %669, %670 : vector<1x32xf32>
    %672 = vector.extract_strided_slice %653 {offsets = [0, 256], sizes = [1, 32], strides = [1, 1]} : vector<1x512xf32> to vector<1x32xf32>
    %673 = math.tanh %672 : vector<1x32xf32>
    %674 = vector.extract_strided_slice %653 {offsets = [0, 384], sizes = [1, 32], strides = [1, 1]} : vector<1x512xf32> to vector<1x32xf32>
    %cst_225 = arith.constant 5.000000e-01 : f32
    %675 = vector.broadcast %cst_225 : f32 to vector<1x32xf32>
    %676 = arith.mulf %675, %674 : vector<1x32xf32>
    %677 = math.tanh %676 : vector<1x32xf32>
    %cst_226 = arith.constant 5.000000e-01 : f32
    %678 = vector.broadcast %cst_226 : f32 to vector<1x32xf32>
    %679 = arith.mulf %678, %677 : vector<1x32xf32>
    %cst_227 = arith.constant 5.000000e-01 : f32
    %680 = vector.broadcast %cst_227 : f32 to vector<1x32xf32>
    %681 = arith.addf %679, %680 : vector<1x32xf32>
    %682 = vector.extract_strided_slice %655 {offsets = [0, 0], sizes = [1, 32], strides = [1, 1]} : vector<1x512xf32> to vector<1x32xf32>
    %cst_228 = arith.constant 5.000000e-01 : f32
    %683 = vector.broadcast %cst_228 : f32 to vector<1x32xf32>
    %684 = arith.mulf %683, %682 : vector<1x32xf32>
    %685 = math.tanh %684 : vector<1x32xf32>
    %cst_229 = arith.constant 5.000000e-01 : f32
    %686 = vector.broadcast %cst_229 : f32 to vector<1x32xf32>
    %687 = arith.mulf %686, %685 : vector<1x32xf32>
    %cst_230 = arith.constant 5.000000e-01 : f32
    %688 = vector.broadcast %cst_230 : f32 to vector<1x32xf32>
    %689 = arith.addf %687, %688 : vector<1x32xf32>
    %690 = vector.extract_strided_slice %655 {offsets = [0, 128], sizes = [1, 32], strides = [1, 1]} : vector<1x512xf32> to vector<1x32xf32>
    %cst_231 = arith.constant 5.000000e-01 : f32
    %691 = vector.broadcast %cst_231 : f32 to vector<1x32xf32>
    %692 = arith.mulf %691, %690 : vector<1x32xf32>
    %693 = math.tanh %692 : vector<1x32xf32>
    %cst_232 = arith.constant 5.000000e-01 : f32
    %694 = vector.broadcast %cst_232 : f32 to vector<1x32xf32>
    %695 = arith.mulf %694, %693 : vector<1x32xf32>
    %cst_233 = arith.constant 5.000000e-01 : f32
    %696 = vector.broadcast %cst_233 : f32 to vector<1x32xf32>
    %697 = arith.addf %695, %696 : vector<1x32xf32>
    %698 = vector.extract_strided_slice %655 {offsets = [0, 256], sizes = [1, 32], strides = [1, 1]} : vector<1x512xf32> to vector<1x32xf32>
    %699 = math.tanh %698 : vector<1x32xf32>
    %700 = vector.extract_strided_slice %655 {offsets = [0, 384], sizes = [1, 32], strides = [1, 1]} : vector<1x512xf32> to vector<1x32xf32>
    %cst_234 = arith.constant 5.000000e-01 : f32
    %701 = vector.broadcast %cst_234 : f32 to vector<1x32xf32>
    %702 = arith.mulf %701, %700 : vector<1x32xf32>
    %703 = math.tanh %702 : vector<1x32xf32>
    %cst_235 = arith.constant 5.000000e-01 : f32
    %704 = vector.broadcast %cst_235 : f32 to vector<1x32xf32>
    %705 = arith.mulf %704, %703 : vector<1x32xf32>
    %cst_236 = arith.constant 5.000000e-01 : f32
    %706 = vector.broadcast %cst_236 : f32 to vector<1x32xf32>
    %707 = arith.addf %705, %706 : vector<1x32xf32>
    %708 = arith.mulf %671, %642 : vector<1x32xf32>
    %709 = arith.mulf %663, %673 : vector<1x32xf32>
    %710 = arith.addf %708, %709 : vector<1x32xf32>
    %711 = math.tanh %710 : vector<1x32xf32>
    %712 = arith.mulf %681, %711 : vector<1x32xf32>
    %713 = arith.mulf %697, %647 : vector<1x32xf32>
    %714 = arith.mulf %689, %699 : vector<1x32xf32>
    %715 = arith.addf %713, %714 : vector<1x32xf32>
    %716 = math.tanh %715 : vector<1x32xf32>
    %717 = arith.mulf %707, %716 : vector<1x32xf32>
    %cst_237 = arith.constant dense<0.000000e+00> : vector<1x512xf32>
    %718 = tpu.matmul %712, %576, %cst_237 {dimension_numbers = #tpu.dot_dimension_numbers<[1], [0], [0], [1], [0, 0, 1, 1], [], []>} : vector<1x32xf32>, vector<32x512xf32>, vector<1x512xf32> -> vector<1x512xf32>
    %cst_238 = arith.constant dense<0.000000e+00> : vector<1x512xf32>
    %719 = tpu.matmul %717, %577, %cst_238 {dimension_numbers = #tpu.dot_dimension_numbers<[1], [0], [0], [1], [0, 0, 1, 1], [], []>} : vector<1x32xf32>, vector<32x512xf32>, vector<1x512xf32> -> vector<1x512xf32>
    %720 = vector.extract_strided_slice %575 {offsets = [2, 0], sizes = [1, 512], strides = [1, 1]} : vector<8x1024xf32> to vector<1x512xf32>
    %721 = arith.addf %720, %718 : vector<1x512xf32>
    %722 = vector.extract_strided_slice %575 {offsets = [5, 512], sizes = [1, 512], strides = [1, 1]} : vector<8x1024xf32> to vector<1x512xf32>
    %723 = arith.addf %722, %719 : vector<1x512xf32>
    %724 = vector.extract_strided_slice %721 {offsets = [0, 0], sizes = [1, 32], strides = [1, 1]} : vector<1x512xf32> to vector<1x32xf32>
    %cst_239 = arith.constant 5.000000e-01 : f32
    %725 = vector.broadcast %cst_239 : f32 to vector<1x32xf32>
    %726 = arith.mulf %725, %724 : vector<1x32xf32>
    %727 = math.tanh %726 : vector<1x32xf32>
    %cst_240 = arith.constant 5.000000e-01 : f32
    %728 = vector.broadcast %cst_240 : f32 to vector<1x32xf32>
    %729 = arith.mulf %728, %727 : vector<1x32xf32>
    %cst_241 = arith.constant 5.000000e-01 : f32
    %730 = vector.broadcast %cst_241 : f32 to vector<1x32xf32>
    %731 = arith.addf %729, %730 : vector<1x32xf32>
    %732 = vector.extract_strided_slice %721 {offsets = [0, 128], sizes = [1, 32], strides = [1, 1]} : vector<1x512xf32> to vector<1x32xf32>
    %cst_242 = arith.constant 5.000000e-01 : f32
    %733 = vector.broadcast %cst_242 : f32 to vector<1x32xf32>
    %734 = arith.mulf %733, %732 : vector<1x32xf32>
    %735 = math.tanh %734 : vector<1x32xf32>
    %cst_243 = arith.constant 5.000000e-01 : f32
    %736 = vector.broadcast %cst_243 : f32 to vector<1x32xf32>
    %737 = arith.mulf %736, %735 : vector<1x32xf32>
    %cst_244 = arith.constant 5.000000e-01 : f32
    %738 = vector.broadcast %cst_244 : f32 to vector<1x32xf32>
    %739 = arith.addf %737, %738 : vector<1x32xf32>
    %740 = vector.extract_strided_slice %721 {offsets = [0, 256], sizes = [1, 32], strides = [1, 1]} : vector<1x512xf32> to vector<1x32xf32>
    %741 = math.tanh %740 : vector<1x32xf32>
    %742 = vector.extract_strided_slice %721 {offsets = [0, 384], sizes = [1, 32], strides = [1, 1]} : vector<1x512xf32> to vector<1x32xf32>
    %cst_245 = arith.constant 5.000000e-01 : f32
    %743 = vector.broadcast %cst_245 : f32 to vector<1x32xf32>
    %744 = arith.mulf %743, %742 : vector<1x32xf32>
    %745 = math.tanh %744 : vector<1x32xf32>
    %cst_246 = arith.constant 5.000000e-01 : f32
    %746 = vector.broadcast %cst_246 : f32 to vector<1x32xf32>
    %747 = arith.mulf %746, %745 : vector<1x32xf32>
    %cst_247 = arith.constant 5.000000e-01 : f32
    %748 = vector.broadcast %cst_247 : f32 to vector<1x32xf32>
    %749 = arith.addf %747, %748 : vector<1x32xf32>
    %750 = vector.extract_strided_slice %723 {offsets = [0, 0], sizes = [1, 32], strides = [1, 1]} : vector<1x512xf32> to vector<1x32xf32>
    %cst_248 = arith.constant 5.000000e-01 : f32
    %751 = vector.broadcast %cst_248 : f32 to vector<1x32xf32>
    %752 = arith.mulf %751, %750 : vector<1x32xf32>
    %753 = math.tanh %752 : vector<1x32xf32>
    %cst_249 = arith.constant 5.000000e-01 : f32
    %754 = vector.broadcast %cst_249 : f32 to vector<1x32xf32>
    %755 = arith.mulf %754, %753 : vector<1x32xf32>
    %cst_250 = arith.constant 5.000000e-01 : f32
    %756 = vector.broadcast %cst_250 : f32 to vector<1x32xf32>
    %757 = arith.addf %755, %756 : vector<1x32xf32>
    %758 = vector.extract_strided_slice %723 {offsets = [0, 128], sizes = [1, 32], strides = [1, 1]} : vector<1x512xf32> to vector<1x32xf32>
    %cst_251 = arith.constant 5.000000e-01 : f32
    %759 = vector.broadcast %cst_251 : f32 to vector<1x32xf32>
    %760 = arith.mulf %759, %758 : vector<1x32xf32>
    %761 = math.tanh %760 : vector<1x32xf32>
    %cst_252 = arith.constant 5.000000e-01 : f32
    %762 = vector.broadcast %cst_252 : f32 to vector<1x32xf32>
    %763 = arith.mulf %762, %761 : vector<1x32xf32>
    %cst_253 = arith.constant 5.000000e-01 : f32
    %764 = vector.broadcast %cst_253 : f32 to vector<1x32xf32>
    %765 = arith.addf %763, %764 : vector<1x32xf32>
    %766 = vector.extract_strided_slice %723 {offsets = [0, 256], sizes = [1, 32], strides = [1, 1]} : vector<1x512xf32> to vector<1x32xf32>
    %767 = math.tanh %766 : vector<1x32xf32>
    %768 = vector.extract_strided_slice %723 {offsets = [0, 384], sizes = [1, 32], strides = [1, 1]} : vector<1x512xf32> to vector<1x32xf32>
    %cst_254 = arith.constant 5.000000e-01 : f32
    %769 = vector.broadcast %cst_254 : f32 to vector<1x32xf32>
    %770 = arith.mulf %769, %768 : vector<1x32xf32>
    %771 = math.tanh %770 : vector<1x32xf32>
    %cst_255 = arith.constant 5.000000e-01 : f32
    %772 = vector.broadcast %cst_255 : f32 to vector<1x32xf32>
    %773 = arith.mulf %772, %771 : vector<1x32xf32>
    %cst_256 = arith.constant 5.000000e-01 : f32
    %774 = vector.broadcast %cst_256 : f32 to vector<1x32xf32>
    %775 = arith.addf %773, %774 : vector<1x32xf32>
    %776 = arith.mulf %739, %710 : vector<1x32xf32>
    %777 = arith.mulf %731, %741 : vector<1x32xf32>
    %778 = arith.addf %776, %777 : vector<1x32xf32>
    %779 = math.tanh %778 : vector<1x32xf32>
    %780 = arith.mulf %749, %779 : vector<1x32xf32>
    %781 = arith.mulf %765, %715 : vector<1x32xf32>
    %782 = arith.mulf %757, %767 : vector<1x32xf32>
    %783 = arith.addf %781, %782 : vector<1x32xf32>
    %784 = math.tanh %783 : vector<1x32xf32>
    %785 = arith.mulf %775, %784 : vector<1x32xf32>
    %cst_257 = arith.constant dense<0.000000e+00> : vector<1x512xf32>
    %786 = tpu.matmul %780, %576, %cst_257 {dimension_numbers = #tpu.dot_dimension_numbers<[1], [0], [0], [1], [0, 0, 1, 1], [], []>} : vector<1x32xf32>, vector<32x512xf32>, vector<1x512xf32> -> vector<1x512xf32>
    %cst_258 = arith.constant dense<0.000000e+00> : vector<1x512xf32>
    %787 = tpu.matmul %785, %577, %cst_258 {dimension_numbers = #tpu.dot_dimension_numbers<[1], [0], [0], [1], [0, 0, 1, 1], [], []>} : vector<1x32xf32>, vector<32x512xf32>, vector<1x512xf32> -> vector<1x512xf32>
    %788 = vector.extract_strided_slice %575 {offsets = [3, 0], sizes = [1, 512], strides = [1, 1]} : vector<8x1024xf32> to vector<1x512xf32>
    %789 = arith.addf %788, %786 : vector<1x512xf32>
    %790 = vector.extract_strided_slice %575 {offsets = [4, 512], sizes = [1, 512], strides = [1, 1]} : vector<8x1024xf32> to vector<1x512xf32>
    %791 = arith.addf %790, %787 : vector<1x512xf32>
    %792 = vector.extract_strided_slice %789 {offsets = [0, 0], sizes = [1, 32], strides = [1, 1]} : vector<1x512xf32> to vector<1x32xf32>
    %cst_259 = arith.constant 5.000000e-01 : f32
    %793 = vector.broadcast %cst_259 : f32 to vector<1x32xf32>
    %794 = arith.mulf %793, %792 : vector<1x32xf32>
    %795 = math.tanh %794 : vector<1x32xf32>
    %cst_260 = arith.constant 5.000000e-01 : f32
    %796 = vector.broadcast %cst_260 : f32 to vector<1x32xf32>
    %797 = arith.mulf %796, %795 : vector<1x32xf32>
    %cst_261 = arith.constant 5.000000e-01 : f32
    %798 = vector.broadcast %cst_261 : f32 to vector<1x32xf32>
    %799 = arith.addf %797, %798 : vector<1x32xf32>
    %800 = vector.extract_strided_slice %789 {offsets = [0, 128], sizes = [1, 32], strides = [1, 1]} : vector<1x512xf32> to vector<1x32xf32>
    %cst_262 = arith.constant 5.000000e-01 : f32
    %801 = vector.broadcast %cst_262 : f32 to vector<1x32xf32>
    %802 = arith.mulf %801, %800 : vector<1x32xf32>
    %803 = math.tanh %802 : vector<1x32xf32>
    %cst_263 = arith.constant 5.000000e-01 : f32
    %804 = vector.broadcast %cst_263 : f32 to vector<1x32xf32>
    %805 = arith.mulf %804, %803 : vector<1x32xf32>
    %cst_264 = arith.constant 5.000000e-01 : f32
    %806 = vector.broadcast %cst_264 : f32 to vector<1x32xf32>
    %807 = arith.addf %805, %806 : vector<1x32xf32>
    %808 = vector.extract_strided_slice %789 {offsets = [0, 256], sizes = [1, 32], strides = [1, 1]} : vector<1x512xf32> to vector<1x32xf32>
    %809 = math.tanh %808 : vector<1x32xf32>
    %810 = vector.extract_strided_slice %789 {offsets = [0, 384], sizes = [1, 32], strides = [1, 1]} : vector<1x512xf32> to vector<1x32xf32>
    %cst_265 = arith.constant 5.000000e-01 : f32
    %811 = vector.broadcast %cst_265 : f32 to vector<1x32xf32>
    %812 = arith.mulf %811, %810 : vector<1x32xf32>
    %813 = math.tanh %812 : vector<1x32xf32>
    %cst_266 = arith.constant 5.000000e-01 : f32
    %814 = vector.broadcast %cst_266 : f32 to vector<1x32xf32>
    %815 = arith.mulf %814, %813 : vector<1x32xf32>
    %cst_267 = arith.constant 5.000000e-01 : f32
    %816 = vector.broadcast %cst_267 : f32 to vector<1x32xf32>
    %817 = arith.addf %815, %816 : vector<1x32xf32>
    %818 = vector.extract_strided_slice %791 {offsets = [0, 0], sizes = [1, 32], strides = [1, 1]} : vector<1x512xf32> to vector<1x32xf32>
    %cst_268 = arith.constant 5.000000e-01 : f32
    %819 = vector.broadcast %cst_268 : f32 to vector<1x32xf32>
    %820 = arith.mulf %819, %818 : vector<1x32xf32>
    %821 = math.tanh %820 : vector<1x32xf32>
    %cst_269 = arith.constant 5.000000e-01 : f32
    %822 = vector.broadcast %cst_269 : f32 to vector<1x32xf32>
    %823 = arith.mulf %822, %821 : vector<1x32xf32>
    %cst_270 = arith.constant 5.000000e-01 : f32
    %824 = vector.broadcast %cst_270 : f32 to vector<1x32xf32>
    %825 = arith.addf %823, %824 : vector<1x32xf32>
    %826 = vector.extract_strided_slice %791 {offsets = [0, 128], sizes = [1, 32], strides = [1, 1]} : vector<1x512xf32> to vector<1x32xf32>
    %cst_271 = arith.constant 5.000000e-01 : f32
    %827 = vector.broadcast %cst_271 : f32 to vector<1x32xf32>
    %828 = arith.mulf %827, %826 : vector<1x32xf32>
    %829 = math.tanh %828 : vector<1x32xf32>
    %cst_272 = arith.constant 5.000000e-01 : f32
    %830 = vector.broadcast %cst_272 : f32 to vector<1x32xf32>
    %831 = arith.mulf %830, %829 : vector<1x32xf32>
    %cst_273 = arith.constant 5.000000e-01 : f32
    %832 = vector.broadcast %cst_273 : f32 to vector<1x32xf32>
    %833 = arith.addf %831, %832 : vector<1x32xf32>
    %834 = vector.extract_strided_slice %791 {offsets = [0, 256], sizes = [1, 32], strides = [1, 1]} : vector<1x512xf32> to vector<1x32xf32>
    %835 = math.tanh %834 : vector<1x32xf32>
    %836 = vector.extract_strided_slice %791 {offsets = [0, 384], sizes = [1, 32], strides = [1, 1]} : vector<1x512xf32> to vector<1x32xf32>
    %cst_274 = arith.constant 5.000000e-01 : f32
    %837 = vector.broadcast %cst_274 : f32 to vector<1x32xf32>
    %838 = arith.mulf %837, %836 : vector<1x32xf32>
    %839 = math.tanh %838 : vector<1x32xf32>
    %cst_275 = arith.constant 5.000000e-01 : f32
    %840 = vector.broadcast %cst_275 : f32 to vector<1x32xf32>
    %841 = arith.mulf %840, %839 : vector<1x32xf32>
    %cst_276 = arith.constant 5.000000e-01 : f32
    %842 = vector.broadcast %cst_276 : f32 to vector<1x32xf32>
    %843 = arith.addf %841, %842 : vector<1x32xf32>
    %844 = arith.mulf %807, %778 : vector<1x32xf32>
    %845 = arith.mulf %799, %809 : vector<1x32xf32>
    %846 = arith.addf %844, %845 : vector<1x32xf32>
    %847 = math.tanh %846 : vector<1x32xf32>
    %848 = arith.mulf %817, %847 : vector<1x32xf32>
    %849 = arith.mulf %833, %783 : vector<1x32xf32>
    %850 = arith.mulf %825, %835 : vector<1x32xf32>
    %851 = arith.addf %849, %850 : vector<1x32xf32>
    %852 = math.tanh %851 : vector<1x32xf32>
    %853 = arith.mulf %843, %852 : vector<1x32xf32>
    %cst_277 = arith.constant dense<0.000000e+00> : vector<1x512xf32>
    %854 = tpu.matmul %848, %576, %cst_277 {dimension_numbers = #tpu.dot_dimension_numbers<[1], [0], [0], [1], [0, 0, 1, 1], [], []>} : vector<1x32xf32>, vector<32x512xf32>, vector<1x512xf32> -> vector<1x512xf32>
    %cst_278 = arith.constant dense<0.000000e+00> : vector<1x512xf32>
    %855 = tpu.matmul %853, %577, %cst_278 {dimension_numbers = #tpu.dot_dimension_numbers<[1], [0], [0], [1], [0, 0, 1, 1], [], []>} : vector<1x32xf32>, vector<32x512xf32>, vector<1x512xf32> -> vector<1x512xf32>
    %856 = vector.extract_strided_slice %575 {offsets = [4, 0], sizes = [1, 512], strides = [1, 1]} : vector<8x1024xf32> to vector<1x512xf32>
    %857 = arith.addf %856, %854 : vector<1x512xf32>
    %858 = vector.extract_strided_slice %575 {offsets = [3, 512], sizes = [1, 512], strides = [1, 1]} : vector<8x1024xf32> to vector<1x512xf32>
    %859 = arith.addf %858, %855 : vector<1x512xf32>
    %860 = vector.extract_strided_slice %857 {offsets = [0, 0], sizes = [1, 32], strides = [1, 1]} : vector<1x512xf32> to vector<1x32xf32>
    %cst_279 = arith.constant 5.000000e-01 : f32
    %861 = vector.broadcast %cst_279 : f32 to vector<1x32xf32>
    %862 = arith.mulf %861, %860 : vector<1x32xf32>
    %863 = math.tanh %862 : vector<1x32xf32>
    %cst_280 = arith.constant 5.000000e-01 : f32
    %864 = vector.broadcast %cst_280 : f32 to vector<1x32xf32>
    %865 = arith.mulf %864, %863 : vector<1x32xf32>
    %cst_281 = arith.constant 5.000000e-01 : f32
    %866 = vector.broadcast %cst_281 : f32 to vector<1x32xf32>
    %867 = arith.addf %865, %866 : vector<1x32xf32>
    %868 = vector.extract_strided_slice %857 {offsets = [0, 128], sizes = [1, 32], strides = [1, 1]} : vector<1x512xf32> to vector<1x32xf32>
    %cst_282 = arith.constant 5.000000e-01 : f32
    %869 = vector.broadcast %cst_282 : f32 to vector<1x32xf32>
    %870 = arith.mulf %869, %868 : vector<1x32xf32>
    %871 = math.tanh %870 : vector<1x32xf32>
    %cst_283 = arith.constant 5.000000e-01 : f32
    %872 = vector.broadcast %cst_283 : f32 to vector<1x32xf32>
    %873 = arith.mulf %872, %871 : vector<1x32xf32>
    %cst_284 = arith.constant 5.000000e-01 : f32
    %874 = vector.broadcast %cst_284 : f32 to vector<1x32xf32>
    %875 = arith.addf %873, %874 : vector<1x32xf32>
    %876 = vector.extract_strided_slice %857 {offsets = [0, 256], sizes = [1, 32], strides = [1, 1]} : vector<1x512xf32> to vector<1x32xf32>
    %877 = math.tanh %876 : vector<1x32xf32>
    %878 = vector.extract_strided_slice %857 {offsets = [0, 384], sizes = [1, 32], strides = [1, 1]} : vector<1x512xf32> to vector<1x32xf32>
    %cst_285 = arith.constant 5.000000e-01 : f32
    %879 = vector.broadcast %cst_285 : f32 to vector<1x32xf32>
    %880 = arith.mulf %879, %878 : vector<1x32xf32>
    %881 = math.tanh %880 : vector<1x32xf32>
    %cst_286 = arith.constant 5.000000e-01 : f32
    %882 = vector.broadcast %cst_286 : f32 to vector<1x32xf32>
    %883 = arith.mulf %882, %881 : vector<1x32xf32>
    %cst_287 = arith.constant 5.000000e-01 : f32
    %884 = vector.broadcast %cst_287 : f32 to vector<1x32xf32>
    %885 = arith.addf %883, %884 : vector<1x32xf32>
    %886 = vector.extract_strided_slice %859 {offsets = [0, 0], sizes = [1, 32], strides = [1, 1]} : vector<1x512xf32> to vector<1x32xf32>
    %cst_288 = arith.constant 5.000000e-01 : f32
    %887 = vector.broadcast %cst_288 : f32 to vector<1x32xf32>
    %888 = arith.mulf %887, %886 : vector<1x32xf32>
    %889 = math.tanh %888 : vector<1x32xf32>
    %cst_289 = arith.constant 5.000000e-01 : f32
    %890 = vector.broadcast %cst_289 : f32 to vector<1x32xf32>
    %891 = arith.mulf %890, %889 : vector<1x32xf32>
    %cst_290 = arith.constant 5.000000e-01 : f32
    %892 = vector.broadcast %cst_290 : f32 to vector<1x32xf32>
    %893 = arith.addf %891, %892 : vector<1x32xf32>
    %894 = vector.extract_strided_slice %859 {offsets = [0, 128], sizes = [1, 32], strides = [1, 1]} : vector<1x512xf32> to vector<1x32xf32>
    %cst_291 = arith.constant 5.000000e-01 : f32
    %895 = vector.broadcast %cst_291 : f32 to vector<1x32xf32>
    %896 = arith.mulf %895, %894 : vector<1x32xf32>
    %897 = math.tanh %896 : vector<1x32xf32>
    %cst_292 = arith.constant 5.000000e-01 : f32
    %898 = vector.broadcast %cst_292 : f32 to vector<1x32xf32>
    %899 = arith.mulf %898, %897 : vector<1x32xf32>
    %cst_293 = arith.constant 5.000000e-01 : f32
    %900 = vector.broadcast %cst_293 : f32 to vector<1x32xf32>
    %901 = arith.addf %899, %900 : vector<1x32xf32>
    %902 = vector.extract_strided_slice %859 {offsets = [0, 256], sizes = [1, 32], strides = [1, 1]} : vector<1x512xf32> to vector<1x32xf32>
    %903 = math.tanh %902 : vector<1x32xf32>
    %904 = vector.extract_strided_slice %859 {offsets = [0, 384], sizes = [1, 32], strides = [1, 1]} : vector<1x512xf32> to vector<1x32xf32>
    %cst_294 = arith.constant 5.000000e-01 : f32
    %905 = vector.broadcast %cst_294 : f32 to vector<1x32xf32>
    %906 = arith.mulf %905, %904 : vector<1x32xf32>
    %907 = math.tanh %906 : vector<1x32xf32>
    %cst_295 = arith.constant 5.000000e-01 : f32
    %908 = vector.broadcast %cst_295 : f32 to vector<1x32xf32>
    %909 = arith.mulf %908, %907 : vector<1x32xf32>
    %cst_296 = arith.constant 5.000000e-01 : f32
    %910 = vector.broadcast %cst_296 : f32 to vector<1x32xf32>
    %911 = arith.addf %909, %910 : vector<1x32xf32>
    %912 = arith.mulf %875, %846 : vector<1x32xf32>
    %913 = arith.mulf %867, %877 : vector<1x32xf32>
    %914 = arith.addf %912, %913 : vector<1x32xf32>
    %915 = math.tanh %914 : vector<1x32xf32>
    %916 = arith.mulf %885, %915 : vector<1x32xf32>
    %917 = arith.mulf %901, %851 : vector<1x32xf32>
    %918 = arith.mulf %893, %903 : vector<1x32xf32>
    %919 = arith.addf %917, %918 : vector<1x32xf32>
    %920 = math.tanh %919 : vector<1x32xf32>
    %921 = arith.mulf %911, %920 : vector<1x32xf32>
    %cst_297 = arith.constant dense<0.000000e+00> : vector<1x512xf32>
    %922 = tpu.matmul %916, %576, %cst_297 {dimension_numbers = #tpu.dot_dimension_numbers<[1], [0], [0], [1], [0, 0, 1, 1], [], []>} : vector<1x32xf32>, vector<32x512xf32>, vector<1x512xf32> -> vector<1x512xf32>
    %cst_298 = arith.constant dense<0.000000e+00> : vector<1x512xf32>
    %923 = tpu.matmul %921, %577, %cst_298 {dimension_numbers = #tpu.dot_dimension_numbers<[1], [0], [0], [1], [0, 0, 1, 1], [], []>} : vector<1x32xf32>, vector<32x512xf32>, vector<1x512xf32> -> vector<1x512xf32>
    %924 = vector.extract_strided_slice %575 {offsets = [5, 0], sizes = [1, 512], strides = [1, 1]} : vector<8x1024xf32> to vector<1x512xf32>
    %925 = arith.addf %924, %922 : vector<1x512xf32>
    %926 = vector.extract_strided_slice %575 {offsets = [2, 512], sizes = [1, 512], strides = [1, 1]} : vector<8x1024xf32> to vector<1x512xf32>
    %927 = arith.addf %926, %923 : vector<1x512xf32>
    %928 = vector.extract_strided_slice %925 {offsets = [0, 0], sizes = [1, 32], strides = [1, 1]} : vector<1x512xf32> to vector<1x32xf32>
    %cst_299 = arith.constant 5.000000e-01 : f32
    %929 = vector.broadcast %cst_299 : f32 to vector<1x32xf32>
    %930 = arith.mulf %929, %928 : vector<1x32xf32>
    %931 = math.tanh %930 : vector<1x32xf32>
    %cst_300 = arith.constant 5.000000e-01 : f32
    %932 = vector.broadcast %cst_300 : f32 to vector<1x32xf32>
    %933 = arith.mulf %932, %931 : vector<1x32xf32>
    %cst_301 = arith.constant 5.000000e-01 : f32
    %934 = vector.broadcast %cst_301 : f32 to vector<1x32xf32>
    %935 = arith.addf %933, %934 : vector<1x32xf32>
    %936 = vector.extract_strided_slice %925 {offsets = [0, 128], sizes = [1, 32], strides = [1, 1]} : vector<1x512xf32> to vector<1x32xf32>
    %cst_302 = arith.constant 5.000000e-01 : f32
    %937 = vector.broadcast %cst_302 : f32 to vector<1x32xf32>
    %938 = arith.mulf %937, %936 : vector<1x32xf32>
    %939 = math.tanh %938 : vector<1x32xf32>
    %cst_303 = arith.constant 5.000000e-01 : f32
    %940 = vector.broadcast %cst_303 : f32 to vector<1x32xf32>
    %941 = arith.mulf %940, %939 : vector<1x32xf32>
    %cst_304 = arith.constant 5.000000e-01 : f32
    %942 = vector.broadcast %cst_304 : f32 to vector<1x32xf32>
    %943 = arith.addf %941, %942 : vector<1x32xf32>
    %944 = vector.extract_strided_slice %925 {offsets = [0, 256], sizes = [1, 32], strides = [1, 1]} : vector<1x512xf32> to vector<1x32xf32>
    %945 = math.tanh %944 : vector<1x32xf32>
    %946 = vector.extract_strided_slice %925 {offsets = [0, 384], sizes = [1, 32], strides = [1, 1]} : vector<1x512xf32> to vector<1x32xf32>
    %cst_305 = arith.constant 5.000000e-01 : f32
    %947 = vector.broadcast %cst_305 : f32 to vector<1x32xf32>
    %948 = arith.mulf %947, %946 : vector<1x32xf32>
    %949 = math.tanh %948 : vector<1x32xf32>
    %cst_306 = arith.constant 5.000000e-01 : f32
    %950 = vector.broadcast %cst_306 : f32 to vector<1x32xf32>
    %951 = arith.mulf %950, %949 : vector<1x32xf32>
    %cst_307 = arith.constant 5.000000e-01 : f32
    %952 = vector.broadcast %cst_307 : f32 to vector<1x32xf32>
    %953 = arith.addf %951, %952 : vector<1x32xf32>
    %954 = vector.extract_strided_slice %927 {offsets = [0, 0], sizes = [1, 32], strides = [1, 1]} : vector<1x512xf32> to vector<1x32xf32>
    %cst_308 = arith.constant 5.000000e-01 : f32
    %955 = vector.broadcast %cst_308 : f32 to vector<1x32xf32>
    %956 = arith.mulf %955, %954 : vector<1x32xf32>
    %957 = math.tanh %956 : vector<1x32xf32>
    %cst_309 = arith.constant 5.000000e-01 : f32
    %958 = vector.broadcast %cst_309 : f32 to vector<1x32xf32>
    %959 = arith.mulf %958, %957 : vector<1x32xf32>
    %cst_310 = arith.constant 5.000000e-01 : f32
    %960 = vector.broadcast %cst_310 : f32 to vector<1x32xf32>
    %961 = arith.addf %959, %960 : vector<1x32xf32>
    %962 = vector.extract_strided_slice %927 {offsets = [0, 128], sizes = [1, 32], strides = [1, 1]} : vector<1x512xf32> to vector<1x32xf32>
    %cst_311 = arith.constant 5.000000e-01 : f32
    %963 = vector.broadcast %cst_311 : f32 to vector<1x32xf32>
    %964 = arith.mulf %963, %962 : vector<1x32xf32>
    %965 = math.tanh %964 : vector<1x32xf32>
    %cst_312 = arith.constant 5.000000e-01 : f32
    %966 = vector.broadcast %cst_312 : f32 to vector<1x32xf32>
    %967 = arith.mulf %966, %965 : vector<1x32xf32>
    %cst_313 = arith.constant 5.000000e-01 : f32
    %968 = vector.broadcast %cst_313 : f32 to vector<1x32xf32>
    %969 = arith.addf %967, %968 : vector<1x32xf32>
    %970 = vector.extract_strided_slice %927 {offsets = [0, 256], sizes = [1, 32], strides = [1, 1]} : vector<1x512xf32> to vector<1x32xf32>
    %971 = math.tanh %970 : vector<1x32xf32>
    %972 = vector.extract_strided_slice %927 {offsets = [0, 384], sizes = [1, 32], strides = [1, 1]} : vector<1x512xf32> to vector<1x32xf32>
    %cst_314 = arith.constant 5.000000e-01 : f32
    %973 = vector.broadcast %cst_314 : f32 to vector<1x32xf32>
    %974 = arith.mulf %973, %972 : vector<1x32xf32>
    %975 = math.tanh %974 : vector<1x32xf32>
    %cst_315 = arith.constant 5.000000e-01 : f32
    %976 = vector.broadcast %cst_315 : f32 to vector<1x32xf32>
    %977 = arith.mulf %976, %975 : vector<1x32xf32>
    %cst_316 = arith.constant 5.000000e-01 : f32
    %978 = vector.broadcast %cst_316 : f32 to vector<1x32xf32>
    %979 = arith.addf %977, %978 : vector<1x32xf32>
    %980 = arith.mulf %943, %914 : vector<1x32xf32>
    %981 = arith.mulf %935, %945 : vector<1x32xf32>
    %982 = arith.addf %980, %981 : vector<1x32xf32>
    %983 = math.tanh %982 : vector<1x32xf32>
    %984 = arith.mulf %953, %983 : vector<1x32xf32>
    %985 = arith.mulf %969, %919 : vector<1x32xf32>
    %986 = arith.mulf %961, %971 : vector<1x32xf32>
    %987 = arith.addf %985, %986 : vector<1x32xf32>
    %988 = math.tanh %987 : vector<1x32xf32>
    %989 = arith.mulf %979, %988 : vector<1x32xf32>
    %cst_317 = arith.constant dense<0.000000e+00> : vector<1x512xf32>
    %990 = tpu.matmul %984, %576, %cst_317 {dimension_numbers = #tpu.dot_dimension_numbers<[1], [0], [0], [1], [0, 0, 1, 1], [], []>} : vector<1x32xf32>, vector<32x512xf32>, vector<1x512xf32> -> vector<1x512xf32>
    %cst_318 = arith.constant dense<0.000000e+00> : vector<1x512xf32>
    %991 = tpu.matmul %989, %577, %cst_318 {dimension_numbers = #tpu.dot_dimension_numbers<[1], [0], [0], [1], [0, 0, 1, 1], [], []>} : vector<1x32xf32>, vector<32x512xf32>, vector<1x512xf32> -> vector<1x512xf32>
    %992 = vector.extract_strided_slice %575 {offsets = [6, 0], sizes = [1, 512], strides = [1, 1]} : vector<8x1024xf32> to vector<1x512xf32>
    %993 = arith.addf %992, %990 : vector<1x512xf32>
    %994 = vector.extract_strided_slice %575 {offsets = [1, 512], sizes = [1, 512], strides = [1, 1]} : vector<8x1024xf32> to vector<1x512xf32>
    %995 = arith.addf %994, %991 : vector<1x512xf32>
    %996 = vector.extract_strided_slice %993 {offsets = [0, 0], sizes = [1, 32], strides = [1, 1]} : vector<1x512xf32> to vector<1x32xf32>
    %cst_319 = arith.constant 5.000000e-01 : f32
    %997 = vector.broadcast %cst_319 : f32 to vector<1x32xf32>
    %998 = arith.mulf %997, %996 : vector<1x32xf32>
    %999 = math.tanh %998 : vector<1x32xf32>
    %cst_320 = arith.constant 5.000000e-01 : f32
    %1000 = vector.broadcast %cst_320 : f32 to vector<1x32xf32>
    %1001 = arith.mulf %1000, %999 : vector<1x32xf32>
    %cst_321 = arith.constant 5.000000e-01 : f32
    %1002 = vector.broadcast %cst_321 : f32 to vector<1x32xf32>
    %1003 = arith.addf %1001, %1002 : vector<1x32xf32>
    %1004 = vector.extract_strided_slice %993 {offsets = [0, 128], sizes = [1, 32], strides = [1, 1]} : vector<1x512xf32> to vector<1x32xf32>
    %cst_322 = arith.constant 5.000000e-01 : f32
    %1005 = vector.broadcast %cst_322 : f32 to vector<1x32xf32>
    %1006 = arith.mulf %1005, %1004 : vector<1x32xf32>
    %1007 = math.tanh %1006 : vector<1x32xf32>
    %cst_323 = arith.constant 5.000000e-01 : f32
    %1008 = vector.broadcast %cst_323 : f32 to vector<1x32xf32>
    %1009 = arith.mulf %1008, %1007 : vector<1x32xf32>
    %cst_324 = arith.constant 5.000000e-01 : f32
    %1010 = vector.broadcast %cst_324 : f32 to vector<1x32xf32>
    %1011 = arith.addf %1009, %1010 : vector<1x32xf32>
    %1012 = vector.extract_strided_slice %993 {offsets = [0, 256], sizes = [1, 32], strides = [1, 1]} : vector<1x512xf32> to vector<1x32xf32>
    %1013 = math.tanh %1012 : vector<1x32xf32>
    %1014 = vector.extract_strided_slice %993 {offsets = [0, 384], sizes = [1, 32], strides = [1, 1]} : vector<1x512xf32> to vector<1x32xf32>
    %cst_325 = arith.constant 5.000000e-01 : f32
    %1015 = vector.broadcast %cst_325 : f32 to vector<1x32xf32>
    %1016 = arith.mulf %1015, %1014 : vector<1x32xf32>
    %1017 = math.tanh %1016 : vector<1x32xf32>
    %cst_326 = arith.constant 5.000000e-01 : f32
    %1018 = vector.broadcast %cst_326 : f32 to vector<1x32xf32>
    %1019 = arith.mulf %1018, %1017 : vector<1x32xf32>
    %cst_327 = arith.constant 5.000000e-01 : f32
    %1020 = vector.broadcast %cst_327 : f32 to vector<1x32xf32>
    %1021 = arith.addf %1019, %1020 : vector<1x32xf32>
    %1022 = vector.extract_strided_slice %995 {offsets = [0, 0], sizes = [1, 32], strides = [1, 1]} : vector<1x512xf32> to vector<1x32xf32>
    %cst_328 = arith.constant 5.000000e-01 : f32
    %1023 = vector.broadcast %cst_328 : f32 to vector<1x32xf32>
    %1024 = arith.mulf %1023, %1022 : vector<1x32xf32>
    %1025 = math.tanh %1024 : vector<1x32xf32>
    %cst_329 = arith.constant 5.000000e-01 : f32
    %1026 = vector.broadcast %cst_329 : f32 to vector<1x32xf32>
    %1027 = arith.mulf %1026, %1025 : vector<1x32xf32>
    %cst_330 = arith.constant 5.000000e-01 : f32
    %1028 = vector.broadcast %cst_330 : f32 to vector<1x32xf32>
    %1029 = arith.addf %1027, %1028 : vector<1x32xf32>
    %1030 = vector.extract_strided_slice %995 {offsets = [0, 128], sizes = [1, 32], strides = [1, 1]} : vector<1x512xf32> to vector<1x32xf32>
    %cst_331 = arith.constant 5.000000e-01 : f32
    %1031 = vector.broadcast %cst_331 : f32 to vector<1x32xf32>
    %1032 = arith.mulf %1031, %1030 : vector<1x32xf32>
    %1033 = math.tanh %1032 : vector<1x32xf32>
    %cst_332 = arith.constant 5.000000e-01 : f32
    %1034 = vector.broadcast %cst_332 : f32 to vector<1x32xf32>
    %1035 = arith.mulf %1034, %1033 : vector<1x32xf32>
    %cst_333 = arith.constant 5.000000e-01 : f32
    %1036 = vector.broadcast %cst_333 : f32 to vector<1x32xf32>
    %1037 = arith.addf %1035, %1036 : vector<1x32xf32>
    %1038 = vector.extract_strided_slice %995 {offsets = [0, 256], sizes = [1, 32], strides = [1, 1]} : vector<1x512xf32> to vector<1x32xf32>
    %1039 = math.tanh %1038 : vector<1x32xf32>
    %1040 = vector.extract_strided_slice %995 {offsets = [0, 384], sizes = [1, 32], strides = [1, 1]} : vector<1x512xf32> to vector<1x32xf32>
    %cst_334 = arith.constant 5.000000e-01 : f32
    %1041 = vector.broadcast %cst_334 : f32 to vector<1x32xf32>
    %1042 = arith.mulf %1041, %1040 : vector<1x32xf32>
    %1043 = math.tanh %1042 : vector<1x32xf32>
    %cst_335 = arith.constant 5.000000e-01 : f32
    %1044 = vector.broadcast %cst_335 : f32 to vector<1x32xf32>
    %1045 = arith.mulf %1044, %1043 : vector<1x32xf32>
    %cst_336 = arith.constant 5.000000e-01 : f32
    %1046 = vector.broadcast %cst_336 : f32 to vector<1x32xf32>
    %1047 = arith.addf %1045, %1046 : vector<1x32xf32>
    %1048 = arith.mulf %1011, %982 : vector<1x32xf32>
    %1049 = arith.mulf %1003, %1013 : vector<1x32xf32>
    %1050 = arith.addf %1048, %1049 : vector<1x32xf32>
    %1051 = math.tanh %1050 : vector<1x32xf32>
    %1052 = arith.mulf %1021, %1051 : vector<1x32xf32>
    %1053 = arith.mulf %1037, %987 : vector<1x32xf32>
    %1054 = arith.mulf %1029, %1039 : vector<1x32xf32>
    %1055 = arith.addf %1053, %1054 : vector<1x32xf32>
    %1056 = math.tanh %1055 : vector<1x32xf32>
    %1057 = arith.mulf %1047, %1056 : vector<1x32xf32>
    %cst_337 = arith.constant dense<0.000000e+00> : vector<1x512xf32>
    %1058 = tpu.matmul %1052, %576, %cst_337 {dimension_numbers = #tpu.dot_dimension_numbers<[1], [0], [0], [1], [0, 0, 1, 1], [], []>} : vector<1x32xf32>, vector<32x512xf32>, vector<1x512xf32> -> vector<1x512xf32>
    %cst_338 = arith.constant dense<0.000000e+00> : vector<1x512xf32>
    %1059 = tpu.matmul %1057, %577, %cst_338 {dimension_numbers = #tpu.dot_dimension_numbers<[1], [0], [0], [1], [0, 0, 1, 1], [], []>} : vector<1x32xf32>, vector<32x512xf32>, vector<1x512xf32> -> vector<1x512xf32>
    %1060 = vector.extract_strided_slice %575 {offsets = [7, 0], sizes = [1, 512], strides = [1, 1]} : vector<8x1024xf32> to vector<1x512xf32>
    %1061 = arith.addf %1060, %1058 : vector<1x512xf32>
    %1062 = vector.extract_strided_slice %575 {offsets = [0, 512], sizes = [1, 512], strides = [1, 1]} : vector<8x1024xf32> to vector<1x512xf32>
    %1063 = arith.addf %1062, %1059 : vector<1x512xf32>
    %1064 = vector.extract_strided_slice %1061 {offsets = [0, 0], sizes = [1, 32], strides = [1, 1]} : vector<1x512xf32> to vector<1x32xf32>
    %cst_339 = arith.constant 5.000000e-01 : f32
    %1065 = vector.broadcast %cst_339 : f32 to vector<1x32xf32>
    %1066 = arith.mulf %1065, %1064 : vector<1x32xf32>
    %1067 = math.tanh %1066 : vector<1x32xf32>
    %cst_340 = arith.constant 5.000000e-01 : f32
    %1068 = vector.broadcast %cst_340 : f32 to vector<1x32xf32>
    %1069 = arith.mulf %1068, %1067 : vector<1x32xf32>
    %cst_341 = arith.constant 5.000000e-01 : f32
    %1070 = vector.broadcast %cst_341 : f32 to vector<1x32xf32>
    %1071 = arith.addf %1069, %1070 : vector<1x32xf32>
    %1072 = vector.extract_strided_slice %1061 {offsets = [0, 128], sizes = [1, 32], strides = [1, 1]} : vector<1x512xf32> to vector<1x32xf32>
    %cst_342 = arith.constant 5.000000e-01 : f32
    %1073 = vector.broadcast %cst_342 : f32 to vector<1x32xf32>
    %1074 = arith.mulf %1073, %1072 : vector<1x32xf32>
    %1075 = math.tanh %1074 : vector<1x32xf32>
    %cst_343 = arith.constant 5.000000e-01 : f32
    %1076 = vector.broadcast %cst_343 : f32 to vector<1x32xf32>
    %1077 = arith.mulf %1076, %1075 : vector<1x32xf32>
    %cst_344 = arith.constant 5.000000e-01 : f32
    %1078 = vector.broadcast %cst_344 : f32 to vector<1x32xf32>
    %1079 = arith.addf %1077, %1078 : vector<1x32xf32>
    %1080 = vector.extract_strided_slice %1061 {offsets = [0, 256], sizes = [1, 32], strides = [1, 1]} : vector<1x512xf32> to vector<1x32xf32>
    %1081 = math.tanh %1080 : vector<1x32xf32>
    %1082 = vector.extract_strided_slice %1061 {offsets = [0, 384], sizes = [1, 32], strides = [1, 1]} : vector<1x512xf32> to vector<1x32xf32>
    %cst_345 = arith.constant 5.000000e-01 : f32
    %1083 = vector.broadcast %cst_345 : f32 to vector<1x32xf32>
    %1084 = arith.mulf %1083, %1082 : vector<1x32xf32>
    %1085 = math.tanh %1084 : vector<1x32xf32>
    %cst_346 = arith.constant 5.000000e-01 : f32
    %1086 = vector.broadcast %cst_346 : f32 to vector<1x32xf32>
    %1087 = arith.mulf %1086, %1085 : vector<1x32xf32>
    %cst_347 = arith.constant 5.000000e-01 : f32
    %1088 = vector.broadcast %cst_347 : f32 to vector<1x32xf32>
    %1089 = arith.addf %1087, %1088 : vector<1x32xf32>
    %1090 = vector.extract_strided_slice %1063 {offsets = [0, 0], sizes = [1, 32], strides = [1, 1]} : vector<1x512xf32> to vector<1x32xf32>
    %cst_348 = arith.constant 5.000000e-01 : f32
    %1091 = vector.broadcast %cst_348 : f32 to vector<1x32xf32>
    %1092 = arith.mulf %1091, %1090 : vector<1x32xf32>
    %1093 = math.tanh %1092 : vector<1x32xf32>
    %cst_349 = arith.constant 5.000000e-01 : f32
    %1094 = vector.broadcast %cst_349 : f32 to vector<1x32xf32>
    %1095 = arith.mulf %1094, %1093 : vector<1x32xf32>
    %cst_350 = arith.constant 5.000000e-01 : f32
    %1096 = vector.broadcast %cst_350 : f32 to vector<1x32xf32>
    %1097 = arith.addf %1095, %1096 : vector<1x32xf32>
    %1098 = vector.extract_strided_slice %1063 {offsets = [0, 128], sizes = [1, 32], strides = [1, 1]} : vector<1x512xf32> to vector<1x32xf32>
    %cst_351 = arith.constant 5.000000e-01 : f32
    %1099 = vector.broadcast %cst_351 : f32 to vector<1x32xf32>
    %1100 = arith.mulf %1099, %1098 : vector<1x32xf32>
    %1101 = math.tanh %1100 : vector<1x32xf32>
    %cst_352 = arith.constant 5.000000e-01 : f32
    %1102 = vector.broadcast %cst_352 : f32 to vector<1x32xf32>
    %1103 = arith.mulf %1102, %1101 : vector<1x32xf32>
    %cst_353 = arith.constant 5.000000e-01 : f32
    %1104 = vector.broadcast %cst_353 : f32 to vector<1x32xf32>
    %1105 = arith.addf %1103, %1104 : vector<1x32xf32>
    %1106 = vector.extract_strided_slice %1063 {offsets = [0, 256], sizes = [1, 32], strides = [1, 1]} : vector<1x512xf32> to vector<1x32xf32>
    %1107 = math.tanh %1106 : vector<1x32xf32>
    %1108 = vector.extract_strided_slice %1063 {offsets = [0, 384], sizes = [1, 32], strides = [1, 1]} : vector<1x512xf32> to vector<1x32xf32>
    %cst_354 = arith.constant 5.000000e-01 : f32
    %1109 = vector.broadcast %cst_354 : f32 to vector<1x32xf32>
    %1110 = arith.mulf %1109, %1108 : vector<1x32xf32>
    %1111 = math.tanh %1110 : vector<1x32xf32>
    %cst_355 = arith.constant 5.000000e-01 : f32
    %1112 = vector.broadcast %cst_355 : f32 to vector<1x32xf32>
    %1113 = arith.mulf %1112, %1111 : vector<1x32xf32>
    %cst_356 = arith.constant 5.000000e-01 : f32
    %1114 = vector.broadcast %cst_356 : f32 to vector<1x32xf32>
    %1115 = arith.addf %1113, %1114 : vector<1x32xf32>
    %1116 = arith.mulf %1079, %1050 : vector<1x32xf32>
    %1117 = arith.mulf %1071, %1081 : vector<1x32xf32>
    %1118 = arith.addf %1116, %1117 : vector<1x32xf32>
    %1119 = math.tanh %1118 : vector<1x32xf32>
    %1120 = arith.mulf %1089, %1119 : vector<1x32xf32>
    %1121 = arith.mulf %1105, %1055 : vector<1x32xf32>
    %1122 = arith.mulf %1097, %1107 : vector<1x32xf32>
    %1123 = arith.addf %1121, %1122 : vector<1x32xf32>
    %1124 = math.tanh %1123 : vector<1x32xf32>
    %1125 = arith.mulf %1115, %1124 : vector<1x32xf32>
    %c2 = arith.constant 2 : index
    %c0_357 = arith.constant 0 : index
    %c0_358 = arith.constant 0 : index
    %1126 = vector.load %arg10[%c2, %c0_357, %c0_358] : memref<4x1x32xf32, #tpu.memory_space<vmem>>, vector<1x1x32xf32>
    %1127 = vector.shape_cast %1126 : vector<1x1x32xf32> to vector<1x32xf32>
    %1128 = vector.shape_cast %1120 : vector<1x32xf32> to vector<1x1x32xf32>
    tpu.vector_store %arg10[%c2, %c0_357, %c0_358], %1128 {strides = array<i32>} : memref<4x1x32xf32, #tpu.memory_space<vmem>>, vector<1x1x32xf32>,
    %c3 = arith.constant 3 : index
    %c0_359 = arith.constant 0 : index
    %c0_360 = arith.constant 0 : index
    %1129 = vector.load %arg10[%c3, %c0_359, %c0_360] : memref<4x1x32xf32, #tpu.memory_space<vmem>>, vector<1x1x32xf32>
    %1130 = vector.shape_cast %1129 : vector<1x1x32xf32> to vector<1x32xf32>
    %1131 = vector.shape_cast %1125 : vector<1x32xf32> to vector<1x1x32xf32>
    tpu.vector_store %arg10[%c3, %c0_359, %c0_360], %1131 {strides = array<i32>} : memref<4x1x32xf32, #tpu.memory_space<vmem>>, vector<1x1x32xf32>,
    %c2_361 = arith.constant 2 : index
    %c0_362 = arith.constant 0 : index
    %c0_363 = arith.constant 0 : index
    %1132 = vector.load %arg11[%c2_361, %c0_362, %c0_363] : memref<4x1x32xf32, #tpu.memory_space<vmem>>, vector<1x1x32xf32>
    %1133 = vector.shape_cast %1132 : vector<1x1x32xf32> to vector<1x32xf32>
    %1134 = vector.shape_cast %1118 : vector<1x32xf32> to vector<1x1x32xf32>
    tpu.vector_store %arg11[%c2_361, %c0_362, %c0_363], %1134 {strides = array<i32>} : memref<4x1x32xf32, #tpu.memory_space<vmem>>, vector<1x1x32xf32>,
    %c3_364 = arith.constant 3 : index
    %c0_365 = arith.constant 0 : index
    %c0_366 = arith.constant 0 : index
    %1135 = vector.load %arg11[%c3_364, %c0_365, %c0_366] : memref<4x1x32xf32, #tpu.memory_space<vmem>>, vector<1x1x32xf32>
    %1136 = vector.shape_cast %1135 : vector<1x1x32xf32> to vector<1x32xf32>
    %1137 = vector.shape_cast %1123 : vector<1x32xf32> to vector<1x1x32xf32>
    tpu.vector_store %arg11[%c3_364, %c0_365, %c0_366], %1137 {strides = array<i32>} : memref<4x1x32xf32, #tpu.memory_space<vmem>>, vector<1x1x32xf32>,
    %1138 = tpu.concatenate %644, %712, %780, %848, %916, %984, %1052, %1120 in 0 : vector<1x32xf32>, vector<1x32xf32>, vector<1x32xf32>, vector<1x32xf32>, vector<1x32xf32>, vector<1x32xf32>, vector<1x32xf32>, vector<1x32xf32> -> vector<8x32xf32>
    %1139 = tpu.concatenate %1125, %1057, %989, %921, %853, %785, %717, %649 in 0 : vector<1x32xf32>, vector<1x32xf32>, vector<1x32xf32>, vector<1x32xf32>, vector<1x32xf32>, vector<1x32xf32>, vector<1x32xf32>, vector<1x32xf32> -> vector<8x32xf32>
    %1140 = arith.addf %1138, %1139 : vector<8x32xf32>
    %1141 = arith.addf %1140, %0 : vector<8x32xf32>
    %c0_367 = arith.constant 0 : index
    %c0_368 = arith.constant 0 : index
    %1142 = vector.load %arg9[%c0_367, %c0_368] : memref<8x32xf32, #tpu.memory_space<vmem>>, vector<8x32xf32>
    tpu.vector_store %arg9[%c0_367, %c0_368], %1141 {strides = array<i32>} : memref<8x32xf32, #tpu.memory_space<vmem>>, vector<8x32xf32>,
    return
  }
}

</mosaic_0001>

<bundles_post_ra>
// kernel: bidirectional_lstm_forward.1
= control target key start
LH: loop header
LB: loop body
LE: loop exit
PB: predicated region body
PF: predicated region fallthrough
CT: control target
= control target key end

     0   :  { %17 = vsyncpa [#allocation3], 0  ;;  %s9061_s0 = inlined_call_operand.hbm [shape: f32[8,32], index: 0, kind: input, shape index: {}]   ;;  %s9062_s1 = inlined_call_operand.hbm [shape: f32[32,1024], index: 1, kind: input, shape index: {}]   ;;  %s9063_s2 = inlined_call_operand.hbm [shape: f32[1,1024], index: 2, kind: input, shape index: {}]   ;;  %s9064_s3 = inlined_call_operand.hbm [shape: f32[32,512], index: 3, kind: input, shape index: {}]   ;;  %s9065_s4 = inlined_call_operand.hbm [shape: f32[32,512], index: 4, kind: input, shape index: {}]   ;;  %s9066_s5 = inlined_call_operand.hbm [shape: f32[64,1024], index: 5, kind: input, shape index: {}]   ;;  %s9067_s6 = inlined_call_operand.vmem [shape: f32[1,1024], index: 6, kind: input, shape index: {}]   ;;  %s9068_s7 = inlined_call_operand.hbm [shape: f32[32,512], index: 7, kind: input, shape index: {}]   ;;  %s9069_s8 = inlined_call_operand.hbm [shape: f32[32,512], index: 8, kind: input, shape index: {}]   ;;  %s9070_s9 = inlined_call_operand.hbm [shape: f32[8,32], index: 9, kind: output, shape index: {0}]   ;;  %s9071_s10 = inlined_call_operand.hbm [shape: f32[4,1,32], index: 10, kind: output, shape index: {1}]   ;;  %s9072_s11 = inlined_call_operand.hbm [shape: f32[4,1,32], index: 11, kind: output, shape index: {2}]  }
   0x1   :  { %18 = vsyncpa [#allocation6], 0 }
   0x2   :  { %19 = vsyncpa [#allocation9], 0 }
   0x3   :  { %20 = vsyncpa [#allocation12], 0 }
   0x4   :  { %21 = vsyncpa [#allocation15], 0 }
   0x5   :  { %22 = vsyncpa [#allocation4], 0 }
   0x6   :  { %23 = vsyncpa [#allocation18], 0  ;;  %s7554_s17 = smov [#allocation5]  }
   0x7   :  { %s39_s18 = sshll.u32 %s7554_s17, 4  ;;  %s40_s18 = int_to_ptr.vmem [resolvable:$true] %s39_s18 }
   0x8   :  { %s7328_s19 = scalar_lea.vmem %s40_s18, 4096  ;;  %p7333_p1 = scmp.lt.s32.totalorder %s40_s18, %s40_s18 }
   0x9   :  { %p7329_p0 = scmp.ne.s32.totalorder %s40_s18, %s7328_s19  ;;  %p7334_p2 = scmp.lt.s32.totalorder %s7328_s19, %s7328_s19 }
   0xb   :  { %p7335_p3 = por %p7334_p2, %p7333_p1 }
   0xd   :  { %p7336_p4 = pnand %p7335_p3, %p7329_p0 }
   0xf   :  { %7339 = shalt.err (!%p7336_p4)
}
  0x10   :  { %s7555_s20 = smov 1024   ;;  %s7556_s21 = smov 64  }
  0x11   :  { %45 = dma.hbm_to_vmem [thread:$0]  %s9062_s1, 4096, %s40_s18, [#allocation6], %s7555_s20, %s7555_s20, %s7556_s21  }
  0x12   :  { %s7557_s24 = smov [#allocation8]  }
  0x13   :  { %s61_s25 = sshll.u32 %s7557_s24, 4  ;;  %s62_s25 = int_to_ptr.vmem [resolvable:$true] %s61_s25 }
  0x14   :  { %s7348_s26 = scalar_lea.vmem %s62_s25, 2048  ;;  %p7353_p6 = scmp.lt.s32.totalorder %s62_s25, %s62_s25 }
  0x15   :  { %p7349_p5 = scmp.ne.s32.totalorder %s62_s25, %s7348_s26  ;;  %p7354_p7 = scmp.lt.s32.totalorder %s7348_s26, %s7348_s26 }
  0x17   :  { %p7355_p8 = por %p7354_p7, %p7353_p6 }
  0x19   :  { %p7356_p9 = pnand %p7355_p8, %p7349_p5 }
  0x1b   :  { %7359 = shalt.err (!%p7356_p9)
}
  0x1c   :  { %s7558_s27 = smov 512   ;;  %s7559_s28 = smov 32  }
  0x1d   :  { %67 = dma.hbm_to_vmem [thread:$0]  %s9064_s3, 2048, %s62_s25, [#allocation9], %s7558_s27, %s7558_s27, %s7559_s28  }
  0x1e   :  { %s7560_s1 = smov [#allocation11]   ;;  %s7561_s13 = smov [#allocation2]  }
  0x1f   :  { %s85_s12 = sshll.u32 %s7560_s1, 4  ;;  %s30_s14 = sshll.u32 %s7561_s13, 4  ;;  %s86_s12 = int_to_ptr.vmem [resolvable:$true] %s85_s12  ;;  %s31_s14 = int_to_ptr.vmem [resolvable:$true] %s30_s14 }
  0x20   :  { %s7368_s15 = scalar_lea.vmem %s86_s12, 8192  ;;  %p7373_p11 = scmp.lt.s32.totalorder %s86_s12, %s86_s12 }
  0x21   :  { %p7369_p10 = scmp.ne.s32.totalorder %s86_s12, %s7368_s15  ;;  %p7374_p12 = scmp.lt.s32.totalorder %s7368_s15, %s7368_s15 }
  0x23   :  { %p7375_p13 = por %p7374_p12, %p7373_p11 }
  0x25   :  { %p7376_p0 = pnand %p7375_p13, %p7369_p10 }
  0x27   :  { %7379 = shalt.err (!%p7376_p0)
}
  0x28   :  { %91 = dma.hbm_to_vmem [thread:$0]  %s9066_s5, 8192, %s86_s12, [#allocation12], %s7555_s20, %s7555_s20, %s7556_s21  }
  0x29   :  { %s7388_s3 = scalar_lea.vmem %s31_s14, 128  ;;  %p7393_p2 = scmp.lt.s32.totalorder %s31_s14, %s31_s14 }
  0x2a   :  { %p7389_p1 = scmp.ne.s32.totalorder %s31_s14, %s7388_s3  ;;  %p7394_p3 = scmp.lt.s32.totalorder %s7388_s3, %s7388_s3 }
  0x2c   :  { %p7395_p4 = por %p7394_p3, %p7393_p2 }
  0x2e   :  { %p7396_p5 = pnand %p7395_p4, %p7389_p1 }
  0x30   :  { %7399 = shalt.err (!%p7396_p5)
}
  0x31   :  { %33 = dma.hbm_to_vmem [thread:$0]  %s9061_s0, 128, %s31_s14, [#allocation3]  }
  0x32   :  { %s7562_s22 = smov [#allocation7]   ;;  %s7563_s24 = smov [#allocation10]  }
  0x33   :  { %s52_s23 = sshll.u32 %s7562_s22, 4  ;;  %s73_s25 = sshll.u32 %s7563_s24, 4  ;;  %s53_s23 = int_to_ptr.vmem [resolvable:$true] %s52_s23  ;;  %s74_s25 = int_to_ptr.vmem [resolvable:$true] %s73_s25 }
  0x34   :  { %s7408_s26 = scalar_lea.vmem %s53_s23, 128  ;;  %p7413_p7 = scmp.lt.s32.totalorder %s53_s23, %s53_s23 }
  0x35   :  { %p7409_p6 = scmp.ne.s32.totalorder %s53_s23, %s7408_s26  ;;  %p7414_p8 = scmp.lt.s32.totalorder %s7408_s26, %s7408_s26 }
  0x37   :  { %p7415_p9 = por %p7414_p8, %p7413_p7 }
  0x39   :  { %p7416_p10 = pnand %p7415_p9, %p7409_p6 }
  0x3b   :  { %7419 = shalt.err (!%p7416_p10)
}
  0x3c   :  { %55 = dma.hbm_to_vmem [thread:$0]  %s9063_s2, 128, %s53_s23, [#allocation6]  }
  0x3d   :  { %s7428_s21 = scalar_lea.vmem %s74_s25, 2048  ;;  %p7433_p12 = scmp.lt.s32.totalorder %s74_s25, %s74_s25 }
  0x3e   :  { %p7429_p11 = scmp.ne.s32.totalorder %s74_s25, %s7428_s21  ;;  %p7434_p13 = scmp.lt.s32.totalorder %s7428_s21, %s7428_s21 }
  0x40   :  { %p7435_p0 = por %p7434_p13, %p7433_p12 }
  0x42   :  { %p7436_p1 = pnand %p7435_p0, %p7429_p11 }
  0x44   :  { %7439 = shalt.err (!%p7436_p1)
}
  0x45   :  { %79 = dma.hbm_to_vmem [thread:$0]  %s9065_s4, 2048, %s74_s25, [#allocation9], %s7558_s27, %s7558_s27, %s7559_s28  }
  0x46   :  { %s7564_s30 = smov [#allocation13]   ;;  %s7565_s12 = smov [#allocation14]  }
  0x47   :  { %s99_s1 = sshll.u32 %s7564_s30, 4  ;;  %s111_s13 = sshll.u32 %s7565_s12, 4  ;;  %s100_s1 = int_to_ptr.vmem [resolvable:$true] %s99_s1  ;;  %s112_s13 = int_to_ptr.vmem [resolvable:$true] %s111_s13 }
  0x48   :  { %s7448_s2 = scalar_lea.vmem %s100_s1, 2048  ;;  %p7453_p3 = scmp.lt.s32.totalorder %s100_s1, %s100_s1 }
  0x49   :  { %p7449_p2 = scmp.ne.s32.totalorder %s100_s1, %s7448_s2  ;;  %p7454_p4 = scmp.lt.s32.totalorder %s7448_s2, %s7448_s2 }
  0x4b   :  { %p7455_p5 = por %p7454_p4, %p7453_p3 }
  0x4d   :  { %p7456_p6 = pnand %p7455_p5, %p7449_p2 }
  0x4f   :  { %7459 = shalt.err (!%p7456_p6)
}
  0x50   :  { %105 = dma.hbm_to_vmem [thread:$0]  %s9068_s7, 2048, %s100_s1, [#allocation12], %s7558_s27, %s7558_s27, %s7559_s28  }
  0x51   :  { %s7468_s4 = scalar_lea.vmem %s112_s13, 2048  ;;  %p7473_p8 = scmp.lt.s32.totalorder %s112_s13, %s112_s13 }
  0x52   :  { %p7469_p7 = scmp.ne.s32.totalorder %s112_s13, %s7468_s4  ;;  %p7474_p9 = scmp.lt.s32.totalorder %s7468_s4, %s7468_s4 }
  0x54   :  { %p7475_p10 = por %p7474_p9, %p7473_p8 }
  0x56   :  { %p7476_p11 = pnand %p7475_p10, %p7469_p7 }
  0x58   :  { %7479 = shalt.err (!%p7476_p11)
}
  0x59   :  { %117 = dma.hbm_to_vmem [thread:$0]  %s9069_s8, 2048, %s112_s13, [#allocation15], %s7558_s27, %s7558_s27, %s7559_s28  }
  0x5a   :  { %7540 = dma.done.wait [#allocation3], 128  }
  0x5b   :  { %7541 = vsyncadd [#allocation3], 4294967168 }
  0x5c   :  { %7542 = dma.done.wait [#allocation6], 4224  }
  0x5d   :  { %7543 = vsyncadd [#allocation6], 4294963072 }
  0x5e   :  { %7544 = dma.done.wait [#allocation9], 4096  }
  0x5f   :  { %7545 = vsyncadd [#allocation9], 4294963200 }
  0x60   :  { %7546 = dma.done.wait [#allocation12], 10240  }
  0x61   :  { %7547 = vsyncadd [#allocation12], 4294957056 }
  0x62   :  { %7548 = dma.done.wait [#allocation15], 2048  }
  0x63   :  { %7549 = vsyncadd [#allocation15], 4294965248  ;;  %v9081_v0 = vmov 0.0   ;;  %v168_v1 = vld [vmem:[#allocation5 + $0xc8] sm:$0xff]  ;;  %v170_v2 = vld [vmem:[#allocation5 + $0xd8] sm:$0xff]  ;;  %vm217_vm0 = vcmask 261120  }
  0x64   :  { %285 = vmatprep.mubr.f32.mxu0 %v9081_v0  ;;  %356 = vmatprep.mubr.f32.mxu1 %v9081_v0  ;;  %v167_v3 = vld [vmem:[#allocation5 + $0xc0] sm:$0xff]  ;;  %v169_v4 = vld [vmem:[#allocation5 + $0xd0] sm:$0xff]  ;;  %v160_v5 = vld [vmem:[#allocation5 + $0x88] sm:$0xff]  ;;  %vm3437_vm1 = vcmask 1040384   ;;  %vm3439_vm2 = vcmask 1041408   ;;  %vm3441_vm3 = vcmask 1042432  }
  0x65   :  { %245 = vmatprep.subr.mxu0 %v168_v1  ;;  %316 = vmatprep.subr.mxu1 %v170_v2  ;;  %v162_v6 = vld [vmem:[#allocation5 + $0x98] sm:$0xff]  ;;  %v159_v7 = vld [vmem:[#allocation5 + $0x80] sm:$0xff]  ;;  %v161_v8 = vld [vmem:[#allocation5 + $0x90] sm:$0xff]  ;;  %vm3443_vm4 = vcmask 1043456   ;;  %vm3445_vm5 = vcmask 1044480   ;;  %vm3447_vm6 = vcmask 1045504  }
  0x66   :  { %246 = vmatpush1.msra.mxu0 %v167_v3  ;;  %317 = vmatpush1.msra.mxu1 %v169_v4  ;;  %v152_v9 = vld [vmem:[#allocation5 + $0x48] sm:$0xff]  ;;  %v154_v10 = vld [vmem:[#allocation5 + $0x58] sm:$0xff]  ;;  %v151_v11 = vld [vmem:[#allocation5 + $0x40] sm:$0xff]  ;;  %v177_v3 = vlaneseq  ;;  %vm3429_vm7 = vcmask 261127   ;;  %vm3432_vm8 = vcmask 253952   ;;  %vm3449_vm9 = vcmask 1046528  }
  0x67   :  { %247 = vmatprep.subr.mxu0 %v160_v5  ;;  %318 = vmatprep.subr.mxu1 %v162_v6  ;;  %v153_v12 = vld [vmem:[#allocation5 + $0x50] sm:$0xff]  ;;  %v144_v13 = vld [vmem:[#allocation5 + $0x8] sm:$0xff]  ;;  %v146_v14 = vld [vmem:[#allocation5 + $0x18] sm:$0xff]  ;;  %vm3569_vm10 = vcmask 523264  }
  0x68   :  { %248 = vmatpush1.msra.mxu0 %v159_v7  ;;  %319 = vmatpush1.msra.mxu1 %v161_v8  ;;  %v143_v15 = vld [vmem:[#allocation5] sm:$0xff]  ;;  %v145_v16 = vld [vmem:[#allocation5 + $0x10] sm:$0xff]  ;;  %v142_v17 = vld [vmem:[#allocation2] sm:$0xff]  ;;  %v7806_v4 = vshrl.u32 %v177_v3, 7 }
  0x69   :  { %249 = vmatprep.subr.mxu0 %v152_v9  ;;  %320 = vmatprep.subr.mxu1 %v154_v10  ;;  %v172_v18 = vld [vmem:[#allocation5 + $0xe8] sm:$0xff]  ;;  %v174_v19 = vld [vmem:[#allocation5 + $0xf8] sm:$0xff]  ;;  %v171_v20 = vld [vmem:[#allocation5 + $0xe0] sm:$0xff] }
  0x6a   :  { %250 = vmatpush1.msra.mxu0 %v151_v11  ;;  %321 = vmatpush1.msra.mxu1 %v153_v12  ;;  %v173_v21 = vld [vmem:[#allocation5 + $0xf0] sm:$0xff]  ;;  %v164_v22 = vld [vmem:[#allocation5 + $0xa8] sm:$0xff]  ;;  %v166_v23 = vld [vmem:[#allocation5 + $0xb8] sm:$0xff]  ;;  %9093 = vst [vmem:[#allocation27_spill] sm:$0xff] %v7806_v4  ;;  %v9080_v7 = vsub.s32 0, %v7806_v4  ;;  %v9078_v11 = vsub.s32 1, %v7806_v4 }
  0x6b   :  { %251 = vmatprep.subr.mxu0 %v144_v13  ;;  %322 = vmatprep.subr.mxu1 %v146_v14  ;;  %v163_v24 = vld [vmem:[#allocation5 + $0xa0] sm:$0xff]  ;;  %v165_v25 = vld [vmem:[#allocation5 + $0xb0] sm:$0xff]  ;;  %v156_v26 = vld [vmem:[#allocation5 + $0x68] sm:$0xff] }
  0x6c   :  { %252 = vmatpush1.msra.mxu0 %v143_v15  ;;  %323 = vmatpush1.msra.mxu1 %v145_v16  ;;  %v158_v27 = vld [vmem:[#allocation5 + $0x78] sm:$0xff]  ;;  %v155_v28 = vld [vmem:[#allocation5 + $0x60] sm:$0xff]  ;;  %v157_v29 = vld [vmem:[#allocation5 + $0x70] sm:$0xff]  ;;  %v9077_v16 = vsub.s32 2, %v7806_v4 }
  0x6d   :  { %6853 = vmatmul.mubr.msk.f32.vlgmr.msra.gmra.mxu0 %vm217_vm0, %v142_v17  ;;  %387 = vmatprep.subr.mxu0 %v172_v18  ;;  %v148_v30 = vld [vmem:[#allocation5 + $0x28] sm:$0xff]  ;;  %v150_v31 = vld [vmem:[#allocation5 + $0x38] sm:$0xff]  ;;  %v147_v32 = vld [vmem:[#allocation5 + $0x20] sm:$0xff] }
  0x6e   :  { %458 = vmatprep.subr.mxu1 %v174_v19  ;;  %6854 = vmatmul.mubr.msk.f32.vlgmr.msra.gmra.mxu1 %vm217_vm0, %v142_v17  ;;  %v149_v33 = vld [vmem:[#allocation5 + $0x30] sm:$0xff]  ;;  %v7681_v35 = vld [vmem:[#allocation8 + $0x78] sm:$0xff]  ;;  %v7684_v36 = vld [vmem:[#allocation8 + $0x60] sm:$0xff] }
  0x6f   :  { %388 = vmatpush1.msra.mxu0 %v171_v20  ;;  %459 = vmatpush1.msra.mxu1 %v173_v21  ;;  %v7678_v34 = vld [vmem:[#allocation8 + $0x68] sm:$0xff]  ;;  %v7686_v37 = vld [vmem:[#allocation8 + $0x70] sm:$0xff]  ;;  %v7692_v39 = vld [vmem:[#allocation8 + $0x58] sm:$0xff] }
  0x70   :  { %389 = vmatprep.subr.mxu0 %v164_v22  ;;  %460 = vmatprep.subr.mxu1 %v166_v23  ;;  %v7690_v38 = vld [vmem:[#allocation8 + $0x48] sm:$0xff]  ;;  %v7696_v40 = vld [vmem:[#allocation8 + $0x40] sm:$0xff]  ;;  %v7698_v41 = vld [vmem:[#allocation8 + $0x50] sm:$0xff] }
  0x71   :  { %390 = vmatpush1.msra.mxu0 %v163_v24  ;;  %461 = vmatpush1.msra.mxu1 %v165_v25  ;;  %v7702_v42 = vld [vmem:[#allocation8 + $0x28] sm:$0xff]  ;;  %v7704_v43 = vld [vmem:[#allocation8 + $0x38] sm:$0xff]  ;;  %v7708_v44 = vld [vmem:[#allocation8 + $0x20] sm:$0xff]  ;;  %v9073_v25 = vsub.s32 4, %v7806_v4 }
  0x72   :  { %391 = vmatprep.subr.mxu0 %v156_v26  ;;  %462 = vmatprep.subr.mxu1 %v158_v27  ;;  %v7710_v45 = vld [vmem:[#allocation8 + $0x30] sm:$0xff]  ;;  %v7714_v46 = vld [vmem:[#allocation8 + $0x8] sm:$0xff]  ;;  %v7716_v47 = vld [vmem:[#allocation8 + $0x18] sm:$0xff]  ;;  %v9075_v26 = vsub.s32 3, %v7806_v4 }
  0x73   :  { %392 = vmatpush1.msra.mxu0 %v155_v28  ;;  %463 = vmatpush1.msra.mxu1 %v157_v29  ;;  %v7720_v48 = vld [vmem:[#allocation8] sm:$0xff]  ;;  %v7724_v49 = vld [vmem:[#allocation8 + $0x10] sm:$0xff]  ;;  %v7730_v50 = vld [vmem:[#allocation10 + $0x68] sm:$0xff] }
  0x74   :  { %393 = vmatprep.subr.mxu0 %v148_v30  ;;  %464 = vmatprep.subr.mxu1 %v150_v31  ;;  %v7732_v51 = vld [vmem:[#allocation10 + $0x78] sm:$0xff]  ;;  %v7736_v52 = vld [vmem:[#allocation10 + $0x60] sm:$0xff]  ;;  %v7738_v53 = vld [vmem:[#allocation10 + $0x70] sm:$0xff]  ;;  %v9074_v31 = vsub.s32 5, %v7806_v4 }
  0x75   :  { %394 = vmatpush1.msra.mxu0 %v147_v32  ;;  %427 = vmatprep.mubr.f32.mxu0 %v9081_v0  ;;  %v7742_v54 = vld [vmem:[#allocation10 + $0x48] sm:$0xff]  ;;  %v7744_v55 = vld [vmem:[#allocation10 + $0x58] sm:$0xff]  ;;  %v7748_v56 = vld [vmem:[#allocation10 + $0x40] sm:$0xff] }
  0x76   :  { %465 = vmatpush1.msra.mxu1 %v149_v33  ;;  %6855 = vmatmul.mubr.msk.f32.vlgmr.msra.gmra.mxu0 %vm217_vm0, %v142_v17  ;;  %v7750_v57 = vld [vmem:[#allocation10 + $0x50] sm:$0xff]  ;;  %v7754_v58 = vld [vmem:[#allocation10 + $0x28] sm:$0xff]  ;;  %v7756_v59 = vld [vmem:[#allocation10 + $0x38] sm:$0xff] }
  0x77   :  { %498 = vmatprep.mubr.f32.mxu1 %v9081_v0  ;;  %564 = vmatprep.subr.mxu0 %v7678_v34  ;;  %v7760_v60 = vld [vmem:[#allocation10 + $0x20] sm:$0xff]  ;;  %v7762_v61 = vld [vmem:[#allocation10 + $0x30] sm:$0xff]  ;;  %v7766_v62 = vld [vmem:[#allocation10 + $0x8] sm:$0xff] }
  0x78   :  { %635 = vmatprep.subr.mxu1 %v7681_v35  ;;  %6856 = vmatmul.mubr.msk.f32.vlgmr.msra.gmra.mxu1 %vm217_vm0, %v142_v17  ;;  %v7768_v63 = vld [vmem:[#allocation10 + $0x18] sm:$0xff]  ;;  %v7772_v1 = vld [vmem:[#allocation10] sm:$0xff]  ;;  %v7776_v2 = vld [vmem:[#allocation10 + $0x10] sm:$0xff] }
  0x79   :  { %565 = vmatpush1.msra.mxu0 %v7684_v36  ;;  %636 = vmatpush1.msra.mxu1 %v7686_v37  ;;  %v175_v8 = vld [vmem:[#allocation7] sm:$0xff] }
  0x7a   :  { %566 = vmatprep.subr.mxu0 %v7690_v38  ;;  %637 = vmatprep.subr.mxu1 %v7692_v39  ;;  %v180_v13 = vrot.slane %v175_v8, %v9080_v7  ;;  %v184_v15 = vrot.slane %v175_v8, %v9078_v11  ;;  %v188_v22 = vrot.slane %v175_v8, %v9077_v16 }
  0x7b   :  { %567 = vmatpush1.msra.mxu0 %v7696_v40  ;;  %638 = vmatpush1.msra.mxu1 %v7698_v41  ;;  %v196_v33 = vrot.slane %v175_v8, %v9073_v25  ;;  %v192_v3 = vrot.slane %v175_v8, %v9075_v26  ;;  %v9079_v26 = vsub.s32 7, %v7806_v4 }
  0x7c   :  { %568 = vmatprep.subr.mxu0 %v7702_v42  ;;  %639 = vmatprep.subr.mxu1 %v7704_v43 }
  0x7d   :  { %569 = vmatpush1.msra.mxu0 %v7708_v44  ;;  %640 = vmatpush1.msra.mxu1 %v7710_v45 }
  0x7e   :  { %570 = vmatprep.subr.mxu0 %v7714_v46  ;;  %641 = vmatprep.subr.mxu1 %v7716_v47 }
  0x7f   :  { %571 = vmatpush1.msra.mxu0 %v7720_v48  ;;  %604 = vmatprep.mubr.f32.mxu0 %v9081_v0 }
  0x80   :  { %642 = vmatpush1.msra.mxu1 %v7724_v49  ;;  %675 = vmatprep.mubr.f32.mxu1 %v9081_v0 }
  0x81   :  { %605 = vmatmul.mubr.f32.vlgmr.msra.gmra.mxu0 %v9081_v0  ;;  %676 = vmatmul.mubr.f32.vlgmr.msra.gmra.mxu1 %v9081_v0 }
  0x82   :  { %706 = vmatprep.subr.mxu0 %v7730_v50  ;;  %777 = vmatprep.subr.mxu1 %v7732_v51 }
  0x83   :  { %707 = vmatpush1.msra.mxu0 %v7736_v52  ;;  %778 = vmatpush1.msra.mxu1 %v7738_v53 }
  0x84   :  { %708 = vmatprep.subr.mxu0 %v7742_v54  ;;  %779 = vmatprep.subr.mxu1 %v7744_v55 }
  0x85   :  { %709 = vmatpush1.msra.mxu0 %v7748_v56  ;;  %780 = vmatpush1.msra.mxu1 %v7750_v57 }
  0x86   :  { %710 = vmatprep.subr.mxu0 %v7754_v58  ;;  %781 = vmatprep.subr.mxu1 %v7756_v59 }
  0x87   :  { %711 = vmatpush1.msra.mxu0 %v7760_v60  ;;  %782 = vmatpush1.msra.mxu1 %v7762_v61 }
  0x88   :  { %712 = vmatprep.subr.mxu0 %v7766_v62  ;;  %783 = vmatprep.subr.mxu1 %v7768_v63 }
  0x89   :  { %713 = vmatpush1.msra.mxu0 %v7772_v1  ;;  %746 = vmatprep.mubr.f32.mxu0 %v9081_v0 }
  0x8a   :  { %784 = vmatpush1.msra.mxu1 %v7776_v2  ;;  %817 = vmatprep.mubr.f32.mxu1 %v9081_v0 }
  0x8b   :  { %747 = vmatmul.mubr.f32.vlgmr.msra.gmra.mxu0 %v9081_v0  ;;  %818 = vmatmul.mubr.f32.vlgmr.msra.gmra.mxu1 %v9081_v0 }
  0x8c   :  { %907 = vmatprep.subr.mxu0 %v7678_v34  ;;  %978 = vmatprep.subr.mxu1 %v7681_v35 }
  0x8d   :  { %908 = vmatpush1.msra.mxu0 %v7684_v36  ;;  %979 = vmatpush1.msra.mxu1 %v7686_v37 }
  0x8e   :  { %909 = vmatprep.subr.mxu0 %v7690_v38  ;;  %980 = vmatprep.subr.mxu1 %v7692_v39 }
  0x8f   :  { %910 = vmatpush1.msra.mxu0 %v7696_v40  ;;  %981 = vmatpush1.msra.mxu1 %v7698_v41 }
  0x90   :  { %911 = vmatprep.subr.mxu0 %v7702_v42  ;;  %982 = vmatprep.subr.mxu1 %v7704_v43 }
  0x91   :  { %912 = vmatpush1.msra.mxu0 %v7708_v44  ;;  %983 = vmatpush1.msra.mxu1 %v7710_v45 }
  0x92   :  { %913 = vmatprep.subr.mxu0 %v7714_v46  ;;  %984 = vmatprep.subr.mxu1 %v7716_v47 }
  0x93   :  { %914 = vmatpush1.msra.mxu0 %v7720_v48  ;;  %947 = vmatprep.mubr.f32.mxu0 %v9081_v0 }
  0x94   :  { %985 = vmatpush1.msra.mxu1 %v7724_v49  ;;  %1018 = vmatprep.mubr.f32.mxu1 %v9081_v0 }
  0x95   :  { %1053 = vmatprep.subr.mxu0 %v7730_v50  ;;  %1124 = vmatprep.subr.mxu1 %v7732_v51 }
 0x12d   :  { %v287_v5 = vpop.f32.mrf.mxu0 }
 0x12e   :  { %v358_v6 = vpop.f32.mrf.mxu1  ;;  %v7815_v18 = vadd.f32 %v287_v5, %v180_v13  ;;  %v200_v13 = vrot.slane %v175_v8, %v9074_v31 }
 0x12f   :  { %v289_v9 = vpop.f32.mrf.mxu0  ;;  %v7825_v30 = vadd.f32 %v358_v6, %v188_v22 }
 0x130   :  { %v360_v10 = vpop.f32.mrf.mxu1  ;;  %v7817_v21 = vadd.f32 %v289_v9, %v184_v15  ;;  %v9076_v9 = vsub.s32 6, %v7806_v4 }
 0x131   :  { %v7838_v22 = vadd.f32 %v360_v10, %v192_v3 }
 0x136   :  { %v429_v12 = vpop.f32.mrf.mxu0 }
 0x138   :  { %v500_v14 = vpop.f32.mrf.mxu1  ;;  %v431_v17 = vpop.f32.mrf.mxu0 }
 0x13a   :  { %v502_v19 = vpop.f32.mrf.mxu1 }
 0x141   :  { %v606_v20 = vpop.f32.mrf.mxu0  ;;  %v677_v29 = vpop.f32.mrf.mxu1 }
 0x142   :  { %v824_v23 = vadd.f32 %v606_v20, %v7815_v18  ;;  %v826_v5 = vadd.f32 %v677_v29, %v7825_v30  ;;  %v7836_v20 = vadd.f32 %v429_v12, %v196_v33  ;;  %v7842_v29 = vadd.f32 %v431_v17, %v200_v13 }
 0x143   :  { %v608_v24 = vpop.f32.mrf.mxu0  ;;  %v679_v6 = vpop.f32.mrf.mxu1  ;;  %v208_v17 = vrot.slane %v175_v8, %v9079_v26 }
 0x144   :  { %v844_v27 = vmul.f32 0.5, %v824_v23  ;;  %v825_v28 = vadd.f32 %v608_v24, %v7817_v21  ;;  %v204_v24 = vrot.slane %v175_v8, %v9076_v9 }
 0x146   :  { %6935 = vtanh.f32 %v844_v27  ;;  %v848_v32 = vmul.f32 0.5, %v825_v28  ;;  %v7848_v3 = vadd.f32 %v500_v14, %v204_v24 }
 0x148   :  { %6937 = vtanh.f32 %v848_v32  ;;  %v827_v32 = vadd.f32 %v679_v6, %v7838_v22 }
 0x149   :  { %6939 = vtanh.f32 %v826_v5 }
 0x14a   :  { %v853_v5 = vmul.f32 0.5, %v827_v32 }
 0x14b   :  { %v748_v15 = vpop.f32.mrf.mxu0  ;;  %v819_v27 = vpop.f32.mrf.mxu1 }
 0x14c   :  { %v832_v23 = vrot.slane %v748_v15, 1  ;;  %v834_v33 = vrot.slane %v819_v27, 1 }
 0x14d   :  { %v750_v28 = vpop.f32.mrf.mxu0  ;;  %v821_v16 = vpop.f32.mrf.mxu1 }
 0x14e   :  { %v840_v25 = vadd.f32 %v832_v23, %v7836_v20  ;;  %v833_v31 = vrot.slane %v750_v28, 1  ;;  %v842_v6 = vadd.f32 %v834_v33, %v7848_v3  ;;  %v835_v27 = vrot.slane %v821_v16, 1 }
 0x150   :  { %v857_v12 = vmul.f32 0.5, %v840_v25  ;;  %v841_v10 = vadd.f32 %v833_v31, %v7842_v29  ;;  %v7853_v31 = vadd.f32 %v502_v19, %v208_v17 }
 0x152   :  { %6941 = vtanh.f32 %v857_v12  ;;  %v861_v15 = vmul.f32 0.5, %v841_v10  ;;  %v843_v10 = vadd.f32 %v835_v27, %v7853_v31 }
 0x153   :  { %v6936_v9 = vpop.eup %6935 }
 0x154   :  { %v846_v13 = vmul.f32 0.5, %v6936_v9  ;;  %6943 = vtanh.f32 %v861_v15  ;;  %v866_v8 = vmul.f32 0.5, %v843_v10 }
 0x155   :  { %v6938_v23 = vpop.eup %6937  ;;  %6945 = vtanh.f32 %v853_v5 }
 0x156   :  { %v847_v28 = vadd.f32 0.5, %v846_v13  ;;  %v850_v25 = vmul.f32 0.5, %v6938_v23  ;;  %6947 = vtanh.f32 %v842_v6  ;;  %v6940_v24 = vpop.eup %6939 }
 0x158   :  { %v851_v14 = vadd.f32 0.5, %v850_v25  ;;  %v871_v12 = vmul.f32 %v6940_v24, %v847_v28 }
 0x15a   :  { %v870_v32 = vmul.f32 0.0, %v851_v14 }
 0x15c   :  { %v7856_v11 = vadd.f32 %v871_v12, %v870_v32 }
 0x15e   :  { %6949 = vtanh.f32 %v7856_v11 }
 0x15f   :  { %v6942_v9 = vpop.eup %6941  ;;  %6951 = vtanh.f32 %v866_v8 }
 0x160   :  { %v859_v33 = vmul.f32 0.5, %v6942_v9 }
 0x161   :  { %v6944_v15 = vpop.eup %6943 }
 0x162   :  { %v860_v13 = vadd.f32 0.5, %v859_v33  ;;  %v863_v5 = vmul.f32 0.5, %v6944_v15  ;;  %v6946_v16 = vpop.eup %6945 }
 0x163   :  { %v6948_v17 = vpop.eup %6947  ;;  %v855_v6 = vmul.f32 0.5, %v6946_v16 }
 0x164   :  { %v864_v19 = vadd.f32 0.5, %v863_v5  ;;  %v876_v25 = vmul.f32 %v6948_v17, %v860_v13 }
 0x165   :  { %v856_v27 = vadd.f32 0.5, %v855_v6 }
 0x166   :  { %v875_v23 = vmul.f32 0.0, %v864_v19 }
 0x168   :  { %v7859_v28 = vadd.f32 %v876_v25, %v875_v23 }
 0x16a   :  { %6953 = vtanh.f32 %v7859_v28 }
 0x16b   :  { %v6950_v14 = vpop.eup %6949 }
 0x16c   :  { %v7862_v24 = vmul.f32 %v6950_v14, %v856_v27  ;;  %v6952_v32 = vpop.eup %6951 }
 0x16d   :  { %v868_v12 = vmul.f32 0.5, %v6952_v32 }
 0x16e   :  { %6857 = vmatmul.mubr.msk.f32.vlgmr.msra.gmra.mxu0 %vm217_vm0, %v7862_v24  ;;  %6858 = vmatmul.mubr.msk.f32.vlgmr.msra.gmra.mxu1 %vm217_vm0, %v7862_v24 }
 0x16f   :  { %1054 = vmatpush1.msra.mxu0 %v7736_v52  ;;  %1125 = vmatpush1.msra.mxu1 %v7738_v53  ;;  %v869_v10 = vadd.f32 0.5, %v868_v12 }
 0x170   :  { %1055 = vmatprep.subr.mxu0 %v7742_v54  ;;  %1126 = vmatprep.subr.mxu1 %v7744_v55 }
 0x171   :  { %1056 = vmatpush1.msra.mxu0 %v7748_v56  ;;  %1127 = vmatpush1.msra.mxu1 %v7750_v57 }
 0x172   :  { %1057 = vmatprep.subr.mxu0 %v7754_v58  ;;  %1128 = vmatprep.subr.mxu1 %v7756_v59 }
 0x173   :  { %1058 = vmatpush1.msra.mxu0 %v7760_v60  ;;  %1129 = vmatpush1.msra.mxu1 %v7762_v61 }
 0x174   :  { %1059 = vmatprep.subr.mxu0 %v7766_v62  ;;  %1130 = vmatprep.subr.mxu1 %v7768_v63 }
 0x175   :  { %1060 = vmatpush1.msra.mxu0 %v7772_v1  ;;  %1093 = vmatprep.mubr.f32.mxu0 %v9081_v0 }
 0x176   :  { %1131 = vmatpush1.msra.mxu1 %v7776_v2  ;;  %1164 = vmatprep.mubr.f32.mxu1 %v9081_v0 }
 0x177   :  { %v6954_v8 = vpop.eup %6953  ;;  %1273 = vmatprep.subr.mxu0 %v7678_v34  ;;  %1344 = vmatprep.subr.mxu1 %v7681_v35 }
 0x178   :  { %v7886_v9 = vmul.f32 %v6954_v8, %v869_v10 }
 0x17a   :  { %9094 = vst [vmem:[#allocation28_spill] sm:$0xff] %v7886_v9  ;;  %v1026_v33 = vrot.slane %v7886_v9, 7 }
 0x17c   :  { %6859 = vmatmul.mubr.msk.f32.vlgmr.msra.gmra.mxu0 %vm217_vm0, %v1026_v33  ;;  %6860 = vmatmul.mubr.msk.f32.vlgmr.msra.gmra.mxu1 %vm217_vm0, %v1026_v33 }
 0x17d   :  { %1274 = vmatpush1.msra.mxu0 %v7684_v36  ;;  %1345 = vmatpush1.msra.mxu1 %v7686_v37 }
 0x17e   :  { %1275 = vmatprep.subr.mxu0 %v7690_v38  ;;  %1346 = vmatprep.subr.mxu1 %v7692_v39 }
 0x17f   :  { %1276 = vmatpush1.msra.mxu0 %v7696_v40  ;;  %1347 = vmatpush1.msra.mxu1 %v7698_v41 }
 0x180   :  { %1277 = vmatprep.subr.mxu0 %v7702_v42  ;;  %1348 = vmatprep.subr.mxu1 %v7704_v43 }
 0x181   :  { %1278 = vmatpush1.msra.mxu0 %v7708_v44  ;;  %1349 = vmatpush1.msra.mxu1 %v7710_v45 }
 0x182   :  { %1279 = vmatprep.subr.mxu0 %v7714_v46  ;;  %1350 = vmatprep.subr.mxu1 %v7716_v47 }
 0x183   :  { %1280 = vmatpush1.msra.mxu0 %v7720_v48  ;;  %1313 = vmatprep.mubr.f32.mxu0 %v9081_v0 }
 0x184   :  { %1351 = vmatpush1.msra.mxu1 %v7724_v49  ;;  %1384 = vmatprep.mubr.f32.mxu1 %v9081_v0 }
 0x185   :  { %1419 = vmatprep.subr.mxu0 %v7730_v50  ;;  %1490 = vmatprep.subr.mxu1 %v7732_v51 }
 0x22e   :  { %v949_v15 = vpop.f32.mrf.mxu0  ;;  %v1020_v5 = vpop.f32.mrf.mxu1 }
 0x22f   :  { %v1175_v13 = vrot.slane %v949_v15, 7  ;;  %v1177_v23 = vrot.slane %v1020_v5, 7 }
 0x230   :  { %v951_v16 = vpop.f32.mrf.mxu0  ;;  %v1022_v14 = vpop.f32.mrf.mxu1 }
 0x231   :  { %v1183_v19 = vadd.f32 %v1175_v13, %v7815_v18  ;;  %v1176_v17 = vrot.slane %v951_v16, 7  ;;  %v1185_v32 = vadd.f32 %v1177_v23, %v7825_v30  ;;  %v1178_v12 = vrot.slane %v1022_v14, 7 }
 0x233   :  { %v1203_v6 = vmul.f32 0.5, %v1183_v19  ;;  %v1184_v25 = vadd.f32 %v1176_v17, %v7817_v21  ;;  %v1186_v10 = vadd.f32 %v1178_v12, %v7838_v22 }
 0x235   :  { %6955 = vtanh.f32 %v1203_v6  ;;  %v1207_v27 = vmul.f32 0.5, %v1184_v25  ;;  %v1212_v5 = vmul.f32 0.5, %v1186_v10 }
 0x237   :  { %6957 = vtanh.f32 %v1207_v27 }
 0x238   :  { %6959 = vtanh.f32 %v1185_v32 }
 0x23c   :  { %v1095_v8 = vpop.f32.mrf.mxu0  ;;  %v1166_v15 = vpop.f32.mrf.mxu1 }
 0x23d   :  { %v1191_v33 = vrot.slane %v1095_v8, 2  ;;  %v1193_v17 = vrot.slane %v1166_v15, 2 }
 0x23e   :  { %v1097_v26 = vpop.f32.mrf.mxu0  ;;  %v1168_v14 = vpop.f32.mrf.mxu1 }
 0x23f   :  { %v1199_v13 = vadd.f32 %v1191_v33, %v7836_v20  ;;  %v1192_v16 = vrot.slane %v1097_v26, 2  ;;  %v1201_v8 = vadd.f32 %v1193_v17, %v7848_v3  ;;  %v1230_v33 = vrot.slane %v7856_v11, 7 }
 0x240   :  { %v1194_v10 = vrot.slane %v1168_v14, 2 }
 0x241   :  { %v1216_v19 = vmul.f32 0.5, %v1199_v13  ;;  %v1200_v6 = vadd.f32 %v1192_v16, %v7842_v29 }
 0x242   :  { %v6956_v25 = vpop.eup %6955 }
 0x243   :  { %v1205_v7 = vmul.f32 0.5, %v6956_v25  ;;  %6961 = vtanh.f32 %v1216_v19  ;;  %v1220_v23 = vmul.f32 0.5, %v1200_v6  ;;  %v1202_v19 = vadd.f32 %v1194_v10, %v7853_v31 }
 0x244   :  { %v6958_v27 = vpop.eup %6957  ;;  %6963 = vtanh.f32 %v1212_v5 }
 0x245   :  { %v1206_v32 = vadd.f32 0.5, %v1205_v7  ;;  %v1209_v12 = vmul.f32 0.5, %v6958_v27  ;;  %6965 = vtanh.f32 %v1220_v23  ;;  %v6960_v13 = vpop.eup %6959  ;;  %v1225_v5 = vmul.f32 0.5, %v1202_v19 }
 0x246   :  { %6967 = vtanh.f32 %v1201_v8 }
 0x247   :  { %v1210_v26 = vadd.f32 0.5, %v1209_v12  ;;  %v1233_v0 = vmul.f32 %v6960_v13, %v1206_v32  ;;  %v1238_v12 = vrot.slane %v7859_v28, 1 }
 0x249   :  { %v1232_v15 = vmul.f32 %v1230_v33, %v1210_v26 }
 0x24b   :  { %v7917_v16 = vadd.f32 %v1233_v0, %v1232_v15 }
 0x24d   :  { %6969 = vtanh.f32 %v7917_v16 }
 0x24e   :  { %6971 = vtanh.f32 %v1225_v5  ;;  %v9095_v5 = vmov 0.0  }
 0x250   :  { %v6962_v7 = vpop.eup %6961 }
 0x251   :  { %v6964_v6 = vpop.eup %6963  ;;  %v1218_v25 = vmul.f32 0.5, %v6962_v7 }
 0x252   :  { %v6966_v17 = vpop.eup %6965  ;;  %v1214_v11 = vmul.f32 0.5, %v6964_v6 }
 0x253   :  { %v1219_v23 = vadd.f32 0.5, %v1218_v25  ;;  %v1222_v27 = vmul.f32 0.5, %v6966_v17  ;;  %v6968_v32 = vpop.eup %6967 }
 0x254   :  { %v1215_v33 = vadd.f32 0.5, %v1214_v11 }
 0x255   :  { %v1223_v14 = vadd.f32 0.5, %v1222_v27  ;;  %v1241_v0 = vmul.f32 %v6968_v32, %v1219_v23 }
 0x257   :  { %v1240_v8 = vmul.f32 %v1238_v12, %v1223_v14 }
 0x259   :  { %v7922_v26 = vadd.f32 %v1241_v0, %v1240_v8 }
 0x25a   :  { %v6970_v10 = vpop.eup %6969 }
 0x25b   :  { %v7924_v13 = vmul.f32 %v6970_v10, %v1215_v33  ;;  %6973 = vtanh.f32 %v7922_v26  ;;  %v6972_v19 = vpop.eup %6971 }
 0x25c   :  { %v1227_v28 = vmul.f32 0.5, %v6972_v19 }
 0x25d   :  { %v1246_v15 = vrot.slane %v7924_v13, 1 }
 0x25e   :  { %v1228_v7 = vadd.f32 0.5, %v1227_v28 }
 0x25f   :  { %6861 = vmatmul.mubr.msk.f32.vlgmr.msra.gmra.mxu0 %vm217_vm0, %v1246_v15  ;;  %6862 = vmatmul.mubr.msk.f32.vlgmr.msra.gmra.mxu1 %vm217_vm0, %v1246_v15 }
 0x260   :  { %1420 = vmatpush1.msra.mxu0 %v7736_v52  ;;  %1491 = vmatpush1.msra.mxu1 %v7738_v53 }
 0x261   :  { %1421 = vmatprep.subr.mxu0 %v7742_v54  ;;  %1492 = vmatprep.subr.mxu1 %v7744_v55 }
 0x262   :  { %1422 = vmatpush1.msra.mxu0 %v7748_v56  ;;  %1493 = vmatpush1.msra.mxu1 %v7750_v57 }
 0x263   :  { %1423 = vmatprep.subr.mxu0 %v7754_v58  ;;  %1494 = vmatprep.subr.mxu1 %v7756_v59 }
 0x264   :  { %1424 = vmatpush1.msra.mxu0 %v7760_v60  ;;  %1495 = vmatpush1.msra.mxu1 %v7762_v61 }
 0x265   :  { %1425 = vmatprep.subr.mxu0 %v7766_v62  ;;  %1496 = vmatprep.subr.mxu1 %v7768_v63 }
 0x266   :  { %1426 = vmatpush1.msra.mxu0 %v7772_v1  ;;  %1459 = vmatprep.mubr.f32.mxu0 %v9095_v5 }
 0x267   :  { %1497 = vmatpush1.msra.mxu1 %v7776_v2  ;;  %1530 = vmatprep.mubr.f32.mxu1 %v9095_v5 }
 0x268   :  { %v6974_v6 = vpop.eup %6973  ;;  %1639 = vmatprep.subr.mxu0 %v7678_v34  ;;  %1710 = vmatprep.subr.mxu1 %v7681_v35 }
 0x269   :  { %v7948_v25 = vmul.f32 %v6974_v6, %v1228_v7 }
 0x26b   :  { %9096 = vst [vmem:[#allocation29_spill] sm:$0xff] %v7948_v25  ;;  %v1392_v17 = vrot.slane %v7948_v25, 6 }
 0x26d   :  { %6863 = vmatmul.mubr.msk.f32.vlgmr.msra.gmra.mxu0 %vm217_vm0, %v1392_v17  ;;  %6864 = vmatmul.mubr.msk.f32.vlgmr.msra.gmra.mxu1 %vm217_vm0, %v1392_v17 }
 0x26e   :  { %1640 = vmatpush1.msra.mxu0 %v7684_v36  ;;  %1711 = vmatpush1.msra.mxu1 %v7686_v37 }
 0x26f   :  { %1641 = vmatprep.subr.mxu0 %v7690_v38  ;;  %1712 = vmatprep.subr.mxu1 %v7692_v39 }
 0x270   :  { %1642 = vmatpush1.msra.mxu0 %v7696_v40  ;;  %1713 = vmatpush1.msra.mxu1 %v7698_v41 }
 0x271   :  { %1643 = vmatprep.subr.mxu0 %v7702_v42  ;;  %1714 = vmatprep.subr.mxu1 %v7704_v43 }
 0x272   :  { %1644 = vmatpush1.msra.mxu0 %v7708_v44  ;;  %1715 = vmatpush1.msra.mxu1 %v7710_v45 }
 0x273   :  { %1645 = vmatprep.subr.mxu0 %v7714_v46  ;;  %1716 = vmatprep.subr.mxu1 %v7716_v47 }
 0x274   :  { %1646 = vmatpush1.msra.mxu0 %v7720_v48  ;;  %1679 = vmatprep.mubr.f32.mxu0 %v9095_v5 }
 0x275   :  { %1717 = vmatpush1.msra.mxu1 %v7724_v49  ;;  %1750 = vmatprep.mubr.f32.mxu1 %v9095_v5 }
 0x276   :  { %1785 = vmatprep.subr.mxu0 %v7730_v50  ;;  %1856 = vmatprep.subr.mxu1 %v7732_v51 }
 0x31f   :  { %v1315_v23 = vpop.f32.mrf.mxu0  ;;  %v1386_v11 = vpop.f32.mrf.mxu1 }
 0x320   :  { %v1541_v27 = vrot.slane %v1315_v23, 6  ;;  %v1543_v0 = vrot.slane %v1386_v11, 6 }
 0x321   :  { %v1317_v14 = vpop.f32.mrf.mxu0  ;;  %v1388_v15 = vpop.f32.mrf.mxu1 }
 0x322   :  { %v1549_v12 = vadd.f32 %v1541_v27, %v7815_v18  ;;  %v1542_v32 = vrot.slane %v1317_v14, 6  ;;  %v1551_v19 = vadd.f32 %v1543_v0, %v7825_v30  ;;  %v1544_v28 = vrot.slane %v1388_v15, 6 }
 0x324   :  { %v1569_v8 = vmul.f32 0.5, %v1549_v12  ;;  %v1550_v33 = vadd.f32 %v1542_v32, %v7817_v21  ;;  %v1552_v7 = vadd.f32 %v1544_v28, %v7838_v22 }
 0x326   :  { %6975 = vtanh.f32 %v1569_v8  ;;  %v1573_v10 = vmul.f32 0.5, %v1550_v33  ;;  %v1578_v11 = vmul.f32 0.5, %v1552_v7 }
 0x328   :  { %6977 = vtanh.f32 %v1573_v10 }
 0x329   :  { %6979 = vtanh.f32 %v1551_v19 }
 0x32d   :  { %v1461_v6 = vpop.f32.mrf.mxu0  ;;  %v1532_v23 = vpop.f32.mrf.mxu1 }
 0x32e   :  { %v1557_v17 = vrot.slane %v1461_v6, 3  ;;  %v1559_v32 = vrot.slane %v1532_v23, 3 }
 0x32f   :  { %v1463_v4 = vpop.f32.mrf.mxu0  ;;  %v1534_v15 = vpop.f32.mrf.mxu1 }
 0x330   :  { %v1565_v27 = vadd.f32 %v1557_v17, %v7836_v20  ;;  %v1558_v14 = vrot.slane %v1463_v4, 3  ;;  %v1567_v6 = vadd.f32 %v1559_v32, %v7848_v3  ;;  %v1596_v4 = vrot.slane %v7917_v16, 7 }
 0x331   :  { %v1560_v7 = vrot.slane %v1534_v15, 3 }
 0x332   :  { %v1582_v12 = vmul.f32 0.5, %v1565_v27  ;;  %v1566_v8 = vadd.f32 %v1558_v14, %v7842_v29 }
 0x333   :  { %v6976_v33 = vpop.eup %6975 }
 0x334   :  { %v1571_v9 = vmul.f32 0.5, %v6976_v33  ;;  %6981 = vtanh.f32 %v1582_v12  ;;  %v1586_v0 = vmul.f32 0.5, %v1566_v8  ;;  %v1568_v12 = vadd.f32 %v1560_v7, %v7853_v31 }
 0x335   :  { %v6978_v10 = vpop.eup %6977  ;;  %6983 = vtanh.f32 %v1578_v11 }
 0x336   :  { %v1572_v19 = vadd.f32 0.5, %v1571_v9  ;;  %v1575_v28 = vmul.f32 0.5, %v6978_v10  ;;  %6985 = vtanh.f32 %v1586_v0  ;;  %v6980_v17 = vpop.eup %6979  ;;  %v1591_v11 = vmul.f32 0.5, %v1568_v12 }
 0x337   :  { %6987 = vtanh.f32 %v1567_v6 }
 0x338   :  { %v1576_v25 = vadd.f32 0.5, %v1575_v28  ;;  %v1599_v27 = vmul.f32 %v6980_v17, %v1572_v19 }
 0x33a   :  { %v1598_v23 = vmul.f32 %v1596_v4, %v1576_v25  ;;  %v1604_v25 = vrot.slane %v7922_v26, 1 }
 0x33c   :  { %v7979_v14 = vadd.f32 %v1599_v27, %v1598_v23  ;;  %v3438_v27 = vsel %vm3437_vm1, %v7862_v24, %v7924_v13 }
 0x33e   :  { %6989 = vtanh.f32 %v7979_v14 }
 0x33f   :  { %6991 = vtanh.f32 %v1591_v11 }
 0x341   :  { %v6982_v9 = vpop.eup %6981 }
 0x342   :  { %v6984_v8 = vpop.eup %6983  ;;  %v1584_v33 = vmul.f32 0.5, %v6982_v9 }
 0x343   :  { %v6986_v32 = vpop.eup %6985  ;;  %v1580_v16 = vmul.f32 0.5, %v6984_v8 }
 0x344   :  { %v1585_v0 = vadd.f32 0.5, %v1584_v33  ;;  %v1588_v10 = vmul.f32 0.5, %v6986_v32  ;;  %v6988_v19 = vpop.eup %6987 }
 0x345   :  { %v1581_v4 = vadd.f32 0.5, %v1580_v16 }
 0x346   :  { %v1589_v15 = vadd.f32 0.5, %v1588_v10  ;;  %v1607_v6 = vmul.f32 %v6988_v19, %v1585_v0 }
 0x348   :  { %v1606_v28 = vmul.f32 %v1604_v25, %v1589_v15 }
 0x34a   :  { %v7984_v7 = vadd.f32 %v1607_v6, %v1606_v28 }
 0x34b   :  { %v6990_v17 = vpop.eup %6989 }
 0x34c   :  { %v1602_v23 = vmul.f32 %v6990_v17, %v1581_v4  ;;  %6993 = vtanh.f32 %v7984_v7  ;;  %v6992_v26 = vpop.eup %6991 }
 0x34d   :  { %v1593_v24 = vmul.f32 0.5, %v6992_v26 }
 0x34e   :  { %v1612_v12 = vrot.slane %v1602_v23, 2  ;;  %v7991_v11 = vsel %vm3439_vm2, %v3438_v27, %v1602_v23 }
 0x34f   :  { %v1594_v13 = vadd.f32 0.5, %v1593_v24  ;;  %v1962_v24 = vrot.slane %v7979_v14, 7 }
 0x350   :  { %6865 = vmatmul.mubr.msk.f32.vlgmr.msra.gmra.mxu0 %vm217_vm0, %v1612_v12  ;;  %6866 = vmatmul.mubr.msk.f32.vlgmr.msra.gmra.mxu1 %vm217_vm0, %v1612_v12 }
 0x351   :  { %1786 = vmatpush1.msra.mxu0 %v7736_v52  ;;  %1857 = vmatpush1.msra.mxu1 %v7738_v53 }
 0x352   :  { %1787 = vmatprep.subr.mxu0 %v7742_v54  ;;  %1858 = vmatprep.subr.mxu1 %v7744_v55 }
 0x353   :  { %1788 = vmatpush1.msra.mxu0 %v7748_v56  ;;  %1859 = vmatpush1.msra.mxu1 %v7750_v57 }
 0x354   :  { %1789 = vmatprep.subr.mxu0 %v7754_v58  ;;  %1860 = vmatprep.subr.mxu1 %v7756_v59 }
 0x355   :  { %1790 = vmatpush1.msra.mxu0 %v7760_v60  ;;  %1861 = vmatpush1.msra.mxu1 %v7762_v61 }
 0x356   :  { %1791 = vmatprep.subr.mxu0 %v7766_v62  ;;  %1862 = vmatprep.subr.mxu1 %v7768_v63 }
 0x357   :  { %1792 = vmatpush1.msra.mxu0 %v7772_v1  ;;  %1825 = vmatprep.mubr.f32.mxu0 %v9095_v5 }
 0x358   :  { %1863 = vmatpush1.msra.mxu1 %v7776_v2  ;;  %1896 = vmatprep.mubr.f32.mxu1 %v9095_v5 }
 0x359   :  { %v6994_v9 = vpop.eup %6993  ;;  %2005 = vmatprep.subr.mxu0 %v7678_v34  ;;  %2076 = vmatprep.subr.mxu1 %v7681_v35 }
 0x35a   :  { %v8013_v8 = vmul.f32 %v6994_v9, %v1594_v13 }
 0x35c   :  { %9097 = vst [vmem:[#allocation30_spill] sm:$0xff] %v8013_v8  ;;  %v1758_v33 = vrot.slane %v8013_v8, 5 }
 0x35e   :  { %6867 = vmatmul.mubr.msk.f32.vlgmr.msra.gmra.mxu0 %vm217_vm0, %v1758_v33  ;;  %6868 = vmatmul.mubr.msk.f32.vlgmr.msra.gmra.mxu1 %vm217_vm0, %v1758_v33 }
 0x35f   :  { %2006 = vmatpush1.msra.mxu0 %v7684_v36  ;;  %2077 = vmatpush1.msra.mxu1 %v7686_v37 }
 0x360   :  { %2007 = vmatprep.subr.mxu0 %v7690_v38  ;;  %2078 = vmatprep.subr.mxu1 %v7692_v39 }
 0x361   :  { %2008 = vmatpush1.msra.mxu0 %v7696_v40  ;;  %2079 = vmatpush1.msra.mxu1 %v7698_v41 }
 0x362   :  { %2009 = vmatprep.subr.mxu0 %v7702_v42  ;;  %2080 = vmatprep.subr.mxu1 %v7704_v43 }
 0x363   :  { %2010 = vmatpush1.msra.mxu0 %v7708_v44  ;;  %2081 = vmatpush1.msra.mxu1 %v7710_v45 }
 0x364   :  { %2011 = vmatprep.subr.mxu0 %v7714_v46  ;;  %2082 = vmatprep.subr.mxu1 %v7716_v47 }
 0x365   :  { %2012 = vmatpush1.msra.mxu0 %v7720_v48  ;;  %2045 = vmatprep.mubr.f32.mxu0 %v9095_v5 }
 0x366   :  { %2083 = vmatpush1.msra.mxu1 %v7724_v49  ;;  %2116 = vmatprep.mubr.f32.mxu1 %v9095_v5 }
 0x367   :  { %2151 = vmatprep.subr.mxu0 %v7730_v50  ;;  %2222 = vmatprep.subr.mxu1 %v7732_v51 }
 0x410   :  { %v1681_v34 = vpop.f32.mrf.mxu0  ;;  %v1752_v36 = vpop.f32.mrf.mxu1 }
 0x411   :  { %v1907_v35 = vrot.slane %v1681_v34, 5  ;;  %v1909_v41 = vrot.slane %v1752_v36, 5 }
 0x412   :  { %v1683_v37 = vpop.f32.mrf.mxu0  ;;  %v1754_v44 = vpop.f32.mrf.mxu1 }
 0x413   :  { %v1915_v38 = vadd.f32 %v1907_v35, %v7815_v18  ;;  %v1908_v39 = vrot.slane %v1683_v37, 5  ;;  %v1917_v45 = vadd.f32 %v1909_v41, %v7825_v30  ;;  %v1910_v46 = vrot.slane %v1754_v44, 5 }
 0x415   :  { %v1935_v40 = vmul.f32 0.5, %v1915_v38  ;;  %v1916_v42 = vadd.f32 %v1908_v39, %v7817_v21  ;;  %v1918_v47 = vadd.f32 %v1910_v46, %v7838_v22 }
 0x417   :  { %6995 = vtanh.f32 %v1935_v40  ;;  %v1939_v43 = vmul.f32 0.5, %v1916_v42  ;;  %v1944_v10 = vmul.f32 0.5, %v1918_v47 }
 0x419   :  { %6997 = vtanh.f32 %v1939_v43 }
 0x41a   :  { %6999 = vtanh.f32 %v1917_v45  ;;  %v1970_v45 = vrot.slane %v7984_v7, 1 }
 0x41e   :  { %v1827_v48 = vpop.f32.mrf.mxu0  ;;  %v1898_v50 = vpop.f32.mrf.mxu1 }
 0x41f   :  { %v1923_v49 = vrot.slane %v1827_v48, 4  ;;  %v1925_v15 = vrot.slane %v1898_v50, 4 }
 0x420   :  { %v1829_v51 = vpop.f32.mrf.mxu0  ;;  %v1900_v17 = vpop.f32.mrf.mxu1 }
 0x421   :  { %v1931_v32 = vadd.f32 %v1923_v49, %v7836_v20  ;;  %v1924_v0 = vrot.slane %v1829_v51, 4  ;;  %v1933_v12 = vadd.f32 %v1925_v15, %v7848_v3  ;;  %v1926_v13 = vrot.slane %v1900_v17, 4  ;;  %v8112_v15 = vld [vmem:[#allocation8 + $0x30] sm:$0xff]  ;;  %v8132_v17 = vld [vmem:[#allocation10 + $0x78] sm:$0xff] }
 0x423   :  { %v1948_v16 = vmul.f32 0.5, %v1931_v32  ;;  %v1932_v25 = vadd.f32 %v1924_v0, %v7842_v29  ;;  %v1934_v36 = vadd.f32 %v1926_v13, %v7853_v31 }
 0x424   :  { %v6996_v19 = vpop.eup %6995 }
 0x425   :  { %v1937_v28 = vmul.f32 0.5, %v6996_v19  ;;  %7001 = vtanh.f32 %v1948_v16  ;;  %v1952_v6 = vmul.f32 0.5, %v1932_v25  ;;  %v1957_v37 = vmul.f32 0.5, %v1934_v36  ;;  %v8115_v25 = vld [vmem:[#allocation8 + $0x8] sm:$0xff]  ;;  %v8118_v19 = vld [vmem:[#allocation8 + $0x18] sm:$0xff] }
 0x426   :  { %v6998_v4 = vpop.eup %6997  ;;  %7003 = vtanh.f32 %v1944_v10 }
 0x427   :  { %v1938_v23 = vadd.f32 0.5, %v1937_v28  ;;  %v1941_v27 = vmul.f32 0.5, %v6998_v4  ;;  %7005 = vtanh.f32 %v1952_v6  ;;  %v7000_v9 = vpop.eup %6999  ;;  %v8121_v28 = vld [vmem:[#allocation8] sm:$0xff]  ;;  %v8125_v6 = vld [vmem:[#allocation8 + $0x10] sm:$0xff]  ;;  %v8129_v4 = vld [vmem:[#allocation10 + $0x68] sm:$0xff] }
 0x428   :  { %7007 = vtanh.f32 %v1933_v12 }
 0x429   :  { %v1942_v26 = vadd.f32 0.5, %v1941_v27  ;;  %v1965_v34 = vmul.f32 %v7000_v9, %v1938_v23 }
 0x42b   :  { %v1964_v33 = vmul.f32 %v1962_v24, %v1942_v26 }
 0x42d   :  { %v8044_v35 = vadd.f32 %v1965_v34, %v1964_v33 }
 0x42f   :  { %7009 = vtanh.f32 %v8044_v35 }
 0x430   :  { %7011 = vtanh.f32 %v1957_v37 }
 0x432   :  { %v7002_v38 = vpop.eup %7001 }
 0x433   :  { %v7004_v39 = vpop.eup %7003  ;;  %v1950_v40 = vmul.f32 0.5, %v7002_v38 }
 0x434   :  { %v7006_v41 = vpop.eup %7005  ;;  %v1946_v14 = vmul.f32 0.5, %v7004_v39 }
 0x435   :  { %v1951_v42 = vadd.f32 0.5, %v1950_v40  ;;  %v1954_v43 = vmul.f32 0.5, %v7006_v41  ;;  %v7008_v46 = vpop.eup %7007 }
 0x436   :  { %v1947_v49 = vadd.f32 0.5, %v1946_v14 }
 0x437   :  { %v1955_v44 = vadd.f32 0.5, %v1954_v43  ;;  %v1973_v48 = vmul.f32 %v7008_v46, %v1951_v42 }
 0x439   :  { %v1972_v47 = vmul.f32 %v1970_v45, %v1955_v44 }
 0x43b   :  { %v8049_v50 = vadd.f32 %v1973_v48, %v1972_v47 }
 0x43c   :  { %v7010_v51 = vpop.eup %7009 }
 0x43d   :  { %v1968_v32 = vmul.f32 %v7010_v51, %v1947_v49  ;;  %7013 = vtanh.f32 %v8049_v50  ;;  %v7012_v7 = vpop.eup %7011 }
 0x43e   :  { %v1959_v16 = vmul.f32 0.5, %v7012_v7 }
 0x43f   :  { %v1978_v0 = vrot.slane %v1968_v32, 3  ;;  %v8054_v10 = vsel %vm3441_vm3, %v7991_v11, %v1968_v32  ;;  %v8109_v11 = vld [vmem:[#allocation8 + $0x20] sm:$0xff] }
 0x441   :  { %6869 = vmatmul.mubr.msk.f32.vlgmr.msra.gmra.mxu0 %vm217_vm0, %v1978_v0  ;;  %6870 = vmatmul.mubr.msk.f32.vlgmr.msra.gmra.mxu1 %vm217_vm0, %v1978_v0 }
 0x442   :  { %2152 = vmatpush1.msra.mxu0 %v7736_v52  ;;  %2223 = vmatpush1.msra.mxu1 %v7738_v53  ;;  %v1960_v52 = vadd.f32 0.5, %v1959_v16 }
 0x443   :  { %2153 = vmatprep.subr.mxu0 %v7742_v54  ;;  %2224 = vmatprep.subr.mxu1 %v7744_v55  ;;  %v8074_v54 = vld [vmem:[#allocation8 + $0x68] sm:$0xff]  ;;  %v8077_v55 = vld [vmem:[#allocation8 + $0x78] sm:$0xff] }
 0x444   :  { %2154 = vmatpush1.msra.mxu0 %v7748_v56  ;;  %2225 = vmatpush1.msra.mxu1 %v7750_v57 }
 0x445   :  { %2155 = vmatprep.subr.mxu0 %v7754_v58  ;;  %2226 = vmatprep.subr.mxu1 %v7756_v59  ;;  %v8085_v58 = vld [vmem:[#allocation8 + $0x60] sm:$0xff]  ;;  %v8088_v59 = vld [vmem:[#allocation8 + $0x70] sm:$0xff] }
 0x446   :  { %2156 = vmatpush1.msra.mxu0 %v7760_v60  ;;  %2227 = vmatpush1.msra.mxu1 %v7762_v61  ;;  %v8091_v60 = vld [vmem:[#allocation8 + $0x48] sm:$0xff]  ;;  %v8094_v61 = vld [vmem:[#allocation8 + $0x58] sm:$0xff] }
 0x447   :  { %2157 = vmatprep.subr.mxu0 %v7766_v62  ;;  %2228 = vmatprep.subr.mxu1 %v7768_v63  ;;  %v8097_v62 = vld [vmem:[#allocation8 + $0x40] sm:$0xff]  ;;  %v8100_v63 = vld [vmem:[#allocation8 + $0x50] sm:$0xff] }
 0x448   :  { %2158 = vmatpush1.msra.mxu0 %v7772_v1  ;;  %2191 = vmatprep.mubr.f32.mxu0 %v9095_v5  ;;  %v8103_v1 = vld [vmem:[#allocation8 + $0x28] sm:$0xff] }
 0x449   :  { %2229 = vmatpush1.msra.mxu1 %v7776_v2  ;;  %2262 = vmatprep.mubr.f32.mxu1 %v9095_v5  ;;  %v8106_v2 = vld [vmem:[#allocation8 + $0x38] sm:$0xff] }
 0x44a   :  { %v7014_v53 = vpop.eup %7013  ;;  %2371 = vmatprep.subr.mxu0 %v8074_v54  ;;  %2442 = vmatprep.subr.mxu1 %v8077_v55 }
 0x44b   :  { %v8080_v56 = vmul.f32 %v7014_v53, %v1960_v52 }
 0x44d   :  { %9098 = vst [vmem:[#allocation31_spill] sm:$0xff] %v8080_v56  ;;  %v2124_v57 = vrot.slane %v8080_v56, 4 }
 0x44f   :  { %6871 = vmatmul.mubr.msk.f32.vlgmr.msra.gmra.mxu0 %vm217_vm0, %v2124_v57  ;;  %6872 = vmatmul.mubr.msk.f32.vlgmr.msra.gmra.mxu1 %vm217_vm0, %v2124_v57 }
 0x450   :  { %2372 = vmatpush1.msra.mxu0 %v8085_v58  ;;  %2443 = vmatpush1.msra.mxu1 %v8088_v59 }
 0x451   :  { %2373 = vmatprep.subr.mxu0 %v8091_v60  ;;  %2444 = vmatprep.subr.mxu1 %v8094_v61 }
 0x452   :  { %2374 = vmatpush1.msra.mxu0 %v8097_v62  ;;  %2445 = vmatpush1.msra.mxu1 %v8100_v63 }
 0x453   :  { %2375 = vmatprep.subr.mxu0 %v8103_v1  ;;  %2446 = vmatprep.subr.mxu1 %v8106_v2 }
 0x454   :  { %2376 = vmatpush1.msra.mxu0 %v8109_v11  ;;  %2447 = vmatpush1.msra.mxu1 %v8112_v15 }
 0x455   :  { %2377 = vmatprep.subr.mxu0 %v8115_v25  ;;  %2448 = vmatprep.subr.mxu1 %v8118_v19 }
 0x456   :  { %2378 = vmatpush1.msra.mxu0 %v8121_v28  ;;  %2411 = vmatprep.mubr.f32.mxu0 %v9095_v5 }
 0x457   :  { %2449 = vmatpush1.msra.mxu1 %v8125_v6  ;;  %2482 = vmatprep.mubr.f32.mxu1 %v9095_v5 }
 0x458   :  { %2517 = vmatprep.subr.mxu0 %v8129_v4  ;;  %2588 = vmatprep.subr.mxu1 %v8132_v17 }
 0x501   :  { %v2047_v23 = vpop.f32.mrf.mxu0  ;;  %v2118_v12 = vpop.f32.mrf.mxu1 }
 0x502   :  { %v2273_v27 = vrot.slane %v2047_v23, 4  ;;  %v2275_v33 = vrot.slane %v2118_v12, 4 }
 0x503   :  { %v2049_v26 = vpop.f32.mrf.mxu0  ;;  %v2120_v37 = vpop.f32.mrf.mxu1 }
 0x504   :  { %v2281_v24 = vadd.f32 %v2273_v27, %v7815_v18  ;;  %v2274_v13 = vrot.slane %v2049_v26, 4  ;;  %v2283_v38 = vadd.f32 %v2275_v33, %v7825_v30  ;;  %v2276_v39 = vrot.slane %v2120_v37, 4 }
 0x505   :  { %v2328_v27 = vrot.slane %v8044_v35, 7 }
 0x506   :  { %v2301_v9 = vmul.f32 0.5, %v2281_v24  ;;  %v2282_v34 = vadd.f32 %v2274_v13, %v7817_v21  ;;  %v2284_v40 = vadd.f32 %v2276_v39, %v7838_v22 }
 0x508   :  { %7015 = vtanh.f32 %v2301_v9  ;;  %v2305_v36 = vmul.f32 0.5, %v2282_v34  ;;  %v2310_v46 = vmul.f32 0.5, %v2284_v40 }
 0x50a   :  { %7017 = vtanh.f32 %v2305_v36 }
 0x50b   :  { %7019 = vtanh.f32 %v2283_v38 }
 0x50f   :  { %v2193_v41 = vpop.f32.mrf.mxu0  ;;  %v2264_v43 = vpop.f32.mrf.mxu1 }
 0x510   :  { %v2289_v42 = vrot.slane %v2193_v41, 5  ;;  %v2291_v48 = vrot.slane %v2264_v43, 5  ;;  %v2336_v43 = vrot.slane %v8049_v50, 1 }
 0x511   :  { %v2195_v14 = vpop.f32.mrf.mxu0  ;;  %v2266_v16 = vpop.f32.mrf.mxu1 }
 0x512   :  { %v2297_v44 = vadd.f32 %v2289_v42, %v7836_v20  ;;  %v2290_v45 = vrot.slane %v2195_v14, 5  ;;  %v2299_v57 = vadd.f32 %v2291_v48, %v7848_v3  ;;  %v2292_v12 = vrot.slane %v2266_v16, 5  ;;  %v8163_v16 = vld [vmem:[#allocation10 + $0x48] sm:$0xff] }
 0x514   :  { %v2314_v47 = vmul.f32 0.5, %v2297_v44  ;;  %v2298_v49 = vadd.f32 %v2290_v45, %v7842_v29  ;;  %v2300_v33 = vadd.f32 %v2292_v12, %v7853_v31  ;;  %v8181_v12 = vld [vmem:[#allocation10 + $0x20] sm:$0xff] }
 0x515   :  { %v7016_v51 = vpop.eup %7015 }
 0x516   :  { %v2303_v32 = vmul.f32 0.5, %v7016_v51  ;;  %7021 = vtanh.f32 %v2314_v47  ;;  %v2318_v0 = vmul.f32 0.5, %v2298_v49  ;;  %v2323_v34 = vmul.f32 0.5, %v2300_v33  ;;  %v8193_v33 = vld [vmem:[#allocation10] sm:$0xff] }
 0x517   :  { %v7018_v7 = vpop.eup %7017  ;;  %7023 = vtanh.f32 %v2310_v46 }
 0x518   :  { %v2304_v52 = vadd.f32 0.5, %v2303_v32  ;;  %v2307_v53 = vmul.f32 0.5, %v7018_v7  ;;  %7025 = vtanh.f32 %v2318_v0  ;;  %v7020_v26 = vpop.eup %7019  ;;  %v8157_v0 = vld [vmem:[#allocation10 + $0x60] sm:$0xff]  ;;  %v8160_v7 = vld [vmem:[#allocation10 + $0x70] sm:$0xff] }
 0x519   :  { %7027 = vtanh.f32 %v2299_v57 }
 0x51a   :  { %v2308_v23 = vadd.f32 0.5, %v2307_v53  ;;  %v2331_v13 = vmul.f32 %v7020_v26, %v2304_v52  ;;  %v8166_v52 = vld [vmem:[#allocation10 + $0x58] sm:$0xff]  ;;  %v8172_v53 = vld [vmem:[#allocation10 + $0x50] sm:$0xff] }
 0x51b   :  { %v8184_v26 = vld [vmem:[#allocation10 + $0x30] sm:$0xff] }
 0x51c   :  { %v2330_v24 = vmul.f32 %v2328_v27, %v2308_v23  ;;  %v8175_v23 = vld [vmem:[#allocation10 + $0x28] sm:$0xff]  ;;  %v8178_v27 = vld [vmem:[#allocation10 + $0x38] sm:$0xff] }
 0x51e   :  { %v8143_v9 = vadd.f32 %v2331_v13, %v2330_v24  ;;  %v8187_v24 = vld [vmem:[#allocation10 + $0x8] sm:$0xff]  ;;  %v8190_v13 = vld [vmem:[#allocation10 + $0x18] sm:$0xff] }
 0x520   :  { %7029 = vtanh.f32 %v8143_v9 }
 0x521   :  { %7031 = vtanh.f32 %v2323_v34 }
 0x523   :  { %v7022_v36 = vpop.eup %7021 }
 0x524   :  { %v7024_v37 = vpop.eup %7023  ;;  %v2316_v38 = vmul.f32 0.5, %v7022_v36  ;;  %v8197_v36 = vld [vmem:[#allocation10 + $0x10] sm:$0xff] }
 0x525   :  { %v7026_v39 = vpop.eup %7025  ;;  %v2312_v35 = vmul.f32 0.5, %v7024_v37 }
 0x526   :  { %v2317_v40 = vadd.f32 0.5, %v2316_v38  ;;  %v2320_v41 = vmul.f32 0.5, %v7026_v39  ;;  %v7028_v14 = vpop.eup %7027 }
 0x527   :  { %v2313_v46 = vadd.f32 0.5, %v2312_v35 }
 0x528   :  { %v2321_v42 = vadd.f32 0.5, %v2320_v41  ;;  %v2339_v45 = vmul.f32 %v7028_v14, %v2317_v40 }
 0x52a   :  { %v2338_v44 = vmul.f32 %v2336_v43, %v2321_v42 }
 0x52c   :  { %v8148_v47 = vadd.f32 %v2339_v45, %v2338_v44 }
 0x52d   :  { %v7030_v48 = vpop.eup %7029 }
 0x52e   :  { %v2334_v49 = vmul.f32 %v7030_v48, %v2313_v46  ;;  %7033 = vtanh.f32 %v8148_v47  ;;  %v7032_v50 = vpop.eup %7031 }
 0x52f   :  { %v2325_v57 = vmul.f32 0.5, %v7032_v50 }
 0x530   :  { %v2344_v51 = vrot.slane %v2334_v49, 4  ;;  %v8153_v32 = vsel %vm3443_vm4, %v8054_v10, %v2334_v49  ;;  %v8169_v10 = vld [vmem:[#allocation10 + $0x40] sm:$0xff] }
 0x531   :  { %v2326_v34 = vadd.f32 0.5, %v2325_v57 }
 0x532   :  { %6873 = vmatmul.mubr.msk.f32.vlgmr.msra.gmra.mxu0 %vm217_vm0, %v2344_v51  ;;  %6874 = vmatmul.mubr.msk.f32.vlgmr.msra.gmra.mxu1 %vm217_vm0, %v2344_v51 }
 0x533   :  { %2518 = vmatpush1.msra.mxu0 %v8157_v0  ;;  %2589 = vmatpush1.msra.mxu1 %v8160_v7 }
 0x534   :  { %2519 = vmatprep.subr.mxu0 %v8163_v16  ;;  %2590 = vmatprep.subr.mxu1 %v8166_v52 }
 0x535   :  { %2520 = vmatpush1.msra.mxu0 %v8169_v10  ;;  %2591 = vmatpush1.msra.mxu1 %v8172_v53 }
 0x536   :  { %2521 = vmatprep.subr.mxu0 %v8175_v23  ;;  %2592 = vmatprep.subr.mxu1 %v8178_v27 }
 0x537   :  { %2522 = vmatpush1.msra.mxu0 %v8181_v12  ;;  %2593 = vmatpush1.msra.mxu1 %v8184_v26 }
 0x538   :  { %2523 = vmatprep.subr.mxu0 %v8187_v24  ;;  %2594 = vmatprep.subr.mxu1 %v8190_v13 }
 0x539   :  { %2524 = vmatpush1.msra.mxu0 %v8193_v33  ;;  %2557 = vmatprep.mubr.f32.mxu0 %v9095_v5 }
 0x53a   :  { %2595 = vmatpush1.msra.mxu1 %v8197_v36  ;;  %2628 = vmatprep.mubr.f32.mxu1 %v9095_v5 }
 0x53b   :  { %v7034_v37 = vpop.eup %7033  ;;  %2737 = vmatprep.subr.mxu0 %v8074_v54  ;;  %2808 = vmatprep.subr.mxu1 %v8077_v55 }
 0x53c   :  { %v8203_v38 = vmul.f32 %v7034_v37, %v2326_v34 }
 0x53e   :  { %v2490_v39 = vrot.slane %v8203_v38, 3 }
 0x540   :  { %6875 = vmatmul.mubr.msk.f32.vlgmr.msra.gmra.mxu0 %vm217_vm0, %v2490_v39  ;;  %6876 = vmatmul.mubr.msk.f32.vlgmr.msra.gmra.mxu1 %vm217_vm0, %v2490_v39 }
 0x541   :  { %2738 = vmatpush1.msra.mxu0 %v8085_v58  ;;  %2809 = vmatpush1.msra.mxu1 %v8088_v59 }
 0x542   :  { %2739 = vmatprep.subr.mxu0 %v8091_v60  ;;  %2810 = vmatprep.subr.mxu1 %v8094_v61 }
 0x543   :  { %2740 = vmatpush1.msra.mxu0 %v8097_v62  ;;  %2811 = vmatpush1.msra.mxu1 %v8100_v63 }
 0x544   :  { %2741 = vmatprep.subr.mxu0 %v8103_v1  ;;  %2812 = vmatprep.subr.mxu1 %v8106_v2 }
 0x545   :  { %2742 = vmatpush1.msra.mxu0 %v8109_v11  ;;  %2813 = vmatpush1.msra.mxu1 %v8112_v15 }
 0x546   :  { %2743 = vmatprep.subr.mxu0 %v8115_v25  ;;  %2814 = vmatprep.subr.mxu1 %v8118_v19 }
 0x547   :  { %2744 = vmatpush1.msra.mxu0 %v8121_v28  ;;  %2777 = vmatprep.mubr.f32.mxu0 %v9095_v5 }
 0x548   :  { %2815 = vmatpush1.msra.mxu1 %v8125_v6  ;;  %2848 = vmatprep.mubr.f32.mxu1 %v9095_v5 }
 0x549   :  { %2883 = vmatprep.subr.mxu0 %v8129_v4  ;;  %2954 = vmatprep.subr.mxu1 %v8132_v17 }
 0x5f2   :  { %v2413_v40 = vpop.f32.mrf.mxu0  ;;  %v2484_v35 = vpop.f32.mrf.mxu1 }
 0x5f3   :  { %v2639_v41 = vrot.slane %v2413_v40, 3  ;;  %v2641_v45 = vrot.slane %v2484_v35, 3 }
 0x5f4   :  { %v2415_v42 = vpop.f32.mrf.mxu0  ;;  %v2486_v49 = vpop.f32.mrf.mxu1 }
 0x5f5   :  { %v2647_v43 = vadd.f32 %v2639_v41, %v7815_v18  ;;  %v2640_v14 = vrot.slane %v2415_v42, 3  ;;  %v2649_v51 = vadd.f32 %v2641_v45, %v7825_v30  ;;  %v2642_v50 = vrot.slane %v2486_v49, 3 }
 0x5f7   :  { %v2667_v44 = vmul.f32 0.5, %v2647_v43  ;;  %v2648_v46 = vadd.f32 %v2640_v14, %v7817_v21  ;;  %v2650_v57 = vadd.f32 %v2642_v50, %v7838_v22 }
 0x5f9   :  { %7035 = vtanh.f32 %v2667_v44  ;;  %v2671_v48 = vmul.f32 0.5, %v2648_v46  ;;  %v2676_v35 = vmul.f32 0.5, %v2650_v57 }
 0x5fb   :  { %7037 = vtanh.f32 %v2671_v48 }
 0x5fc   :  { %7039 = vtanh.f32 %v2649_v51 }
 0x600   :  { %v2559_v34 = vpop.f32.mrf.mxu0  ;;  %v2630_v39 = vpop.f32.mrf.mxu1 }
 0x601   :  { %v2655_v37 = vrot.slane %v2559_v34, 6  ;;  %v2657_v14 = vrot.slane %v2630_v39, 6 }
 0x602   :  { %v2561_v40 = vpop.f32.mrf.mxu0  ;;  %v2632_v49 = vpop.f32.mrf.mxu1 }
 0x603   :  { %v2663_v41 = vadd.f32 %v2655_v37, %v7836_v20  ;;  %v2656_v42 = vrot.slane %v2561_v40, 6  ;;  %v2665_v34 = vadd.f32 %v2657_v14, %v7848_v3  ;;  %v2694_v37 = vrot.slane %v8143_v9, 7 }
 0x604   :  { %v2658_v57 = vrot.slane %v2632_v49, 6 }
 0x605   :  { %v2680_v43 = vmul.f32 0.5, %v2663_v41  ;;  %v2664_v44 = vadd.f32 %v2656_v42, %v7842_v29 }
 0x606   :  { %v7036_v46 = vpop.eup %7035 }
 0x607   :  { %v2669_v8 = vmul.f32 0.5, %v7036_v46  ;;  %7041 = vtanh.f32 %v2680_v43  ;;  %v2684_v45 = vmul.f32 0.5, %v2664_v44  ;;  %v2666_v43 = vadd.f32 %v2658_v57, %v7853_v31 }
 0x608   :  { %v7038_v48 = vpop.eup %7037  ;;  %7043 = vtanh.f32 %v2676_v35 }
 0x609   :  { %v2670_v51 = vadd.f32 0.5, %v2669_v8  ;;  %v2673_v50 = vmul.f32 0.5, %v7038_v48  ;;  %7045 = vtanh.f32 %v2684_v45  ;;  %v7040_v40 = vpop.eup %7039  ;;  %v2689_v35 = vmul.f32 0.5, %v2666_v43 }
 0x60a   :  { %7047 = vtanh.f32 %v2665_v34 }
 0x60b   :  { %v2674_v56 = vadd.f32 0.5, %v2673_v50  ;;  %v2697_v41 = vmul.f32 %v7040_v40, %v2670_v51 }
 0x60d   :  { %v2696_v39 = vmul.f32 %v2694_v37, %v2674_v56  ;;  %v2702_v56 = vrot.slane %v8148_v47, 1 }
 0x60f   :  { %v8234_v42 = vadd.f32 %v2697_v41, %v2696_v39 }
 0x611   :  { %7049 = vtanh.f32 %v8234_v42 }
 0x612   :  { %7051 = vtanh.f32 %v2689_v35 }
 0x614   :  { %v7042_v8 = vpop.eup %7041 }
 0x615   :  { %v7044_v44 = vpop.eup %7043  ;;  %v2682_v46 = vmul.f32 0.5, %v7042_v8 }
 0x616   :  { %v7046_v14 = vpop.eup %7045  ;;  %v2678_v9 = vmul.f32 0.5, %v7044_v44 }
 0x617   :  { %v2683_v45 = vadd.f32 0.5, %v2682_v46  ;;  %v2686_v48 = vmul.f32 0.5, %v7046_v14  ;;  %v7048_v51 = vpop.eup %7047 }
 0x618   :  { %v2679_v37 = vadd.f32 0.5, %v2678_v9 }
 0x619   :  { %v2687_v49 = vadd.f32 0.5, %v2686_v48  ;;  %v2705_v34 = vmul.f32 %v7048_v51, %v2683_v45 }
 0x61b   :  { %v2704_v50 = vmul.f32 %v2702_v56, %v2687_v49 }
 0x61d   :  { %v8239_v40 = vadd.f32 %v2705_v34, %v2704_v50 }
 0x61e   :  { %v7050_v57 = vpop.eup %7049 }
 0x61f   :  { %v2700_v39 = vmul.f32 %v7050_v57, %v2679_v37  ;;  %7053 = vtanh.f32 %v8239_v40  ;;  %v7052_v47 = vpop.eup %7051 }
 0x620   :  { %v2691_v35 = vmul.f32 0.5, %v7052_v47 }
 0x621   :  { %v2710_v41 = vrot.slane %v2700_v39, 5  ;;  %v8244_v43 = vsel %vm3445_vm5, %v8153_v32, %v2700_v39 }
 0x622   :  { %v2692_v32 = vadd.f32 0.5, %v2691_v35 }
 0x623   :  { %6877 = vmatmul.mubr.msk.f32.vlgmr.msra.gmra.mxu0 %vm217_vm0, %v2710_v41  ;;  %6878 = vmatmul.mubr.msk.f32.vlgmr.msra.gmra.mxu1 %vm217_vm0, %v2710_v41 }
 0x624   :  { %2884 = vmatpush1.msra.mxu0 %v8157_v0  ;;  %2955 = vmatpush1.msra.mxu1 %v8160_v7 }
 0x625   :  { %2885 = vmatprep.subr.mxu0 %v8163_v16  ;;  %2956 = vmatprep.subr.mxu1 %v8166_v52 }
 0x626   :  { %2886 = vmatpush1.msra.mxu0 %v8169_v10  ;;  %2957 = vmatpush1.msra.mxu1 %v8172_v53 }
 0x627   :  { %2887 = vmatprep.subr.mxu0 %v8175_v23  ;;  %2958 = vmatprep.subr.mxu1 %v8178_v27 }
 0x628   :  { %2888 = vmatpush1.msra.mxu0 %v8181_v12  ;;  %2959 = vmatpush1.msra.mxu1 %v8184_v26 }
 0x629   :  { %2889 = vmatprep.subr.mxu0 %v8187_v24  ;;  %2960 = vmatprep.subr.mxu1 %v8190_v13 }
 0x62a   :  { %2890 = vmatpush1.msra.mxu0 %v8193_v33  ;;  %2923 = vmatprep.mubr.f32.mxu0 %v9095_v5 }
 0x62b   :  { %2961 = vmatpush1.msra.mxu1 %v8197_v36  ;;  %2994 = vmatprep.mubr.f32.mxu1 %v9095_v5 }
 0x62c   :  { %v7054_v8 = vpop.eup %7053  ;;  %3103 = vmatprep.subr.mxu0 %v8074_v54  ;;  %3174 = vmatprep.subr.mxu1 %v8077_v55 }
 0x62d   :  { %v8266_v44 = vmul.f32 %v7054_v8, %v2692_v32  ;;  %v3060_v32 = vrot.slane %v8234_v42, 7 }
 0x62f   :  { %v2856_v46 = vrot.slane %v8266_v44, 2 }
 0x631   :  { %6879 = vmatmul.mubr.msk.f32.vlgmr.msra.gmra.mxu0 %vm217_vm0, %v2856_v46  ;;  %6880 = vmatmul.mubr.msk.f32.vlgmr.msra.gmra.mxu1 %vm217_vm0, %v2856_v46 }
 0x632   :  { %3104 = vmatpush1.msra.mxu0 %v8085_v58  ;;  %3175 = vmatpush1.msra.mxu1 %v8088_v59 }
 0x633   :  { %3105 = vmatprep.subr.mxu0 %v8091_v60  ;;  %3176 = vmatprep.subr.mxu1 %v8094_v61 }
 0x634   :  { %3106 = vmatpush1.msra.mxu0 %v8097_v62  ;;  %3177 = vmatpush1.msra.mxu1 %v8100_v63 }
 0x635   :  { %3107 = vmatprep.subr.mxu0 %v8103_v1  ;;  %3178 = vmatprep.subr.mxu1 %v8106_v2 }
 0x636   :  { %3108 = vmatpush1.msra.mxu0 %v8109_v11  ;;  %3179 = vmatpush1.msra.mxu1 %v8112_v15 }
 0x637   :  { %3109 = vmatprep.subr.mxu0 %v8115_v25  ;;  %3180 = vmatprep.subr.mxu1 %v8118_v19 }
 0x638   :  { %3110 = vmatpush1.msra.mxu0 %v8121_v28  ;;  %3143 = vmatprep.mubr.f32.mxu0 %v9095_v5 }
 0x639   :  { %3181 = vmatpush1.msra.mxu1 %v8125_v6  ;;  %3214 = vmatprep.mubr.f32.mxu1 %v9095_v5 }
 0x63a   :  { %3249 = vmatprep.subr.mxu0 %v8129_v4  ;;  %3320 = vmatprep.subr.mxu1 %v8132_v17 }
 0x6e3   :  { %v2779_v54 = vpop.f32.mrf.mxu0  ;;  %v2850_v58 = vpop.f32.mrf.mxu1 }
 0x6e4   :  { %v3005_v55 = vrot.slane %v2779_v54, 2  ;;  %v3007_v63 = vrot.slane %v2850_v58, 2 }
 0x6e5   :  { %v2781_v59 = vpop.f32.mrf.mxu0  ;;  %v2852_v11 = vpop.f32.mrf.mxu1 }
 0x6e6   :  { %v3013_v60 = vadd.f32 %v3005_v55, %v7815_v18  ;;  %v3006_v61 = vrot.slane %v2781_v59, 2  ;;  %v3015_v15 = vadd.f32 %v3007_v63, %v7825_v30  ;;  %v3008_v25 = vrot.slane %v2852_v11, 2 }
 0x6e8   :  { %v3033_v62 = vmul.f32 0.5, %v3013_v60  ;;  %v3014_v1 = vadd.f32 %v3006_v61, %v7817_v21  ;;  %v3016_v19 = vadd.f32 %v3008_v25, %v7838_v22  ;;  %v3068_v25 = vrot.slane %v8239_v40, 1 }
 0x6ea   :  { %7055 = vtanh.f32 %v3033_v62  ;;  %v3037_v2 = vmul.f32 0.5, %v3014_v1  ;;  %v3042_v48 = vmul.f32 0.5, %v3016_v19 }
 0x6ec   :  { %7057 = vtanh.f32 %v3037_v2 }
 0x6ed   :  { %7059 = vtanh.f32 %v3015_v15 }
 0x6f1   :  { %v2925_v28 = vpop.f32.mrf.mxu0  ;;  %v2996_v4 = vpop.f32.mrf.mxu1 }
 0x6f2   :  { %v3021_v6 = vrot.slane %v2925_v28, 7  ;;  %v3023_v49 = vrot.slane %v2996_v4, 7 }
 0x6f3   :  { %v2927_v17 = vpop.f32.mrf.mxu0  ;;  %v2998_v57 = vpop.f32.mrf.mxu1 }
 0x6f4   :  { %v3029_v14 = vadd.f32 %v3021_v6, %v7836_v20  ;;  %v3022_v45 = vrot.slane %v2927_v17, 7  ;;  %v3031_v47 = vadd.f32 %v3023_v49, %v7848_v3  ;;  %v3024_v8 = vrot.slane %v2998_v57, 7  ;;  %v3488_v57 = vld [vmem:[#allocation11 + $0xc8] sm:$0xff] }
 0x6f6   :  { %v3046_v9 = vmul.f32 0.5, %v3029_v14  ;;  %v3030_v56 = vadd.f32 %v3022_v45, %v7842_v29  ;;  %v3032_v59 = vadd.f32 %v3024_v8, %v7853_v31  ;;  %v3479_v8 = vld [vmem:[#allocation11 + $0x80] sm:$0xff] }
 0x6f7   :  { %v7056_v51 = vpop.eup %7055 }
 0x6f8   :  { %v3035_v50 = vmul.f32 0.5, %v7056_v51  ;;  %7061 = vtanh.f32 %v3046_v9  ;;  %v3050_v34 = vmul.f32 0.5, %v3030_v56  ;;  %v3055_v60 = vmul.f32 0.5, %v3032_v59  ;;  %v3505_v56 = vld [vmem:[#allocation11 + $0x150] sm:$0xff]  ;;  %v3496_v51 = vld [vmem:[#allocation11 + $0x108] sm:$0xff]  ;;  %v3471_v59 = vld [vmem:[#allocation11 + $0x40] sm:$0xff] }
 0x6f9   :  { %v7058_v37 = vpop.eup %7057  ;;  %7063 = vtanh.f32 %v3042_v48 }
 0x6fa   :  { %v3036_v39 = vadd.f32 0.5, %v3035_v50  ;;  %v3039_v41 = vmul.f32 0.5, %v7058_v37  ;;  %7065 = vtanh.f32 %v3050_v34  ;;  %v7060_v46 = vpop.eup %7059  ;;  %v3498_v50 = vld [vmem:[#allocation11 + $0x118] sm:$0xff]  ;;  %v3495_v34 = vld [vmem:[#allocation11 + $0x100] sm:$0xff]  ;;  %v3497_v37 = vld [vmem:[#allocation11 + $0x110] sm:$0xff] }
 0x6fb   :  { %7067 = vtanh.f32 %v3031_v47  ;;  %v3489_v47 = vld [vmem:[#allocation11 + $0xd0] sm:$0xff] }
 0x6fc   :  { %v3040_v35 = vadd.f32 0.5, %v3039_v41  ;;  %v3063_v55 = vmul.f32 %v7060_v46, %v3036_v39  ;;  %v3490_v39 = vld [vmem:[#allocation11 + $0xd8] sm:$0xff]  ;;  %v3487_v41 = vld [vmem:[#allocation11 + $0xc0] sm:$0xff]  ;;  %v3481_v46 = vld [vmem:[#allocation11 + $0x90] sm:$0xff] }
 0x6fe   :  { %v3062_v54 = vmul.f32 %v3060_v32, %v3040_v35  ;;  %v3480_v35 = vld [vmem:[#allocation11 + $0x88] sm:$0xff]  ;;  %v3482_v32 = vld [vmem:[#allocation11 + $0x98] sm:$0xff] }
 0x700   :  { %v8297_v58 = vadd.f32 %v3063_v55, %v3062_v54  ;;  %v3472_v54 = vld [vmem:[#allocation11 + $0x48] sm:$0xff]  ;;  %v3474_v55 = vld [vmem:[#allocation11 + $0x58] sm:$0xff] }
 0x702   :  { %7069 = vtanh.f32 %v8297_v58 }
 0x703   :  { %7071 = vtanh.f32 %v3055_v60  ;;  %v3473_v60 = vld [vmem:[#allocation11 + $0x50] sm:$0xff] }
 0x705   :  { %v7062_v61 = vpop.eup %7061 }
 0x706   :  { %v7064_v62 = vpop.eup %7063  ;;  %v3048_v63 = vmul.f32 0.5, %v7062_v61  ;;  %v3464_v61 = vld [vmem:[#allocation11 + $0x8] sm:$0xff] }
 0x707   :  { %v7066_v1 = vpop.eup %7065  ;;  %v3044_v42 = vmul.f32 0.5, %v7064_v62  ;;  %v3466_v62 = vld [vmem:[#allocation11 + $0x18] sm:$0xff] }
 0x708   :  { %v3049_v2 = vadd.f32 0.5, %v3048_v63  ;;  %v3052_v11 = vmul.f32 0.5, %v7066_v1  ;;  %v7068_v19 = vpop.eup %7067 }
 0x709   :  { %v3045_v4 = vadd.f32 0.5, %v3044_v42 }
 0x70a   :  { %v3053_v15 = vadd.f32 0.5, %v3052_v11  ;;  %v3071_v6 = vmul.f32 %v7068_v19, %v3049_v2 }
 0x70c   :  { %v3070_v28 = vmul.f32 %v3068_v25, %v3053_v15 }
 0x70e   :  { %v8302_v17 = vadd.f32 %v3071_v6, %v3070_v28 }
 0x70f   :  { %v7070_v14 = vpop.eup %7069 }
 0x710   :  { %v3066_v45 = vmul.f32 %v7070_v14, %v3045_v4  ;;  %7073 = vtanh.f32 %v8302_v17  ;;  %v7072_v40 = vpop.eup %7071 }
 0x711   :  { %v3057_v49 = vmul.f32 0.5, %v7072_v40 }
 0x712   :  { %v3076_v48 = vrot.slane %v3066_v45, 6  ;;  %v8307_v9 = vsel %vm3447_vm6, %v8244_v43, %v3066_v45  ;;  %v3503_v43 = vld [vmem:[#allocation11 + $0x140] sm:$0xff] }
 0x714   :  { %6881 = vmatmul.mubr.msk.f32.vlgmr.msra.gmra.mxu0 %vm217_vm0, %v3076_v48  ;;  %6882 = vmatmul.mubr.msk.f32.vlgmr.msra.gmra.mxu1 %vm217_vm0, %v3076_v48 }
 0x715   :  { %3250 = vmatpush1.msra.mxu0 %v8157_v0  ;;  %3321 = vmatpush1.msra.mxu1 %v8160_v7  ;;  %v3058_v0 = vadd.f32 0.5, %v3057_v49 }
 0x716   :  { %3251 = vmatprep.subr.mxu0 %v8163_v16  ;;  %3322 = vmatprep.subr.mxu1 %v8166_v52 }
 0x717   :  { %3252 = vmatpush1.msra.mxu0 %v8169_v10  ;;  %3323 = vmatpush1.msra.mxu1 %v8172_v53  ;;  %v3520_v10 = vld [vmem:[#allocation11 + $0x1c8] sm:$0xff]  ;;  %v3522_v53 = vld [vmem:[#allocation11 + $0x1d8] sm:$0xff] }
 0x718   :  { %3253 = vmatprep.subr.mxu0 %v8175_v23  ;;  %3324 = vmatprep.subr.mxu1 %v8178_v27  ;;  %v3519_v23 = vld [vmem:[#allocation11 + $0x1c0] sm:$0xff]  ;;  %v3521_v27 = vld [vmem:[#allocation11 + $0x1d0] sm:$0xff] }
 0x719   :  { %3254 = vmatpush1.msra.mxu0 %v8181_v12  ;;  %3325 = vmatpush1.msra.mxu1 %v8184_v26  ;;  %v3512_v12 = vld [vmem:[#allocation11 + $0x188] sm:$0xff]  ;;  %v3514_v26 = vld [vmem:[#allocation11 + $0x198] sm:$0xff] }
 0x71a   :  { %3255 = vmatprep.subr.mxu0 %v8187_v24  ;;  %3326 = vmatprep.subr.mxu1 %v8190_v13  ;;  %v3511_v24 = vld [vmem:[#allocation11 + $0x180] sm:$0xff]  ;;  %v3513_v13 = vld [vmem:[#allocation11 + $0x190] sm:$0xff] }
 0x71b   :  { %3256 = vmatpush1.msra.mxu0 %v8193_v33  ;;  %3289 = vmatprep.mubr.f32.mxu0 %v9095_v5  ;;  %v3504_v33 = vld [vmem:[#allocation11 + $0x148] sm:$0xff] }
 0x71c   :  { %3327 = vmatpush1.msra.mxu1 %v8197_v36  ;;  %3360 = vmatprep.mubr.f32.mxu1 %v9095_v5  ;;  %v3506_v36 = vld [vmem:[#allocation11 + $0x158] sm:$0xff] }
 0x71d   :  { %v7074_v7 = vpop.eup %7073  ;;  %3589 = vmatprep.subr.mxu0 %v3520_v10  ;;  %3660 = vmatprep.subr.mxu1 %v3522_v53 }
 0x71e   :  { %v8327_v16 = vmul.f32 %v7074_v7, %v3058_v0 }
 0x720   :  { %v3222_v52 = vrot.slane %v8327_v16, 1 }
 0x722   :  { %6883 = vmatmul.mubr.msk.f32.vlgmr.msra.gmra.mxu0 %vm217_vm0, %v3222_v52  ;;  %6884 = vmatmul.mubr.msk.f32.vlgmr.msra.gmra.mxu1 %vm217_vm0, %v3222_v52 }
 0x723   :  { %3637 = vmatprep.mubr.f32.mxu0 %v9095_v5  ;;  %3708 = vmatprep.mubr.f32.mxu1 %v9095_v5 }
 0x724   :  { %3590 = vmatpush1.msra.mxu0 %v3519_v23  ;;  %3661 = vmatpush1.msra.mxu1 %v3521_v27 }
 0x725   :  { %3591 = vmatprep.subr.mxu0 %v3512_v12  ;;  %3662 = vmatprep.subr.mxu1 %v3514_v26 }
 0x726   :  { %3592 = vmatpush1.msra.mxu0 %v3511_v24  ;;  %3663 = vmatpush1.msra.mxu1 %v3513_v13 }
 0x727   :  { %3593 = vmatprep.subr.mxu0 %v3504_v33  ;;  %3664 = vmatprep.subr.mxu1 %v3506_v36 }
 0x728   :  { %3594 = vmatpush1.msra.mxu0 %v3503_v43  ;;  %3665 = vmatpush1.msra.mxu1 %v3505_v56 }
 0x729   :  { %3595 = vmatprep.subr.mxu0 %v3496_v51  ;;  %3666 = vmatprep.subr.mxu1 %v3498_v50 }
 0x72a   :  { %3596 = vmatpush1.msra.mxu0 %v3495_v34  ;;  %3667 = vmatpush1.msra.mxu1 %v3497_v37 }
 0x72b   :  { %3597 = vmatprep.subr.mxu0 %v3488_v57  ;;  %3668 = vmatprep.subr.mxu1 %v3490_v39  ;;  %v3422_v39 = vrot.slane %v8302_v17, 1 }
 0x72c   :  { %3598 = vmatpush1.msra.mxu0 %v3487_v41  ;;  %3669 = vmatpush1.msra.mxu1 %v3489_v47 }
 0x72d   :  { %3599 = vmatprep.subr.mxu0 %v3480_v35  ;;  %3670 = vmatprep.subr.mxu1 %v3482_v32 }
 0x72e   :  { %3600 = vmatpush1.msra.mxu0 %v3479_v8  ;;  %3671 = vmatpush1.msra.mxu1 %v3481_v46 }
 0x72f   :  { %3601 = vmatprep.subr.mxu0 %v3472_v54  ;;  %3672 = vmatprep.subr.mxu1 %v3474_v55 }
 0x730   :  { %3602 = vmatpush1.msra.mxu0 %v3471_v59  ;;  %3673 = vmatpush1.msra.mxu1 %v3473_v60  ;;  %v3463_v60 = vld [vmem:[#allocation11] sm:$0xff] }
 0x731   :  { %3603 = vmatprep.subr.mxu0 %v3464_v61  ;;  %3674 = vmatprep.subr.mxu1 %v3466_v62  ;;  %v3465_v61 = vld [vmem:[#allocation11 + $0x10] sm:$0xff]  ;;  %v3524_v62 = vld [vmem:[#allocation11 + $0x1e8] sm:$0xff] }
 0x732   :  { %3604 = vmatpush1.msra.mxu0 %v3463_v60  ;;  %3675 = vmatpush1.msra.mxu1 %v3465_v61  ;;  %v8412_v60 = vld [vmem:[#allocation13 + $0x18] sm:$0xff]  ;;  %v8416_v61 = vld [vmem:[#allocation13] sm:$0xff] }
 0x733   :  { %3731 = vmatprep.subr.mxu0 %v3524_v62  ;;  %v8420_v62 = vld [vmem:[#allocation13 + $0x10] sm:$0xff] }
 0x7d4   :  { %v3145_v63 = vpop.f32.mrf.mxu0  ;;  %v3216_v2 = vpop.f32.mrf.mxu1 }
 0x7d5   :  { %v3371_v1 = vrot.slane %v3145_v63, 1  ;;  %v3373_v19 = vrot.slane %v3216_v2, 1  ;;  %v3526_v63 = vld [vmem:[#allocation11 + $0x1f8] sm:$0xff] }
 0x7d6   :  { %v3147_v11 = vpop.f32.mrf.mxu0  ;;  %v3218_v4 = vpop.f32.mrf.mxu1  ;;  %3802 = vmatprep.subr.mxu1 %v3526_v63  ;;  %v8426_v63 = vld [vmem:[#allocation14 + $0x68] sm:$0xff] }
 0x7d7   :  { %v3379_v42 = vadd.f32 %v3371_v1, %v7815_v18  ;;  %v3372_v15 = vrot.slane %v3147_v11, 1  ;;  %v3381_v14 = vadd.f32 %v3373_v19, %v7825_v30  ;;  %v3374_v45 = vrot.slane %v3218_v4, 1  ;;  %v9101_v4 = vld [vmem:[#allocation29_spill] sm:$0xff] }
 0x7d9   :  { %v3387_v25 = vmul.f32 0.5, %v3379_v42  ;;  %v3380_v28 = vadd.f32 %v3372_v15, %v7817_v21  ;;  %v3382_v40 = vadd.f32 %v3374_v45, %v7838_v22  ;;  %v9102_v45 = vld [vmem:[#allocation28_spill] sm:$0xff] }
 0x7db   :  { %7075 = vtanh.f32 %v3387_v25  ;;  %v3391_v6 = vmul.f32 0.5, %v3380_v28  ;;  %v3396_v10 = vmul.f32 0.5, %v3382_v40  ;;  %v9099_v25 = vld [vmem:[#allocation31_spill] sm:$0xff]  ;;  %v9100_v28 = vld [vmem:[#allocation30_spill] sm:$0xff] }
 0x7dc   :  { %v3525_v40 = vld [vmem:[#allocation11 + $0x1f0] sm:$0xff] }
 0x7dd   :  { %7077 = vtanh.f32 %v3391_v6 }
 0x7de   :  { %7079 = vtanh.f32 %v3381_v14 }
 0x7e2   :  { %v3291_v48 = vpop.f32.mrf.mxu0  ;;  %v3362_v52 = vpop.f32.mrf.mxu1 }
 0x7e3   :  { %v3383_v49 = vadd.f32 %v3291_v48, %v7836_v20  ;;  %v3385_v30 = vadd.f32 %v3362_v52, %v7848_v3  ;;  %v3414_v20 = vrot.slane %v8297_v58, 7  ;;  %v3508_v52 = vld [vmem:[#allocation11 + $0x168] sm:$0xff] }
 0x7e4   :  { %v3293_v0 = vpop.f32.mrf.mxu0  ;;  %v3364_v22 = vpop.f32.mrf.mxu1 }
 0x7e5   :  { %v3400_v18 = vmul.f32 0.5, %v3383_v49  ;;  %v3384_v7 = vadd.f32 %v3293_v0, %v7842_v29  ;;  %v3386_v36 = vadd.f32 %v3364_v22, %v7853_v31  ;;  %v3516_v49 = vld [vmem:[#allocation11 + $0x1a8] sm:$0xff]  ;;  %v3518_v0 = vld [vmem:[#allocation11 + $0x1b8] sm:$0xff] }
 0x7e6   :  { %v3494_v22 = vld [vmem:[#allocation11 + $0xf8] sm:$0xff] }
 0x7e7   :  { %7081 = vtanh.f32 %v3400_v18  ;;  %v3404_v21 = vmul.f32 0.5, %v3384_v7  ;;  %v3409_v3 = vmul.f32 0.5, %v3386_v36  ;;  %v3515_v18 = vld [vmem:[#allocation11 + $0x1a0] sm:$0xff]  ;;  %v3517_v7 = vld [vmem:[#allocation11 + $0x1b0] sm:$0xff] }
 0x7e8   :  { %v7076_v53 = vpop.eup %7075  ;;  %v3485_v36 = vld [vmem:[#allocation11 + $0xb0] sm:$0xff] }
 0x7e9   :  { %v3389_v23 = vmul.f32 0.5, %v7076_v53  ;;  %7083 = vtanh.f32 %v3404_v21  ;;  %v3507_v21 = vld [vmem:[#allocation11 + $0x160] sm:$0xff]  ;;  %v3509_v53 = vld [vmem:[#allocation11 + $0x170] sm:$0xff] }
 0x7ea   :  { %v7078_v27 = vpop.eup %7077  ;;  %7085 = vtanh.f32 %v3396_v10  ;;  %v3510_v10 = vld [vmem:[#allocation11 + $0x178] sm:$0xff] }
 0x7eb   :  { %v3390_v12 = vadd.f32 0.5, %v3389_v23  ;;  %v3393_v26 = vmul.f32 0.5, %v7078_v27  ;;  %7087 = vtanh.f32 %v3385_v30  ;;  %v7080_v13 = vpop.eup %7079  ;;  %v3500_v23 = vld [vmem:[#allocation11 + $0x128] sm:$0xff]  ;;  %v3502_v30 = vld [vmem:[#allocation11 + $0x138] sm:$0xff]  ;;  %v3499_v27 = vld [vmem:[#allocation11 + $0x120] sm:$0xff] }
 0x7ed   :  { %v3394_v24 = vadd.f32 0.5, %v3393_v26  ;;  %v3417_v33 = vmul.f32 %v7080_v13, %v3390_v12  ;;  %v3501_v12 = vld [vmem:[#allocation11 + $0x130] sm:$0xff]  ;;  %v3492_v26 = vld [vmem:[#allocation11 + $0xe8] sm:$0xff] }
 0x7ee   :  { %v3484_v13 = vld [vmem:[#allocation11 + $0xa8] sm:$0xff] }
 0x7ef   :  { %v3416_v29 = vmul.f32 %v3414_v20, %v3394_v24  ;;  %v3491_v24 = vld [vmem:[#allocation11 + $0xe0] sm:$0xff]  ;;  %v3493_v20 = vld [vmem:[#allocation11 + $0xf0] sm:$0xff] }
 0x7f1   :  { %v3418_v43 = vadd.f32 %v3417_v33, %v3416_v29  ;;  %v3486_v29 = vld [vmem:[#allocation11 + $0xb8] sm:$0xff]  ;;  %v3483_v33 = vld [vmem:[#allocation11 + $0xa0] sm:$0xff] }
 0x7f3   :  { %7089 = vtanh.f32 %v3418_v43  ;;  %3434 = vst.msk [vmem:[#allocation19 - $0x7] sm:$0x80] %vm3429_vm7, %v3418_v43  ;;  %v3476_v43 = vld [vmem:[#allocation11 + $0x68] sm:$0xff] }
 0x7f4   :  { %v7082_v56 = vpop.eup %7081  ;;  %7091 = vtanh.f32 %v3409_v3  ;;  %v3478_v3 = vld [vmem:[#allocation11 + $0x78] sm:$0xff] }
 0x7f5   :  { %v3402_v51 = vmul.f32 0.5, %v7082_v56  ;;  %v3475_v56 = vld [vmem:[#allocation11 + $0x60] sm:$0xff] }
 0x7f6   :  { %v7084_v50 = vpop.eup %7083 }
 0x7f7   :  { %v3403_v34 = vadd.f32 0.5, %v3402_v51  ;;  %v3406_v37 = vmul.f32 0.5, %v7084_v50  ;;  %v7086_v57 = vpop.eup %7085  ;;  %v3477_v51 = vld [vmem:[#allocation11 + $0x70] sm:$0xff]  ;;  %v3468_v50 = vld [vmem:[#allocation11 + $0x28] sm:$0xff] }
 0x7f8   :  { %v7088_v41 = vpop.eup %7087  ;;  %v3398_v47 = vmul.f32 0.5, %v7086_v57  ;;  %v3469_v57 = vld [vmem:[#allocation11 + $0x30] sm:$0xff] }
 0x7f9   :  { %v3407_v58 = vadd.f32 0.5, %v3406_v37  ;;  %v3425_v31 = vmul.f32 %v7088_v41, %v3403_v34  ;;  %v3470_v34 = vld [vmem:[#allocation11 + $0x38] sm:$0xff]  ;;  %v3467_v37 = vld [vmem:[#allocation11 + $0x20] sm:$0xff] }
 0x7fa   :  { %v3399_v8 = vadd.f32 0.5, %v3398_v47  ;;  %v8378_v41 = vld [vmem:[#allocation13 + $0x60] sm:$0xff]  ;;  %v8380_v47 = vld [vmem:[#allocation13 + $0x70] sm:$0xff] }
 0x7fb   :  { %v3424_v35 = vmul.f32 %v3422_v39, %v3407_v58  ;;  %v8373_v58 = vld [vmem:[#allocation13 + $0x68] sm:$0xff]  ;;  %v8375_v39 = vld [vmem:[#allocation13 + $0x78] sm:$0xff] }
 0x7fd   :  { %v3426_v32 = vadd.f32 %v3425_v31, %v3424_v35  ;;  %v8386_v35 = vld [vmem:[#allocation13 + $0x48] sm:$0xff]  ;;  %v8388_v31 = vld [vmem:[#allocation13 + $0x58] sm:$0xff] }
 0x7ff   :  { %7093 = vtanh.f32 %v3426_v32  ;;  %3436 = vst.msk [vmem:[#allocation19 + $0x1] sm:$0x1] %vm3432_vm8, %v3426_v32  ;;  %v8392_v32 = vld [vmem:[#allocation13 + $0x40] sm:$0xff] }
 0x800   :  { %v7090_v46 = vpop.eup %7089 }
 0x801   :  { %v3420_v54 = vmul.f32 %v7090_v46, %v3399_v8  ;;  %v7092_v59 = vpop.eup %7091  ;;  %v8394_v8 = vld [vmem:[#allocation13 + $0x50] sm:$0xff]  ;;  %v8398_v46 = vld [vmem:[#allocation13 + $0x28] sm:$0xff] }
 0x802   :  { %v3411_v17 = vmul.f32 0.5, %v7092_v59  ;;  %v8406_v59 = vld [vmem:[#allocation13 + $0x30] sm:$0xff] }
 0x803   :  { %3430 = vst.msk [vmem:[#allocation17 - $0x7] sm:$0x80] %vm3429_vm7, %v3420_v54  ;;  %v3450_v55 = vsel %vm3449_vm9, %v8307_v9, %v3420_v54  ;;  %v8400_v54 = vld [vmem:[#allocation13 + $0x38] sm:$0xff] }
 0x804   :  { %v3412_v1 = vadd.f32 0.5, %v3411_v17  ;;  %v8410_v17 = vld [vmem:[#allocation13 + $0x8] sm:$0xff] }
 0x80c   :  { %v7094_v2 = vpop.eup %7093 }
 0x80d   :  { %v3428_v11 = vmul.f32 %v7094_v2, %v3412_v1  ;;  %v8428_v1 = vld [vmem:[#allocation14 + $0x78] sm:$0xff]  ;;  %v8432_v2 = vld [vmem:[#allocation14 + $0x60] sm:$0xff] }
 0x80f   :  { %3433 = vst.msk [vmem:[#allocation17 + $0x1] sm:$0x1] %vm3432_vm8, %v3428_v11  ;;  %v3451_v42 = vsel %vm3437_vm1, %v3428_v11, %v8327_v16  ;;  %v8434_v11 = vld [vmem:[#allocation14 + $0x70] sm:$0xff] }
 0x810   :  { %v3452_v9 = vsel %vm3439_vm2, %v3451_v42, %v8266_v44  ;;  %v3523_v44 = vld [vmem:[#allocation11 + $0x1e0] sm:$0xff]  ;;  %v8438_v42 = vld [vmem:[#allocation14 + $0x48] sm:$0xff] }
 0x811   :  { %v3453_v15 = vsel %vm3441_vm3, %v3452_v9, %v8203_v38  ;;  %v8440_v9 = vld [vmem:[#allocation14 + $0x58] sm:$0xff] }
 0x812   :  { %v3454_v19 = vsel %vm3443_vm4, %v3453_v15, %v9099_v25  ;;  %v8444_v15 = vld [vmem:[#allocation14 + $0x40] sm:$0xff]  ;;  %v8446_v25 = vld [vmem:[#allocation14 + $0x50] sm:$0xff] }
 0x813   :  { %v3455_v6 = vsel %vm3445_vm5, %v3454_v19, %v9100_v28  ;;  %v8450_v19 = vld [vmem:[#allocation14 + $0x28] sm:$0xff]  ;;  %v8452_v28 = vld [vmem:[#allocation14 + $0x38] sm:$0xff] }
 0x814   :  { %v3456_v14 = vsel %vm3447_vm6, %v3455_v6, %v9101_v4  ;;  %v8456_v6 = vld [vmem:[#allocation14 + $0x20] sm:$0xff]  ;;  %v8458_v4 = vld [vmem:[#allocation14 + $0x30] sm:$0xff] }
 0x815   :  { %v3457_v48 = vsel %vm3449_vm9, %v3456_v14, %v9102_v45  ;;  %v8462_v14 = vld [vmem:[#allocation14 + $0x8] sm:$0xff]  ;;  %v8464_v45 = vld [vmem:[#allocation14 + $0x18] sm:$0xff] }
 0x816   :  { %3459 = vrot.lane.b32.xlu0 %v3457_v48, %s7559_s28  ;;  %v8468_v48 = vld [vmem:[#allocation14] sm:$0xff]  ;;  %s7568_s28 = smov [#allocation19]  }
 0x817   :  { %s6830_s3 = sshll.u32 %s7568_s28, 4  ;;  %s6831_s3 = int_to_ptr.vmem [resolvable:$true] %s6830_s3 }
 0x888   :  { %v3460_v16 = vpop.permute.xlu0 %3459 }
 0x889   :  { %v8366_v38 = vsel %vm217_vm0, %v3450_v55, %v3460_v16  ;;  %v8404_v55 = vld [vmem:[#allocation13 + $0x20] sm:$0xff]  ;;  %v8472_v16 = vld [vmem:[#allocation14 + $0x10] sm:$0xff] }
 0x88a   :  { %6885 = vmatmul.mubr.msk.f32.vlgmr.msra.gmra.mxu0 %vm3569_vm10, %v8366_v38  ;;  %6886 = vmatmul.mubr.msk.f32.vlgmr.msra.gmra.mxu1 %vm3569_vm10, %v8366_v38 }
 0x88b   :  { %3732 = vmatpush1.msra.mxu0 %v3523_v44  ;;  %3803 = vmatpush1.msra.mxu1 %v3525_v40  ;;  %v3527_v40 = vld [vmem:[%s9067_s6] sm:$0xff]  ;;  %s7567_s6 = smov [#allocation17]  }
 0x88c   :  { %3733 = vmatprep.subr.mxu0 %v3516_v49  ;;  %3804 = vmatprep.subr.mxu1 %v3518_v0  ;;  %s6818_s27 = sshll.u32 %s7567_s6, 4  ;;  %s6819_s27 = int_to_ptr.vmem [resolvable:$true] %s6818_s27 }
 0x88d   :  { %3734 = vmatpush1.msra.mxu0 %v3515_v18  ;;  %3805 = vmatpush1.msra.mxu1 %v3517_v7  ;;  %v9103_v18 = vld [vmem:[#allocation27_spill] sm:$0xff]  ;;  %s7480_s18 = scalar_lea.vmem %s6819_s27, 64  ;;  %p7485_p13 = scmp.lt.s32.totalorder %s6819_s27, %s6819_s27 }
 0x88e   :  { %3735 = vmatprep.subr.mxu0 %v3508_v52  ;;  %3806 = vmatprep.subr.mxu1 %v3510_v10  ;;  %v9104_v7 = vsub.s32 0, %v9103_v18  ;;  %p7481_p12 = scmp.ne.s32.totalorder %s6819_s27, %s7480_s18  ;;  %p7486_p0 = scmp.lt.s32.totalorder %s7480_s18, %s7480_s18 }
 0x88f   :  { %3736 = vmatpush1.msra.mxu0 %v3507_v21  ;;  %3807 = vmatpush1.msra.mxu1 %v3509_v53  ;;  %v9105_v21 = vsub.s32 1, %v9103_v18 }
 0x890   :  { %3737 = vmatprep.subr.mxu0 %v3500_v23  ;;  %3808 = vmatprep.subr.mxu1 %v3502_v30  ;;  %v3532_v52 = vrot.slane %v3527_v40, %v9104_v7  ;;  %p7487_p1 = por %p7486_p0, %p7485_p13 }
 0x891   :  { %3738 = vmatpush1.msra.mxu0 %v3499_v27  ;;  %3809 = vmatpush1.msra.mxu1 %v3501_v12  ;;  %v3536_v53 = vrot.slane %v3527_v40, %v9105_v21 }
 0x892   :  { %3739 = vmatprep.subr.mxu0 %v3492_v26  ;;  %3810 = vmatprep.subr.mxu1 %v3494_v22  ;;  %v9106_v26 = vsub.s32 2, %v9103_v18  ;;  %p7488_p2 = pnand %p7487_p1, %p7481_p12 }
 0x893   :  { %3740 = vmatpush1.msra.mxu0 %v3491_v24  ;;  %3811 = vmatpush1.msra.mxu1 %v3493_v20 }
 0x894   :  { %3741 = vmatprep.subr.mxu0 %v3484_v13  ;;  %3812 = vmatprep.subr.mxu1 %v3486_v29  ;;  %v3540_v22 = vrot.slane %v3527_v40, %v9106_v26 }
 0x895   :  { %3742 = vmatpush1.msra.mxu0 %v3483_v33  ;;  %3813 = vmatpush1.msra.mxu1 %v3485_v36 }
 0x896   :  { %3743 = vmatprep.subr.mxu0 %v3476_v43  ;;  %3814 = vmatprep.subr.mxu1 %v3478_v3 }
 0x897   :  { %3744 = vmatpush1.msra.mxu0 %v3475_v56  ;;  %3815 = vmatpush1.msra.mxu1 %v3477_v51  ;;  %v9107_v51 = vsub.s32 3, %v9103_v18 }
 0x898   :  { %3745 = vmatprep.subr.mxu0 %v3468_v50  ;;  %3816 = vmatprep.subr.mxu1 %v3470_v34  ;;  %v9108_v34 = vsub.s32 4, %v9103_v18 }
 0x899   :  { %3746 = vmatpush1.msra.mxu0 %v3467_v37  ;;  %3779 = vmatprep.mubr.f32.mxu0 %v9095_v5  ;;  %v3544_v50 = vrot.slane %v3527_v40, %v9107_v51 }
 0x89a   :  { %3817 = vmatpush1.msra.mxu1 %v3469_v57  ;;  %3850 = vmatprep.mubr.f32.mxu1 %v9095_v5  ;;  %v3548_v37 = vrot.slane %v3527_v40, %v9108_v34 }
 0x89b   :  { %6887 = vmatmul.mubr.msk.f32.vlgmr.msra.gmra.mxu0 %vm3569_vm10, %v8366_v38  ;;  %6888 = vmatmul.mubr.msk.f32.vlgmr.msra.gmra.mxu1 %vm3569_vm10, %v8366_v38 }
 0x89c   :  { %3913 = vmatprep.subr.mxu0 %v8373_v58  ;;  %3984 = vmatprep.subr.mxu1 %v8375_v39 }
 0x89d   :  { %3914 = vmatpush1.msra.mxu0 %v8378_v41  ;;  %3985 = vmatpush1.msra.mxu1 %v8380_v47 }
 0x89e   :  { %3915 = vmatprep.subr.mxu0 %v8386_v35  ;;  %3986 = vmatprep.subr.mxu1 %v8388_v31 }
 0x89f   :  { %3916 = vmatpush1.msra.mxu0 %v8392_v32  ;;  %3987 = vmatpush1.msra.mxu1 %v8394_v8 }
 0x8a0   :  { %3917 = vmatprep.subr.mxu0 %v8398_v46  ;;  %3988 = vmatprep.subr.mxu1 %v8400_v54 }
 0x8a1   :  { %3918 = vmatpush1.msra.mxu0 %v8404_v55  ;;  %3989 = vmatpush1.msra.mxu1 %v8406_v59 }
 0x8a2   :  { %3919 = vmatprep.subr.mxu0 %v8410_v17  ;;  %3990 = vmatprep.subr.mxu1 %v8412_v60 }
 0x8a3   :  { %3920 = vmatpush1.msra.mxu0 %v8416_v61  ;;  %3953 = vmatprep.mubr.f32.mxu0 %v9095_v5 }
 0x8a4   :  { %3991 = vmatpush1.msra.mxu1 %v8420_v62  ;;  %4024 = vmatprep.mubr.f32.mxu1 %v9095_v5 }
 0x8a5   :  { %3954 = vmatmul.mubr.f32.vlgmr.msra.gmra.mxu0 %v9095_v5  ;;  %4025 = vmatmul.mubr.f32.vlgmr.msra.gmra.mxu1 %v9095_v5 }
 0x8a6   :  { %4055 = vmatprep.subr.mxu0 %v8426_v63  ;;  %4126 = vmatprep.subr.mxu1 %v8428_v1 }
 0x8a7   :  { %4056 = vmatpush1.msra.mxu0 %v8432_v2  ;;  %4127 = vmatpush1.msra.mxu1 %v8434_v11 }
 0x8a8   :  { %4057 = vmatprep.subr.mxu0 %v8438_v42  ;;  %4128 = vmatprep.subr.mxu1 %v8440_v9 }
 0x8a9   :  { %4058 = vmatpush1.msra.mxu0 %v8444_v15  ;;  %4129 = vmatpush1.msra.mxu1 %v8446_v25 }
 0x8aa   :  { %4059 = vmatprep.subr.mxu0 %v8450_v19  ;;  %4130 = vmatprep.subr.mxu1 %v8452_v28 }
 0x8ab   :  { %4060 = vmatpush1.msra.mxu0 %v8456_v6  ;;  %4131 = vmatpush1.msra.mxu1 %v8458_v4 }
 0x8ac   :  { %4061 = vmatprep.subr.mxu0 %v8462_v14  ;;  %4132 = vmatprep.subr.mxu1 %v8464_v45 }
 0x8ad   :  { %4062 = vmatpush1.msra.mxu0 %v8468_v48  ;;  %4095 = vmatprep.mubr.f32.mxu0 %v9095_v5 }
 0x8ae   :  { %4133 = vmatpush1.msra.mxu1 %v8472_v16  ;;  %4166 = vmatprep.mubr.f32.mxu1 %v9095_v5 }
 0x8af   :  { %4096 = vmatmul.mubr.f32.vlgmr.msra.gmra.mxu0 %v9095_v5  ;;  %4167 = vmatmul.mubr.f32.vlgmr.msra.gmra.mxu1 %v9095_v5 }
 0x8b0   :  { %4256 = vmatprep.subr.mxu0 %v8373_v58  ;;  %4327 = vmatprep.subr.mxu1 %v8375_v39 }
 0x8b1   :  { %4257 = vmatpush1.msra.mxu0 %v8378_v41  ;;  %4328 = vmatpush1.msra.mxu1 %v8380_v47 }
 0x8b2   :  { %4258 = vmatprep.subr.mxu0 %v8386_v35  ;;  %4329 = vmatprep.subr.mxu1 %v8388_v31 }
 0x8b3   :  { %4259 = vmatpush1.msra.mxu0 %v8392_v32  ;;  %4330 = vmatpush1.msra.mxu1 %v8394_v8 }
 0x8b4   :  { %4260 = vmatprep.subr.mxu0 %v8398_v46  ;;  %4331 = vmatprep.subr.mxu1 %v8400_v54 }
 0x8b5   :  { %4261 = vmatpush1.msra.mxu0 %v8404_v55  ;;  %4332 = vmatpush1.msra.mxu1 %v8406_v59 }
 0x8b6   :  { %4262 = vmatprep.subr.mxu0 %v8410_v17  ;;  %4333 = vmatprep.subr.mxu1 %v8412_v60 }
 0x8b7   :  { %4263 = vmatpush1.msra.mxu0 %v8416_v61  ;;  %4296 = vmatprep.mubr.f32.mxu0 %v9095_v5 }
 0x8b8   :  { %4334 = vmatpush1.msra.mxu1 %v8420_v62  ;;  %4367 = vmatprep.mubr.f32.mxu1 %v9095_v5 }
 0x8b9   :  { %4402 = vmatprep.subr.mxu0 %v8426_v63  ;;  %4473 = vmatprep.subr.mxu1 %v8428_v1 }
 0x94a   :  { %v3639_v44 = vpop.f32.mrf.mxu0  ;;  %v3710_v38 = vpop.f32.mrf.mxu1 }
 0x94b   :  { %v8509_v27 = vadd.f32 %v3639_v44, %v3532_v52  ;;  %v8517_v3 = vadd.f32 %v3710_v38, %v3540_v22  ;;  %v9109_v44 = vsub.s32 5, %v9103_v18 }
 0x94c   :  { %v3641_v49 = vpop.f32.mrf.mxu0  ;;  %v3712_v10 = vpop.f32.mrf.mxu1 }
 0x94d   :  { %v8513_v24 = vadd.f32 %v3641_v49, %v3536_v53  ;;  %v3552_v49 = vrot.slane %v3527_v40, %v9109_v44  ;;  %v8526_v21 = vadd.f32 %v3712_v10, %v3544_v50  ;;  %v9111_v44 = vsub.s32 7, %v9103_v18 }
 0x95b   :  { %v3781_v0 = vpop.f32.mrf.mxu0  ;;  %v3852_v23 = vpop.f32.mrf.mxu1 }
 0x95c   :  { %v8528_v38 = vadd.f32 %v3781_v0, %v3548_v37 }
 0x95d   :  { %v3783_v30 = vpop.f32.mrf.mxu0  ;;  %v3854_v13 = vpop.f32.mrf.mxu1 }
 0x965   :  { %v3955_v12 = vpop.f32.mrf.mxu0  ;;  %v4026_v43 = vpop.f32.mrf.mxu1 }
 0x966   :  { %v4173_v20 = vadd.f32 %v3955_v12, %v8509_v27  ;;  %v4175_v57 = vadd.f32 %v4026_v43, %v8517_v3  ;;  %v9110_v12 = vsub.s32 6, %v9103_v18 }
 0x967   :  { %v3957_v29 = vpop.f32.mrf.mxu0  ;;  %v4028_v7 = vpop.f32.mrf.mxu1 }
 0x968   :  { %v4193_v33 = vmul.f32 0.5, %v4173_v20  ;;  %v4174_v36 = vadd.f32 %v3957_v29, %v8513_v24  ;;  %v3556_v26 = vrot.slane %v3527_v40, %v9110_v12  ;;  %v8532_v29 = vadd.f32 %v3783_v30, %v3552_v49 }
 0x969   :  { %v3560_v30 = vrot.slane %v3527_v40, %v9111_v44 }
 0x96a   :  { %7095 = vtanh.f32 %v4193_v33  ;;  %v4197_v56 = vmul.f32 0.5, %v4174_v36  ;;  %v4176_v33 = vadd.f32 %v4028_v7, %v8526_v21  ;;  %v8537_v0 = vadd.f32 %v3852_v23, %v3556_v26 }
 0x96c   :  { %7097 = vtanh.f32 %v4197_v56  ;;  %v4202_v50 = vmul.f32 0.5, %v4176_v33 }
 0x96d   :  { %7099 = vtanh.f32 %v4175_v57 }
 0x96f   :  { %v4097_v52 = vpop.f32.mrf.mxu0  ;;  %v4168_v22 = vpop.f32.mrf.mxu1 }
 0x970   :  { %v4181_v53 = vrot.slane %v4097_v52, 1  ;;  %v4183_v51 = vrot.slane %v4168_v22, 1 }
 0x971   :  { %v4099_v20 = vpop.f32.mrf.mxu0  ;;  %v4170_v57 = vpop.f32.mrf.mxu1 }
 0x972   :  { %v4189_v36 = vadd.f32 %v4181_v53, %v8528_v38  ;;  %v4182_v43 = vrot.slane %v4099_v20, 1  ;;  %v4191_v7 = vadd.f32 %v4183_v51, %v8537_v0  ;;  %v4184_v22 = vrot.slane %v4170_v57, 1 }
 0x973   :  { %v8542_v20 = vadd.f32 %v3854_v13, %v3560_v30 }
 0x974   :  { %v4206_v56 = vmul.f32 0.5, %v4189_v36  ;;  %v4190_v10 = vadd.f32 %v4182_v43, %v8532_v29 }
 0x975   :  { %v4192_v43 = vadd.f32 %v4184_v22, %v8542_v20 }
 0x976   :  { %7101 = vtanh.f32 %v4206_v56  ;;  %v4210_v34 = vmul.f32 0.5, %v4190_v10 }
 0x977   :  { %v7096_v37 = vpop.eup %7095  ;;  %v4215_v40 = vmul.f32 0.5, %v4192_v43 }
 0x978   :  { %v4195_v49 = vmul.f32 0.5, %v7096_v37  ;;  %7103 = vtanh.f32 %v4210_v34 }
 0x979   :  { %v7098_v52 = vpop.eup %7097  ;;  %7105 = vtanh.f32 %v4202_v50 }
 0x97a   :  { %v4196_v53 = vadd.f32 0.5, %v4195_v49  ;;  %v4199_v12 = vmul.f32 0.5, %v7098_v52  ;;  %7107 = vtanh.f32 %v4191_v7  ;;  %v7100_v26 = vpop.eup %7099 }
 0x97c   :  { %v4200_v23 = vadd.f32 0.5, %v4199_v12  ;;  %v4220_v36 = vmul.f32 %v7100_v26, %v4196_v53 }
 0x97e   :  { %v4219_v33 = vmul.f32 0.0, %v4200_v23 }
 0x980   :  { %v8545_v18 = vadd.f32 %v4220_v36, %v4219_v33 }
 0x982   :  { %7109 = vtanh.f32 %v8545_v18 }
 0x983   :  { %v7102_v56 = vpop.eup %7101  ;;  %7111 = vtanh.f32 %v4215_v40 }
 0x984   :  { %v4208_v51 = vmul.f32 0.5, %v7102_v56 }
 0x985   :  { %v7104_v10 = vpop.eup %7103 }
 0x986   :  { %v4209_v34 = vadd.f32 0.5, %v4208_v51  ;;  %v4212_v50 = vmul.f32 0.5, %v7104_v10  ;;  %v7106_v13 = vpop.eup %7105 }
 0x987   :  { %v7108_v57 = vpop.eup %7107  ;;  %v4204_v44 = vmul.f32 0.5, %v7106_v13 }
 0x988   :  { %v4213_v37 = vadd.f32 0.5, %v4212_v50  ;;  %v4225_v49 = vmul.f32 %v7108_v57, %v4209_v34 }
 0x989   :  { %v4205_v52 = vadd.f32 0.5, %v4204_v44 }
 0x98a   :  { %v4224_v30 = vmul.f32 0.0, %v4213_v37 }
 0x98c   :  { %v8548_v7 = vadd.f32 %v4225_v49, %v4224_v30 }
 0x98e   :  { %7113 = vtanh.f32 %v8548_v7 }
 0x98f   :  { %v7110_v53 = vpop.eup %7109 }
 0x990   :  { %v8551_v12 = vmul.f32 %v7110_v53, %v4205_v52  ;;  %v7112_v22 = vpop.eup %7111 }
 0x991   :  { %v4217_v23 = vmul.f32 0.5, %v7112_v22 }
 0x992   :  { %6889 = vmatmul.mubr.msk.f32.vlgmr.msra.gmra.mxu0 %vm217_vm0, %v8551_v12  ;;  %6890 = vmatmul.mubr.msk.f32.vlgmr.msra.gmra.mxu1 %vm217_vm0, %v8551_v12 }
 0x993   :  { %4403 = vmatpush1.msra.mxu0 %v8432_v2  ;;  %4474 = vmatpush1.msra.mxu1 %v8434_v11  ;;  %v4218_v26 = vadd.f32 0.5, %v4217_v23 }
 0x994   :  { %4404 = vmatprep.subr.mxu0 %v8438_v42  ;;  %4475 = vmatprep.subr.mxu1 %v8440_v9 }
 0x995   :  { %4405 = vmatpush1.msra.mxu0 %v8444_v15  ;;  %4476 = vmatpush1.msra.mxu1 %v8446_v25 }
 0x996   :  { %4406 = vmatprep.subr.mxu0 %v8450_v19  ;;  %4477 = vmatprep.subr.mxu1 %v8452_v28 }
 0x997   :  { %4407 = vmatpush1.msra.mxu0 %v8456_v6  ;;  %4478 = vmatpush1.msra.mxu1 %v8458_v4 }
 0x998   :  { %4408 = vmatprep.subr.mxu0 %v8462_v14  ;;  %4479 = vmatprep.subr.mxu1 %v8464_v45 }
 0x999   :  { %4409 = vmatpush1.msra.mxu0 %v8468_v48  ;;  %4442 = vmatprep.mubr.f32.mxu0 %v9095_v5 }
 0x99a   :  { %4480 = vmatpush1.msra.mxu1 %v8472_v16  ;;  %4513 = vmatprep.mubr.f32.mxu1 %v9095_v5 }
 0x99b   :  { %v7114_v33 = vpop.eup %7113  ;;  %4622 = vmatprep.subr.mxu0 %v8373_v58  ;;  %4693 = vmatprep.subr.mxu1 %v8375_v39 }
 0x99c   :  { %v8575_v36 = vmul.f32 %v7114_v33, %v4218_v26 }
 0x99e   :  { %9112 = vst [vmem:[#allocation31_spill] sm:$0xff] %v8575_v36  ;;  %v4375_v43 = vrot.slane %v8575_v36, 7 }
 0x9a0   :  { %6891 = vmatmul.mubr.msk.f32.vlgmr.msra.gmra.mxu0 %vm217_vm0, %v4375_v43  ;;  %6892 = vmatmul.mubr.msk.f32.vlgmr.msra.gmra.mxu1 %vm217_vm0, %v4375_v43 }
 0x9a1   :  { %4623 = vmatpush1.msra.mxu0 %v8378_v41  ;;  %4694 = vmatpush1.msra.mxu1 %v8380_v47 }
 0x9a2   :  { %4624 = vmatprep.subr.mxu0 %v8386_v35  ;;  %4695 = vmatprep.subr.mxu1 %v8388_v31 }
 0x9a3   :  { %4625 = vmatpush1.msra.mxu0 %v8392_v32  ;;  %4696 = vmatpush1.msra.mxu1 %v8394_v8 }
 0x9a4   :  { %4626 = vmatprep.subr.mxu0 %v8398_v46  ;;  %4697 = vmatprep.subr.mxu1 %v8400_v54 }
 0x9a5   :  { %4627 = vmatpush1.msra.mxu0 %v8404_v55  ;;  %4698 = vmatpush1.msra.mxu1 %v8406_v59 }
 0x9a6   :  { %4628 = vmatprep.subr.mxu0 %v8410_v17  ;;  %4699 = vmatprep.subr.mxu1 %v8412_v60 }
 0x9a7   :  { %4629 = vmatpush1.msra.mxu0 %v8416_v61  ;;  %4662 = vmatprep.mubr.f32.mxu0 %v9095_v5 }
 0x9a8   :  { %4700 = vmatpush1.msra.mxu1 %v8420_v62  ;;  %4733 = vmatprep.mubr.f32.mxu1 %v9095_v5 }
 0x9a9   :  { %4768 = vmatprep.subr.mxu0 %v8426_v63  ;;  %4839 = vmatprep.subr.mxu1 %v8428_v1 }
 0xa52   :  { %v4298_v40 = vpop.f32.mrf.mxu0  ;;  %v4369_v51 = vpop.f32.mrf.mxu1 }
 0xa53   :  { %v4524_v56 = vrot.slane %v4298_v40, 7  ;;  %v4526_v37 = vrot.slane %v4369_v51, 7 }
 0xa54   :  { %v4300_v10 = vpop.f32.mrf.mxu0  ;;  %v4371_v30 = vpop.f32.mrf.mxu1 }
 0xa55   :  { %v4532_v34 = vadd.f32 %v4524_v56, %v8509_v27  ;;  %v4525_v50 = vrot.slane %v4300_v10, 7  ;;  %v4534_v49 = vadd.f32 %v4526_v37, %v8517_v3  ;;  %v4527_v52 = vrot.slane %v4371_v30, 7 }
 0xa57   :  { %v4552_v13 = vmul.f32 0.5, %v4532_v34  ;;  %v4533_v57 = vadd.f32 %v4525_v50, %v8513_v24  ;;  %v4535_v53 = vadd.f32 %v4527_v52, %v8526_v21 }
 0xa59   :  { %7115 = vtanh.f32 %v4552_v13  ;;  %v4556_v44 = vmul.f32 0.5, %v4533_v57  ;;  %v4561_v56 = vmul.f32 0.5, %v4535_v53 }
 0xa5b   :  { %7117 = vtanh.f32 %v4556_v44 }
 0xa5c   :  { %7119 = vtanh.f32 %v4534_v49 }
 0xa60   :  { %v4444_v22 = vpop.f32.mrf.mxu0  ;;  %v4515_v26 = vpop.f32.mrf.mxu1 }
 0xa61   :  { %v4540_v23 = vrot.slane %v4444_v22, 2  ;;  %v4542_v10 = vrot.slane %v4515_v26, 2  ;;  %v4579_v22 = vrot.slane %v8545_v18, 7 }
 0xa62   :  { %v4446_v33 = vpop.f32.mrf.mxu0  ;;  %v4517_v44 = vpop.f32.mrf.mxu1 }
 0xa63   :  { %v4548_v43 = vadd.f32 %v4540_v23, %v8528_v38  ;;  %v4541_v40 = vrot.slane %v4446_v33, 2  ;;  %v4550_v52 = vadd.f32 %v4542_v10, %v8537_v0  ;;  %v4543_v53 = vrot.slane %v4517_v44, 2 }
 0xa65   :  { %v4565_v51 = vmul.f32 0.5, %v4548_v43  ;;  %v4549_v34 = vadd.f32 %v4541_v40, %v8532_v29 }
 0xa66   :  { %v7116_v50 = vpop.eup %7115 }
 0xa67   :  { %v4554_v13 = vmul.f32 0.5, %v7116_v50  ;;  %7121 = vtanh.f32 %v4565_v51  ;;  %v4569_v37 = vmul.f32 0.5, %v4549_v34  ;;  %v4551_v51 = vadd.f32 %v4543_v53, %v8542_v20 }
 0xa68   :  { %v7118_v57 = vpop.eup %7117  ;;  %7123 = vtanh.f32 %v4561_v56 }
 0xa69   :  { %v4555_v30 = vadd.f32 0.5, %v4554_v13  ;;  %v4558_v49 = vmul.f32 0.5, %v7118_v57  ;;  %7125 = vtanh.f32 %v4569_v37  ;;  %v7120_v33 = vpop.eup %7119  ;;  %v4574_v56 = vmul.f32 0.5, %v4551_v51 }
 0xa6a   :  { %7127 = vtanh.f32 %v4550_v52 }
 0xa6b   :  { %v4559_v23 = vadd.f32 0.5, %v4558_v49  ;;  %v4582_v43 = vmul.f32 %v7120_v33, %v4555_v30  ;;  %v4587_v49 = vrot.slane %v8548_v7, 1 }
 0xa6d   :  { %v4581_v26 = vmul.f32 %v4579_v22, %v4559_v23 }
 0xa6f   :  { %v8606_v40 = vadd.f32 %v4582_v43, %v4581_v26 }
 0xa71   :  { %7129 = vtanh.f32 %v8606_v40 }
 0xa72   :  { %7131 = vtanh.f32 %v4574_v56 }
 0xa74   :  { %v7122_v34 = vpop.eup %7121 }
 0xa75   :  { %v7124_v50 = vpop.eup %7123  ;;  %v4567_v13 = vmul.f32 0.5, %v7122_v34 }
 0xa76   :  { %v7126_v10 = vpop.eup %7125  ;;  %v4563_v18 = vmul.f32 0.5, %v7124_v50 }
 0xa77   :  { %v4568_v37 = vadd.f32 0.5, %v4567_v13  ;;  %v4571_v57 = vmul.f32 0.5, %v7126_v10  ;;  %v7128_v30 = vpop.eup %7127 }
 0xa78   :  { %v4564_v23 = vadd.f32 0.5, %v4563_v18 }
 0xa79   :  { %v4572_v44 = vadd.f32 0.5, %v4571_v57  ;;  %v4590_v22 = vmul.f32 %v7128_v30, %v4568_v37 }
 0xa7b   :  { %v4589_v52 = vmul.f32 %v4587_v49, %v4572_v44 }
 0xa7d   :  { %v8611_v33 = vadd.f32 %v4590_v22, %v4589_v52 }
 0xa7e   :  { %v7130_v53 = vpop.eup %7129 }
 0xa7f   :  { %v8613_v26 = vmul.f32 %v7130_v53, %v4564_v23  ;;  %7133 = vtanh.f32 %v8611_v33  ;;  %v7132_v51 = vpop.eup %7131 }
 0xa80   :  { %v4576_v7 = vmul.f32 0.5, %v7132_v51 }
 0xa81   :  { %v4595_v43 = vrot.slane %v8613_v26, 1 }
 0xa82   :  { %v4577_v56 = vadd.f32 0.5, %v4576_v7 }
 0xa83   :  { %6893 = vmatmul.mubr.msk.f32.vlgmr.msra.gmra.mxu0 %vm217_vm0, %v4595_v43  ;;  %6894 = vmatmul.mubr.msk.f32.vlgmr.msra.gmra.mxu1 %vm217_vm0, %v4595_v43 }
 0xa84   :  { %4769 = vmatpush1.msra.mxu0 %v8432_v2  ;;  %4840 = vmatpush1.msra.mxu1 %v8434_v11 }
 0xa85   :  { %4770 = vmatprep.subr.mxu0 %v8438_v42  ;;  %4841 = vmatprep.subr.mxu1 %v8440_v9 }
 0xa86   :  { %4771 = vmatpush1.msra.mxu0 %v8444_v15  ;;  %4842 = vmatpush1.msra.mxu1 %v8446_v25 }
 0xa87   :  { %4772 = vmatprep.subr.mxu0 %v8450_v19  ;;  %4843 = vmatprep.subr.mxu1 %v8452_v28 }
 0xa88   :  { %4773 = vmatpush1.msra.mxu0 %v8456_v6  ;;  %4844 = vmatpush1.msra.mxu1 %v8458_v4 }
 0xa89   :  { %4774 = vmatprep.subr.mxu0 %v8462_v14  ;;  %4845 = vmatprep.subr.mxu1 %v8464_v45 }
 0xa8a   :  { %4775 = vmatpush1.msra.mxu0 %v8468_v48  ;;  %4808 = vmatprep.mubr.f32.mxu0 %v9095_v5 }
 0xa8b   :  { %4846 = vmatpush1.msra.mxu1 %v8472_v16  ;;  %4879 = vmatprep.mubr.f32.mxu1 %v9095_v5 }
 0xa8c   :  { %v7134_v34 = vpop.eup %7133  ;;  %4988 = vmatprep.subr.mxu0 %v8373_v58  ;;  %5059 = vmatprep.subr.mxu1 %v8375_v39 }
 0xa8d   :  { %v8637_v50 = vmul.f32 %v7134_v34, %v4577_v56 }
 0xa8f   :  { %9113 = vst [vmem:[#allocation30_spill] sm:$0xff] %v8637_v50  ;;  %v4741_v13 = vrot.slane %v8637_v50, 6 }
 0xa91   :  { %6895 = vmatmul.mubr.msk.f32.vlgmr.msra.gmra.mxu0 %vm217_vm0, %v4741_v13  ;;  %6896 = vmatmul.mubr.msk.f32.vlgmr.msra.gmra.mxu1 %vm217_vm0, %v4741_v13 }
 0xa92   :  { %4989 = vmatpush1.msra.mxu0 %v8378_v41  ;;  %5060 = vmatpush1.msra.mxu1 %v8380_v47 }
 0xa93   :  { %4990 = vmatprep.subr.mxu0 %v8386_v35  ;;  %5061 = vmatprep.subr.mxu1 %v8388_v31 }
 0xa94   :  { %4991 = vmatpush1.msra.mxu0 %v8392_v32  ;;  %5062 = vmatpush1.msra.mxu1 %v8394_v8 }
 0xa95   :  { %4992 = vmatprep.subr.mxu0 %v8398_v46  ;;  %5063 = vmatprep.subr.mxu1 %v8400_v54 }
 0xa96   :  { %4993 = vmatpush1.msra.mxu0 %v8404_v55  ;;  %5064 = vmatpush1.msra.mxu1 %v8406_v59 }
 0xa97   :  { %4994 = vmatprep.subr.mxu0 %v8410_v17  ;;  %5065 = vmatprep.subr.mxu1 %v8412_v60 }
 0xa98   :  { %4995 = vmatpush1.msra.mxu0 %v8416_v61  ;;  %5028 = vmatprep.mubr.f32.mxu0 %v9095_v5 }
 0xa99   :  { %5066 = vmatpush1.msra.mxu1 %v8420_v62  ;;  %5099 = vmatprep.mubr.f32.mxu1 %v9095_v5 }
 0xa9a   :  { %5134 = vmatprep.subr.mxu0 %v8426_v63  ;;  %5205 = vmatprep.subr.mxu1 %v8428_v1 }
 0xb43   :  { %v4664_v10 = vpop.f32.mrf.mxu0  ;;  %v4735_v57 = vpop.f32.mrf.mxu1 }
 0xb44   :  { %v4890_v37 = vrot.slane %v4664_v10, 6  ;;  %v4892_v52 = vrot.slane %v4735_v57, 6 }
 0xb45   :  { %v4666_v18 = vpop.f32.mrf.mxu0  ;;  %v4737_v53 = vpop.f32.mrf.mxu1 }
 0xb46   :  { %v4898_v44 = vadd.f32 %v4890_v37, %v8509_v27  ;;  %v4891_v49 = vrot.slane %v4666_v18, 6  ;;  %v4900_v43 = vadd.f32 %v4892_v52, %v8517_v3  ;;  %v4893_v51 = vrot.slane %v4737_v53, 6 }
 0xb48   :  { %v4918_v30 = vmul.f32 0.5, %v4898_v44  ;;  %v4899_v22 = vadd.f32 %v4891_v49, %v8513_v24  ;;  %v4901_v7 = vadd.f32 %v4893_v51, %v8526_v21 }
 0xb4a   :  { %7135 = vtanh.f32 %v4918_v30  ;;  %v4922_v23 = vmul.f32 0.5, %v4899_v22  ;;  %v4927_v57 = vmul.f32 0.5, %v4901_v7 }
 0xb4c   :  { %7137 = vtanh.f32 %v4922_v23 }
 0xb4d   :  { %7139 = vtanh.f32 %v4900_v43 }
 0xb51   :  { %v4810_v56 = vpop.f32.mrf.mxu0  ;;  %v4881_v13 = vpop.f32.mrf.mxu1 }
 0xb52   :  { %v4906_v34 = vrot.slane %v4810_v56, 3  ;;  %v4908_v49 = vrot.slane %v4881_v13, 3 }
 0xb53   :  { %v4812_v10 = vpop.f32.mrf.mxu0  ;;  %v4883_v53 = vpop.f32.mrf.mxu1 }
 0xb54   :  { %v4914_v37 = vadd.f32 %v4906_v34, %v8528_v38  ;;  %v4907_v18 = vrot.slane %v4812_v10, 3  ;;  %v4916_v56 = vadd.f32 %v4908_v49, %v8537_v0  ;;  %v4945_v34 = vrot.slane %v8606_v40, 7 }
 0xb55   :  { %v4909_v7 = vrot.slane %v4883_v53, 3 }
 0xb56   :  { %v4931_v44 = vmul.f32 0.5, %v4914_v37  ;;  %v4915_v30 = vadd.f32 %v4907_v18, %v8532_v29 }
 0xb57   :  { %v7136_v22 = vpop.eup %7135 }
 0xb58   :  { %v4920_v36 = vmul.f32 0.5, %v7136_v22  ;;  %7141 = vtanh.f32 %v4931_v44  ;;  %v4935_v52 = vmul.f32 0.5, %v4915_v30  ;;  %v4917_v44 = vadd.f32 %v4909_v7, %v8542_v20 }
 0xb59   :  { %v7138_v23 = vpop.eup %7137  ;;  %7143 = vtanh.f32 %v4927_v57 }
 0xb5a   :  { %v4921_v43 = vadd.f32 0.5, %v4920_v36  ;;  %v4924_v51 = vmul.f32 0.5, %v7138_v23  ;;  %7145 = vtanh.f32 %v4935_v52  ;;  %v7140_v10 = vpop.eup %7139  ;;  %v4940_v57 = vmul.f32 0.5, %v4917_v44 }
 0xb5b   :  { %7147 = vtanh.f32 %v4916_v56 }
 0xb5c   :  { %v4925_v50 = vadd.f32 0.5, %v4924_v51  ;;  %v4948_v37 = vmul.f32 %v7140_v10, %v4921_v43 }
 0xb5e   :  { %v4947_v13 = vmul.f32 %v4945_v34, %v4925_v50  ;;  %v4953_v50 = vrot.slane %v8611_v33, 1 }
 0xb60   :  { %v8668_v18 = vadd.f32 %v4948_v37, %v4947_v13  ;;  %v6786_v37 = vsel %vm3437_vm1, %v8551_v12, %v8613_v26 }
 0xb62   :  { %7149 = vtanh.f32 %v8668_v18 }
 0xb63   :  { %7151 = vtanh.f32 %v4940_v57 }
 0xb65   :  { %v7142_v36 = vpop.eup %7141 }
 0xb66   :  { %v7144_v30 = vpop.eup %7143  ;;  %v4933_v22 = vmul.f32 0.5, %v7142_v36 }
 0xb67   :  { %v7146_v49 = vpop.eup %7145  ;;  %v4929_v40 = vmul.f32 0.5, %v7144_v30 }
 0xb68   :  { %v4934_v52 = vadd.f32 0.5, %v4933_v22  ;;  %v4937_v23 = vmul.f32 0.5, %v7146_v49  ;;  %v7148_v43 = vpop.eup %7147 }
 0xb69   :  { %v4930_v34 = vadd.f32 0.5, %v4929_v40 }
 0xb6a   :  { %v4938_v53 = vadd.f32 0.5, %v4937_v23  ;;  %v4956_v56 = vmul.f32 %v7148_v43, %v4934_v52 }
 0xb6c   :  { %v4955_v51 = vmul.f32 %v4953_v50, %v4938_v53 }
 0xb6e   :  { %v8673_v10 = vadd.f32 %v4956_v56, %v4955_v51 }
 0xb6f   :  { %v7150_v7 = vpop.eup %7149 }
 0xb70   :  { %v4951_v13 = vmul.f32 %v7150_v7, %v4930_v34  ;;  %7153 = vtanh.f32 %v8673_v10  ;;  %v7152_v33 = vpop.eup %7151 }
 0xb71   :  { %v4942_v12 = vmul.f32 0.5, %v7152_v33 }
 0xb72   :  { %v4961_v44 = vrot.slane %v4951_v13, 2  ;;  %v8680_v57 = vsel %vm3439_vm2, %v6786_v37, %v4951_v13 }
 0xb73   :  { %v4943_v26 = vadd.f32 0.5, %v4942_v12  ;;  %v5311_v12 = vrot.slane %v8668_v18, 7 }
 0xb74   :  { %6897 = vmatmul.mubr.msk.f32.vlgmr.msra.gmra.mxu0 %vm217_vm0, %v4961_v44  ;;  %6898 = vmatmul.mubr.msk.f32.vlgmr.msra.gmra.mxu1 %vm217_vm0, %v4961_v44 }
 0xb75   :  { %5135 = vmatpush1.msra.mxu0 %v8432_v2  ;;  %5206 = vmatpush1.msra.mxu1 %v8434_v11 }
 0xb76   :  { %5136 = vmatprep.subr.mxu0 %v8438_v42  ;;  %5207 = vmatprep.subr.mxu1 %v8440_v9 }
 0xb77   :  { %5137 = vmatpush1.msra.mxu0 %v8444_v15  ;;  %5208 = vmatpush1.msra.mxu1 %v8446_v25 }
 0xb78   :  { %5138 = vmatprep.subr.mxu0 %v8450_v19  ;;  %5209 = vmatprep.subr.mxu1 %v8452_v28 }
 0xb79   :  { %5139 = vmatpush1.msra.mxu0 %v8456_v6  ;;  %5210 = vmatpush1.msra.mxu1 %v8458_v4 }
 0xb7a   :  { %5140 = vmatprep.subr.mxu0 %v8462_v14  ;;  %5211 = vmatprep.subr.mxu1 %v8464_v45 }
 0xb7b   :  { %5141 = vmatpush1.msra.mxu0 %v8468_v48  ;;  %5174 = vmatprep.mubr.f32.mxu0 %v9095_v5 }
 0xb7c   :  { %5212 = vmatpush1.msra.mxu1 %v8472_v16  ;;  %5245 = vmatprep.mubr.f32.mxu1 %v9095_v5 }
 0xb7d   :  { %v7154_v36 = vpop.eup %7153  ;;  %5354 = vmatprep.subr.mxu0 %v8373_v58  ;;  %5425 = vmatprep.subr.mxu1 %v8375_v39 }
 0xb7e   :  { %v8702_v30 = vmul.f32 %v7154_v36, %v4943_v26 }
 0xb80   :  { %9114 = vst [vmem:[#allocation29_spill] sm:$0xff] %v8702_v30  ;;  %v5107_v22 = vrot.slane %v8702_v30, 5 }
 0xb82   :  { %6899 = vmatmul.mubr.msk.f32.vlgmr.msra.gmra.mxu0 %vm217_vm0, %v5107_v22  ;;  %6900 = vmatmul.mubr.msk.f32.vlgmr.msra.gmra.mxu1 %vm217_vm0, %v5107_v22 }
 0xb83   :  { %5355 = vmatpush1.msra.mxu0 %v8378_v41  ;;  %5426 = vmatpush1.msra.mxu1 %v8380_v47 }
 0xb84   :  { %5356 = vmatprep.subr.mxu0 %v8386_v35  ;;  %5427 = vmatprep.subr.mxu1 %v8388_v31 }
 0xb85   :  { %5357 = vmatpush1.msra.mxu0 %v8392_v32  ;;  %5428 = vmatpush1.msra.mxu1 %v8394_v8 }
 0xb86   :  { %5358 = vmatprep.subr.mxu0 %v8398_v46  ;;  %5429 = vmatprep.subr.mxu1 %v8400_v54 }
 0xb87   :  { %5359 = vmatpush1.msra.mxu0 %v8404_v55  ;;  %5430 = vmatpush1.msra.mxu1 %v8406_v59 }
 0xb88   :  { %5360 = vmatprep.subr.mxu0 %v8410_v17  ;;  %5431 = vmatprep.subr.mxu1 %v8412_v60 }
 0xb89   :  { %5361 = vmatpush1.msra.mxu0 %v8416_v61  ;;  %5394 = vmatprep.mubr.f32.mxu0 %v9095_v5 }
 0xb8a   :  { %5432 = vmatpush1.msra.mxu1 %v8420_v62  ;;  %5465 = vmatprep.mubr.f32.mxu1 %v9095_v5 }
 0xb8b   :  { %5500 = vmatprep.subr.mxu0 %v8426_v63  ;;  %5571 = vmatprep.subr.mxu1 %v8428_v1 }
 0xc34   :  { %v5030_v58 = vpop.f32.mrf.mxu0  ;;  %v5101_v41 = vpop.f32.mrf.mxu1 }
 0xc35   :  { %v5256_v39 = vrot.slane %v5030_v58, 5  ;;  %v5258_v8 = vrot.slane %v5101_v41, 5 }
 0xc36   :  { %v5032_v47 = vpop.f32.mrf.mxu0  ;;  %v5103_v55 = vpop.f32.mrf.mxu1 }
 0xc37   :  { %v5264_v35 = vadd.f32 %v5256_v39, %v8509_v27  ;;  %v5257_v31 = vrot.slane %v5032_v47, 5  ;;  %v5266_v59 = vadd.f32 %v5258_v8, %v8517_v3  ;;  %v5259_v17 = vrot.slane %v5103_v55, 5 }
 0xc39   :  { %v5284_v32 = vmul.f32 0.5, %v5264_v35  ;;  %v5265_v46 = vadd.f32 %v5257_v31, %v8513_v24  ;;  %v5267_v60 = vadd.f32 %v5259_v17, %v8526_v21 }
 0xc3b   :  { %7155 = vtanh.f32 %v5284_v32  ;;  %v5288_v54 = vmul.f32 0.5, %v5265_v46  ;;  %v5293_v23 = vmul.f32 0.5, %v5267_v60 }
 0xc3d   :  { %7157 = vtanh.f32 %v5288_v54 }
 0xc3e   :  { %7159 = vtanh.f32 %v5266_v59  ;;  %v5319_v59 = vrot.slane %v8673_v10, 1 }
 0xc42   :  { %v5176_v61 = vpop.f32.mrf.mxu0  ;;  %v5247_v63 = vpop.f32.mrf.mxu1 }
 0xc43   :  { %v5272_v62 = vrot.slane %v5176_v61, 4  ;;  %v5274_v53 = vrot.slane %v5247_v63, 4 }
 0xc44   :  { %v5178_v1 = vpop.f32.mrf.mxu0  ;;  %v5249_v7 = vpop.f32.mrf.mxu1 }
 0xc45   :  { %v5280_v49 = vadd.f32 %v5272_v62, %v8528_v38  ;;  %v5273_v52 = vrot.slane %v5178_v1, 4  ;;  %v5282_v44 = vadd.f32 %v5274_v53, %v8537_v0  ;;  %v5275_v26 = vrot.slane %v5249_v7, 4  ;;  %v8801_v53 = vld [vmem:[#allocation13 + $0x30] sm:$0xff]  ;;  %v8821_v7 = vld [vmem:[#allocation14 + $0x78] sm:$0xff] }
 0xc47   :  { %v5297_v40 = vmul.f32 0.5, %v5280_v49  ;;  %v5281_v50 = vadd.f32 %v5273_v52, %v8532_v29  ;;  %v5283_v41 = vadd.f32 %v5275_v26, %v8542_v20 }
 0xc48   :  { %v7156_v43 = vpop.eup %7155 }
 0xc49   :  { %v5286_v51 = vmul.f32 0.5, %v7156_v43  ;;  %7161 = vtanh.f32 %v5297_v40  ;;  %v5301_v56 = vmul.f32 0.5, %v5281_v50  ;;  %v5306_v47 = vmul.f32 0.5, %v5283_v41  ;;  %v8804_v50 = vld [vmem:[#allocation13 + $0x8] sm:$0xff]  ;;  %v8807_v43 = vld [vmem:[#allocation13 + $0x18] sm:$0xff] }
 0xc4a   :  { %v7158_v34 = vpop.eup %7157  ;;  %7163 = vtanh.f32 %v5293_v23 }
 0xc4b   :  { %v5287_v13 = vadd.f32 0.5, %v5286_v51  ;;  %v5290_v37 = vmul.f32 0.5, %v7158_v34  ;;  %7165 = vtanh.f32 %v5301_v56  ;;  %v7160_v36 = vpop.eup %7159  ;;  %v8810_v51 = vld [vmem:[#allocation13] sm:$0xff]  ;;  %v8814_v56 = vld [vmem:[#allocation13 + $0x10] sm:$0xff]  ;;  %v8818_v34 = vld [vmem:[#allocation14 + $0x68] sm:$0xff] }
 0xc4c   :  { %7167 = vtanh.f32 %v5282_v44 }
 0xc4d   :  { %v5291_v33 = vadd.f32 0.5, %v5290_v37  ;;  %v5314_v58 = vmul.f32 %v7160_v36, %v5287_v13 }
 0xc4f   :  { %v5313_v22 = vmul.f32 %v5311_v12, %v5291_v33 }
 0xc51   :  { %v8733_v39 = vadd.f32 %v5314_v58, %v5313_v22 }
 0xc53   :  { %7169 = vtanh.f32 %v8733_v39 }
 0xc54   :  { %7171 = vtanh.f32 %v5306_v47 }
 0xc56   :  { %v7162_v35 = vpop.eup %7161 }
 0xc57   :  { %v7164_v31 = vpop.eup %7163  ;;  %v5299_v32 = vmul.f32 0.5, %v7162_v35 }
 0xc58   :  { %v7166_v8 = vpop.eup %7165  ;;  %v5295_v18 = vmul.f32 0.5, %v7164_v31 }
 0xc59   :  { %v5300_v46 = vadd.f32 0.5, %v5299_v32  ;;  %v5303_v54 = vmul.f32 0.5, %v7166_v8  ;;  %v7168_v17 = vpop.eup %7167 }
 0xc5a   :  { %v5296_v62 = vadd.f32 0.5, %v5295_v18 }
 0xc5b   :  { %v5304_v55 = vadd.f32 0.5, %v5303_v54  ;;  %v5322_v61 = vmul.f32 %v7168_v17, %v5300_v46 }
 0xc5d   :  { %v5321_v60 = vmul.f32 %v5319_v59, %v5304_v55 }
 0xc5f   :  { %v8738_v63 = vadd.f32 %v5322_v61, %v5321_v60 }
 0xc60   :  { %v7170_v1 = vpop.eup %7169 }
 0xc61   :  { %v5317_v49 = vmul.f32 %v7170_v1, %v5296_v62  ;;  %7173 = vtanh.f32 %v8738_v63  ;;  %v7172_v10 = vpop.eup %7171 }
 0xc62   :  { %v5308_v40 = vmul.f32 0.5, %v7172_v10 }
 0xc63   :  { %v5327_v52 = vrot.slane %v5317_v49, 3  ;;  %v8743_v23 = vsel %vm3441_vm3, %v8680_v57, %v5317_v49  ;;  %v8798_v57 = vld [vmem:[#allocation13 + $0x20] sm:$0xff] }
 0xc65   :  { %6901 = vmatmul.mubr.msk.f32.vlgmr.msra.gmra.mxu0 %vm217_vm0, %v5327_v52  ;;  %6902 = vmatmul.mubr.msk.f32.vlgmr.msra.gmra.mxu1 %vm217_vm0, %v5327_v52 }
 0xc66   :  { %5501 = vmatpush1.msra.mxu0 %v8432_v2  ;;  %5572 = vmatpush1.msra.mxu1 %v8434_v11  ;;  %v5309_v2 = vadd.f32 0.5, %v5308_v40 }
 0xc67   :  { %5502 = vmatprep.subr.mxu0 %v8438_v42  ;;  %5573 = vmatprep.subr.mxu1 %v8440_v9  ;;  %v8763_v42 = vld [vmem:[#allocation13 + $0x68] sm:$0xff]  ;;  %v8766_v9 = vld [vmem:[#allocation13 + $0x78] sm:$0xff] }
 0xc68   :  { %5503 = vmatpush1.msra.mxu0 %v8444_v15  ;;  %5574 = vmatpush1.msra.mxu1 %v8446_v25 }
 0xc69   :  { %5504 = vmatprep.subr.mxu0 %v8450_v19  ;;  %5575 = vmatprep.subr.mxu1 %v8452_v28  ;;  %v8774_v19 = vld [vmem:[#allocation13 + $0x60] sm:$0xff]  ;;  %v8777_v28 = vld [vmem:[#allocation13 + $0x70] sm:$0xff] }
 0xc6a   :  { %5505 = vmatpush1.msra.mxu0 %v8456_v6  ;;  %5576 = vmatpush1.msra.mxu1 %v8458_v4  ;;  %v8780_v6 = vld [vmem:[#allocation13 + $0x48] sm:$0xff]  ;;  %v8783_v4 = vld [vmem:[#allocation13 + $0x58] sm:$0xff] }
 0xc6b   :  { %5506 = vmatprep.subr.mxu0 %v8462_v14  ;;  %5577 = vmatprep.subr.mxu1 %v8464_v45  ;;  %v8786_v14 = vld [vmem:[#allocation13 + $0x40] sm:$0xff]  ;;  %v8789_v45 = vld [vmem:[#allocation13 + $0x50] sm:$0xff] }
 0xc6c   :  { %5507 = vmatpush1.msra.mxu0 %v8468_v48  ;;  %5540 = vmatprep.mubr.f32.mxu0 %v9095_v5  ;;  %v8792_v48 = vld [vmem:[#allocation13 + $0x28] sm:$0xff] }
 0xc6d   :  { %5578 = vmatpush1.msra.mxu1 %v8472_v16  ;;  %5611 = vmatprep.mubr.f32.mxu1 %v9095_v5  ;;  %v8795_v16 = vld [vmem:[#allocation13 + $0x38] sm:$0xff] }
 0xc6e   :  { %v7174_v11 = vpop.eup %7173  ;;  %5720 = vmatprep.subr.mxu0 %v8763_v42  ;;  %5791 = vmatprep.subr.mxu1 %v8766_v9 }
 0xc6f   :  { %v8769_v15 = vmul.f32 %v7174_v11, %v5309_v2 }
 0xc71   :  { %9115 = vst [vmem:[#allocation28_spill] sm:$0xff] %v8769_v15  ;;  %v5473_v25 = vrot.slane %v8769_v15, 4 }
 0xc73   :  { %6903 = vmatmul.mubr.msk.f32.vlgmr.msra.gmra.mxu0 %vm217_vm0, %v5473_v25  ;;  %6904 = vmatmul.mubr.msk.f32.vlgmr.msra.gmra.mxu1 %vm217_vm0, %v5473_v25 }
 0xc74   :  { %5721 = vmatpush1.msra.mxu0 %v8774_v19  ;;  %5792 = vmatpush1.msra.mxu1 %v8777_v28 }
 0xc75   :  { %5722 = vmatprep.subr.mxu0 %v8780_v6  ;;  %5793 = vmatprep.subr.mxu1 %v8783_v4 }
 0xc76   :  { %5723 = vmatpush1.msra.mxu0 %v8786_v14  ;;  %5794 = vmatpush1.msra.mxu1 %v8789_v45 }
 0xc77   :  { %5724 = vmatprep.subr.mxu0 %v8792_v48  ;;  %5795 = vmatprep.subr.mxu1 %v8795_v16 }
 0xc78   :  { %5725 = vmatpush1.msra.mxu0 %v8798_v57  ;;  %5796 = vmatpush1.msra.mxu1 %v8801_v53 }
 0xc79   :  { %5726 = vmatprep.subr.mxu0 %v8804_v50  ;;  %5797 = vmatprep.subr.mxu1 %v8807_v43 }
 0xc7a   :  { %5727 = vmatpush1.msra.mxu0 %v8810_v51  ;;  %5760 = vmatprep.mubr.f32.mxu0 %v9095_v5 }
 0xc7b   :  { %5798 = vmatpush1.msra.mxu1 %v8814_v56  ;;  %5831 = vmatprep.mubr.f32.mxu1 %v9095_v5 }
 0xc7c   :  { %5866 = vmatprep.subr.mxu0 %v8818_v34  ;;  %5937 = vmatprep.subr.mxu1 %v8821_v7 }
 0xd25   :  { %v5396_v13 = vpop.f32.mrf.mxu0  ;;  %v5467_v44 = vpop.f32.mrf.mxu1 }
 0xd26   :  { %v5622_v37 = vrot.slane %v5396_v13, 4  ;;  %v5624_v22 = vrot.slane %v5467_v44, 4 }
 0xd27   :  { %v5398_v33 = vpop.f32.mrf.mxu0  ;;  %v5469_v47 = vpop.f32.mrf.mxu1 }
 0xd28   :  { %v5630_v12 = vadd.f32 %v5622_v37, %v8509_v27  ;;  %v5623_v26 = vrot.slane %v5398_v33, 4  ;;  %v5632_v35 = vadd.f32 %v5624_v22, %v8517_v3  ;;  %v5625_v31 = vrot.slane %v5469_v47, 4 }
 0xd29   :  { %v5677_v37 = vrot.slane %v8733_v39, 7 }
 0xd2a   :  { %v5650_v36 = vmul.f32 0.5, %v5630_v12  ;;  %v5631_v58 = vadd.f32 %v5623_v26, %v8513_v24  ;;  %v5633_v32 = vadd.f32 %v5625_v31, %v8526_v21 }
 0xd2c   :  { %7175 = vtanh.f32 %v5650_v36  ;;  %v5654_v41 = vmul.f32 0.5, %v5631_v58  ;;  %v5659_v17 = vmul.f32 0.5, %v5633_v32 }
 0xd2e   :  { %7177 = vtanh.f32 %v5654_v41 }
 0xd2f   :  { %7179 = vtanh.f32 %v5632_v35 }
 0xd33   :  { %v5542_v8 = vpop.f32.mrf.mxu0  ;;  %v5613_v54 = vpop.f32.mrf.mxu1 }
 0xd34   :  { %v5638_v46 = vrot.slane %v5542_v8, 5  ;;  %v5640_v61 = vrot.slane %v5613_v54, 5  ;;  %v5685_v54 = vrot.slane %v8738_v63, 1 }
 0xd35   :  { %v5544_v18 = vpop.f32.mrf.mxu0  ;;  %v5615_v40 = vpop.f32.mrf.mxu1 }
 0xd36   :  { %v5646_v55 = vadd.f32 %v5638_v46, %v8528_v38  ;;  %v5639_v59 = vrot.slane %v5544_v18, 5  ;;  %v5648_v25 = vadd.f32 %v5640_v61, %v8537_v0  ;;  %v5641_v44 = vrot.slane %v5615_v40, 5  ;;  %v8852_v40 = vld [vmem:[#allocation14 + $0x48] sm:$0xff] }
 0xd38   :  { %v5663_v60 = vmul.f32 0.5, %v5646_v55  ;;  %v5647_v62 = vadd.f32 %v5639_v59, %v8532_v29  ;;  %v5649_v22 = vadd.f32 %v5641_v44, %v8542_v20  ;;  %v8870_v44 = vld [vmem:[#allocation14 + $0x20] sm:$0xff] }
 0xd39   :  { %v7176_v1 = vpop.eup %7175 }
 0xd3a   :  { %v5652_v49 = vmul.f32 0.5, %v7176_v1  ;;  %7181 = vtanh.f32 %v5663_v60  ;;  %v5667_v52 = vmul.f32 0.5, %v5647_v62  ;;  %v5672_v58 = vmul.f32 0.5, %v5649_v22  ;;  %v8882_v22 = vld [vmem:[#allocation14] sm:$0xff] }
 0xd3b   :  { %v7178_v10 = vpop.eup %7177  ;;  %7183 = vtanh.f32 %v5659_v17 }
 0xd3c   :  { %v5653_v2 = vadd.f32 0.5, %v5652_v49  ;;  %v5656_v11 = vmul.f32 0.5, %v7178_v10  ;;  %7185 = vtanh.f32 %v5667_v52  ;;  %v7180_v33 = vpop.eup %7179  ;;  %v8846_v52 = vld [vmem:[#allocation14 + $0x60] sm:$0xff]  ;;  %v8849_v10 = vld [vmem:[#allocation14 + $0x70] sm:$0xff] }
 0xd3d   :  { %7187 = vtanh.f32 %v5648_v25 }
 0xd3e   :  { %v5657_v13 = vadd.f32 0.5, %v5656_v11  ;;  %v5680_v26 = vmul.f32 %v7180_v33, %v5653_v2  ;;  %v8855_v2 = vld [vmem:[#allocation14 + $0x58] sm:$0xff]  ;;  %v8861_v11 = vld [vmem:[#allocation14 + $0x50] sm:$0xff] }
 0xd3f   :  { %v8873_v33 = vld [vmem:[#allocation14 + $0x30] sm:$0xff] }
 0xd40   :  { %v5679_v12 = vmul.f32 %v5677_v37, %v5657_v13  ;;  %v8864_v13 = vld [vmem:[#allocation14 + $0x28] sm:$0xff]  ;;  %v8867_v37 = vld [vmem:[#allocation14 + $0x38] sm:$0xff] }
 0xd42   :  { %v8832_v36 = vadd.f32 %v5680_v26, %v5679_v12  ;;  %v8876_v12 = vld [vmem:[#allocation14 + $0x8] sm:$0xff]  ;;  %v8879_v26 = vld [vmem:[#allocation14 + $0x18] sm:$0xff] }
 0xd44   :  { %7189 = vtanh.f32 %v8832_v36 }
 0xd45   :  { %7191 = vtanh.f32 %v5672_v58 }
 0xd47   :  { %v7182_v41 = vpop.eup %7181 }
 0xd48   :  { %v7184_v47 = vpop.eup %7183  ;;  %v5665_v35 = vmul.f32 0.5, %v7182_v41  ;;  %v8886_v41 = vld [vmem:[#allocation14 + $0x10] sm:$0xff] }
 0xd49   :  { %v7186_v31 = vpop.eup %7185  ;;  %v5661_v39 = vmul.f32 0.5, %v7184_v47 }
 0xd4a   :  { %v5666_v32 = vadd.f32 0.5, %v5665_v35  ;;  %v5669_v8 = vmul.f32 0.5, %v7186_v31  ;;  %v7188_v18 = vpop.eup %7187 }
 0xd4b   :  { %v5662_v17 = vadd.f32 0.5, %v5661_v39 }
 0xd4c   :  { %v5670_v46 = vadd.f32 0.5, %v5669_v8  ;;  %v5688_v59 = vmul.f32 %v7188_v18, %v5666_v32 }
 0xd4e   :  { %v5687_v55 = vmul.f32 %v5685_v54, %v5670_v46 }
 0xd50   :  { %v8837_v60 = vadd.f32 %v5688_v59, %v5687_v55 }
 0xd51   :  { %v7190_v61 = vpop.eup %7189 }
 0xd52   :  { %v5683_v62 = vmul.f32 %v7190_v61, %v5662_v17  ;;  %7193 = vtanh.f32 %v8837_v60  ;;  %v7192_v63 = vpop.eup %7191 }
 0xd53   :  { %v5674_v25 = vmul.f32 0.5, %v7192_v63 }
 0xd54   :  { %v5693_v1 = vrot.slane %v5683_v62, 4  ;;  %v8842_v49 = vsel %vm3443_vm4, %v8743_v23, %v5683_v62  ;;  %v8858_v23 = vld [vmem:[#allocation14 + $0x40] sm:$0xff] }
 0xd55   :  { %v5675_v58 = vadd.f32 0.5, %v5674_v25 }
 0xd56   :  { %6905 = vmatmul.mubr.msk.f32.vlgmr.msra.gmra.mxu0 %vm217_vm0, %v5693_v1  ;;  %6906 = vmatmul.mubr.msk.f32.vlgmr.msra.gmra.mxu1 %vm217_vm0, %v5693_v1 }
 0xd57   :  { %5867 = vmatpush1.msra.mxu0 %v8846_v52  ;;  %5938 = vmatpush1.msra.mxu1 %v8849_v10 }
 0xd58   :  { %5868 = vmatprep.subr.mxu0 %v8852_v40  ;;  %5939 = vmatprep.subr.mxu1 %v8855_v2 }
 0xd59   :  { %5869 = vmatpush1.msra.mxu0 %v8858_v23  ;;  %5940 = vmatpush1.msra.mxu1 %v8861_v11 }
 0xd5a   :  { %5870 = vmatprep.subr.mxu0 %v8864_v13  ;;  %5941 = vmatprep.subr.mxu1 %v8867_v37 }
 0xd5b   :  { %5871 = vmatpush1.msra.mxu0 %v8870_v44  ;;  %5942 = vmatpush1.msra.mxu1 %v8873_v33 }
 0xd5c   :  { %5872 = vmatprep.subr.mxu0 %v8876_v12  ;;  %5943 = vmatprep.subr.mxu1 %v8879_v26 }
 0xd5d   :  { %5873 = vmatpush1.msra.mxu0 %v8882_v22  ;;  %5906 = vmatprep.mubr.f32.mxu0 %v9095_v5 }
 0xd5e   :  { %5944 = vmatpush1.msra.mxu1 %v8886_v41  ;;  %5977 = vmatprep.mubr.f32.mxu1 %v9095_v5 }
 0xd5f   :  { %v7194_v47 = vpop.eup %7193  ;;  %6086 = vmatprep.subr.mxu0 %v8763_v42  ;;  %6157 = vmatprep.subr.mxu1 %v8766_v9 }
 0xd60   :  { %v8892_v35 = vmul.f32 %v7194_v47, %v5675_v58 }
 0xd62   :  { %v5839_v31 = vrot.slane %v8892_v35, 3 }
 0xd64   :  { %6907 = vmatmul.mubr.msk.f32.vlgmr.msra.gmra.mxu0 %vm217_vm0, %v5839_v31  ;;  %6908 = vmatmul.mubr.msk.f32.vlgmr.msra.gmra.mxu1 %vm217_vm0, %v5839_v31 }
 0xd65   :  { %6087 = vmatpush1.msra.mxu0 %v8774_v19  ;;  %6158 = vmatpush1.msra.mxu1 %v8777_v28 }
 0xd66   :  { %6088 = vmatprep.subr.mxu0 %v8780_v6  ;;  %6159 = vmatprep.subr.mxu1 %v8783_v4 }
 0xd67   :  { %6089 = vmatpush1.msra.mxu0 %v8786_v14  ;;  %6160 = vmatpush1.msra.mxu1 %v8789_v45 }
 0xd68   :  { %6090 = vmatprep.subr.mxu0 %v8792_v48  ;;  %6161 = vmatprep.subr.mxu1 %v8795_v16 }
 0xd69   :  { %6091 = vmatpush1.msra.mxu0 %v8798_v57  ;;  %6162 = vmatpush1.msra.mxu1 %v8801_v53 }
 0xd6a   :  { %6092 = vmatprep.subr.mxu0 %v8804_v50  ;;  %6163 = vmatprep.subr.mxu1 %v8807_v43 }
 0xd6b   :  { %6093 = vmatpush1.msra.mxu0 %v8810_v51  ;;  %6126 = vmatprep.mubr.f32.mxu0 %v9095_v5 }
 0xd6c   :  { %6164 = vmatpush1.msra.mxu1 %v8814_v56  ;;  %6197 = vmatprep.mubr.f32.mxu1 %v9095_v5 }
 0xd6d   :  { %6232 = vmatprep.subr.mxu0 %v8818_v34  ;;  %6303 = vmatprep.subr.mxu1 %v8821_v7 }
 0xe16   :  { %v5762_v32 = vpop.f32.mrf.mxu0  ;;  %v5833_v39 = vpop.f32.mrf.mxu1 }
 0xe17   :  { %v5988_v8 = vrot.slane %v5762_v32, 3  ;;  %v5990_v59 = vrot.slane %v5833_v39, 3 }
 0xe18   :  { %v5764_v46 = vpop.f32.mrf.mxu0  ;;  %v5835_v62 = vpop.f32.mrf.mxu1 }
 0xe19   :  { %v5996_v54 = vadd.f32 %v5988_v8, %v8509_v27  ;;  %v5989_v18 = vrot.slane %v5764_v46, 3  ;;  %v5998_v1 = vadd.f32 %v5990_v59, %v8517_v3  ;;  %v5991_v63 = vrot.slane %v5835_v62, 3 }
 0xe1b   :  { %v6016_v55 = vmul.f32 0.5, %v5996_v54  ;;  %v5997_v17 = vadd.f32 %v5989_v18, %v8513_v24  ;;  %v5999_v25 = vadd.f32 %v5991_v63, %v8526_v21 }
 0xe1d   :  { %7195 = vtanh.f32 %v6016_v55  ;;  %v6020_v61 = vmul.f32 0.5, %v5997_v17  ;;  %v6025_v39 = vmul.f32 0.5, %v5999_v25 }
 0xe1f   :  { %7197 = vtanh.f32 %v6020_v61 }
 0xe20   :  { %7199 = vtanh.f32 %v5998_v1 }
 0xe24   :  { %v5908_v58 = vpop.f32.mrf.mxu0  ;;  %v5979_v31 = vpop.f32.mrf.mxu1 }
 0xe25   :  { %v6004_v47 = vrot.slane %v5908_v58, 6  ;;  %v6006_v18 = vrot.slane %v5979_v31, 6 }
 0xe26   :  { %v5910_v32 = vpop.f32.mrf.mxu0  ;;  %v5981_v62 = vpop.f32.mrf.mxu1 }
 0xe27   :  { %v6012_v8 = vadd.f32 %v6004_v47, %v8528_v38  ;;  %v6005_v46 = vrot.slane %v5910_v32, 6  ;;  %v6014_v58 = vadd.f32 %v6006_v18, %v8537_v0  ;;  %v6043_v47 = vrot.slane %v8832_v36, 7 }
 0xe28   :  { %v6007_v25 = vrot.slane %v5981_v62, 6 }
 0xe29   :  { %v6029_v54 = vmul.f32 0.5, %v6012_v8  ;;  %v6013_v55 = vadd.f32 %v6005_v46, %v8532_v29 }
 0xe2a   :  { %v7196_v17 = vpop.eup %7195 }
 0xe2b   :  { %v6018_v30 = vmul.f32 0.5, %v7196_v17  ;;  %7201 = vtanh.f32 %v6029_v54  ;;  %v6033_v59 = vmul.f32 0.5, %v6013_v55  ;;  %v6015_v54 = vadd.f32 %v6007_v25, %v8542_v20 }
 0xe2c   :  { %v7198_v61 = vpop.eup %7197  ;;  %7203 = vtanh.f32 %v6025_v39 }
 0xe2d   :  { %v6019_v1 = vadd.f32 0.5, %v6018_v30  ;;  %v6022_v63 = vmul.f32 0.5, %v7198_v61  ;;  %7205 = vtanh.f32 %v6033_v59  ;;  %v7200_v32 = vpop.eup %7199  ;;  %v6038_v39 = vmul.f32 0.5, %v6015_v54 }
 0xe2e   :  { %7207 = vtanh.f32 %v6014_v58 }
 0xe2f   :  { %v6023_v15 = vadd.f32 0.5, %v6022_v63  ;;  %v6046_v8 = vmul.f32 %v7200_v32, %v6019_v1 }
 0xe31   :  { %v6045_v31 = vmul.f32 %v6043_v47, %v6023_v15  ;;  %v6051_v15 = vrot.slane %v8837_v60, 1 }
 0xe33   :  { %v8923_v46 = vadd.f32 %v6046_v8, %v6045_v31 }
 0xe35   :  { %7209 = vtanh.f32 %v8923_v46 }
 0xe36   :  { %7211 = vtanh.f32 %v6038_v39 }
 0xe38   :  { %v7202_v30 = vpop.eup %7201 }
 0xe39   :  { %v7204_v55 = vpop.eup %7203  ;;  %v6031_v17 = vmul.f32 0.5, %v7202_v30 }
 0xe3a   :  { %v7206_v18 = vpop.eup %7205  ;;  %v6027_v36 = vmul.f32 0.5, %v7204_v55 }
 0xe3b   :  { %v6032_v59 = vadd.f32 0.5, %v6031_v17  ;;  %v6035_v61 = vmul.f32 0.5, %v7206_v18  ;;  %v7208_v1 = vpop.eup %7207 }
 0xe3c   :  { %v6028_v47 = vadd.f32 0.5, %v6027_v36 }
 0xe3d   :  { %v6036_v62 = vadd.f32 0.5, %v6035_v61  ;;  %v6054_v58 = vmul.f32 %v7208_v1, %v6032_v59 }
 0xe3f   :  { %v6053_v63 = vmul.f32 %v6051_v15, %v6036_v62 }
 0xe41   :  { %v8928_v32 = vadd.f32 %v6054_v58, %v6053_v63 }
 0xe42   :  { %v7210_v25 = vpop.eup %7209 }
 0xe43   :  { %v6049_v31 = vmul.f32 %v7210_v25, %v6028_v47  ;;  %7213 = vtanh.f32 %v8928_v32  ;;  %v7212_v60 = vpop.eup %7211 }
 0xe44   :  { %v6040_v39 = vmul.f32 0.5, %v7212_v60 }
 0xe45   :  { %v6059_v8 = vrot.slane %v6049_v31, 5  ;;  %v8933_v54 = vsel %vm3445_vm5, %v8842_v49, %v6049_v31 }
 0xe46   :  { %v6041_v49 = vadd.f32 0.5, %v6040_v39 }
 0xe47   :  { %6909 = vmatmul.mubr.msk.f32.vlgmr.msra.gmra.mxu0 %vm217_vm0, %v6059_v8  ;;  %6910 = vmatmul.mubr.msk.f32.vlgmr.msra.gmra.mxu1 %vm217_vm0, %v6059_v8 }
 0xe48   :  { %6233 = vmatpush1.msra.mxu0 %v8846_v52  ;;  %6304 = vmatpush1.msra.mxu1 %v8849_v10 }
 0xe49   :  { %6234 = vmatprep.subr.mxu0 %v8852_v40  ;;  %6305 = vmatprep.subr.mxu1 %v8855_v2 }
 0xe4a   :  { %6235 = vmatpush1.msra.mxu0 %v8858_v23  ;;  %6306 = vmatpush1.msra.mxu1 %v8861_v11 }
 0xe4b   :  { %6236 = vmatprep.subr.mxu0 %v8864_v13  ;;  %6307 = vmatprep.subr.mxu1 %v8867_v37 }
 0xe4c   :  { %6237 = vmatpush1.msra.mxu0 %v8870_v44  ;;  %6308 = vmatpush1.msra.mxu1 %v8873_v33 }
 0xe4d   :  { %6238 = vmatprep.subr.mxu0 %v8876_v12  ;;  %6309 = vmatprep.subr.mxu1 %v8879_v26 }
 0xe4e   :  { %6239 = vmatpush1.msra.mxu0 %v8882_v22  ;;  %6272 = vmatprep.mubr.f32.mxu0 %v9095_v5 }
 0xe4f   :  { %6310 = vmatpush1.msra.mxu1 %v8886_v41  ;;  %6343 = vmatprep.mubr.f32.mxu1 %v9095_v5 }
 0xe50   :  { %v7214_v30 = vpop.eup %7213  ;;  %6452 = vmatprep.subr.mxu0 %v8763_v42  ;;  %6523 = vmatprep.subr.mxu1 %v8766_v9 }
 0xe51   :  { %v8955_v55 = vmul.f32 %v7214_v30, %v6041_v49  ;;  %v6409_v49 = vrot.slane %v8923_v46, 7 }
 0xe53   :  { %v6205_v17 = vrot.slane %v8955_v55, 2 }
 0xe55   :  { %6911 = vmatmul.mubr.msk.f32.vlgmr.msra.gmra.mxu0 %vm217_vm0, %v6205_v17  ;;  %6912 = vmatmul.mubr.msk.f32.vlgmr.msra.gmra.mxu1 %vm217_vm0, %v6205_v17 }
 0xe56   :  { %6453 = vmatpush1.msra.mxu0 %v8774_v19  ;;  %6524 = vmatpush1.msra.mxu1 %v8777_v28 }
 0xe57   :  { %6454 = vmatprep.subr.mxu0 %v8780_v6  ;;  %6525 = vmatprep.subr.mxu1 %v8783_v4 }
 0xe58   :  { %6455 = vmatpush1.msra.mxu0 %v8786_v14  ;;  %6526 = vmatpush1.msra.mxu1 %v8789_v45 }
 0xe59   :  { %6456 = vmatprep.subr.mxu0 %v8792_v48  ;;  %6527 = vmatprep.subr.mxu1 %v8795_v16 }
 0xe5a   :  { %6457 = vmatpush1.msra.mxu0 %v8798_v57  ;;  %6528 = vmatpush1.msra.mxu1 %v8801_v53 }
 0xe5b   :  { %6458 = vmatprep.subr.mxu0 %v8804_v50  ;;  %6529 = vmatprep.subr.mxu1 %v8807_v43 }
 0xe5c   :  { %6459 = vmatpush1.msra.mxu0 %v8810_v51  ;;  %6492 = vmatprep.mubr.f32.mxu0 %v9095_v5 }
 0xe5d   :  { %6530 = vmatpush1.msra.mxu1 %v8814_v56  ;;  %6563 = vmatprep.mubr.f32.mxu1 %v9095_v5 }
 0xe5e   :  { %6598 = vmatprep.subr.mxu0 %v8818_v34  ;;  %6669 = vmatprep.subr.mxu1 %v8821_v7 }
 0xf07   :  { %v6128_v42 = vpop.f32.mrf.mxu0  ;;  %v6199_v19 = vpop.f32.mrf.mxu1 }
 0xf08   :  { %v6354_v9 = vrot.slane %v6128_v42, 2  ;;  %v6356_v45 = vrot.slane %v6199_v19, 2 }
 0xf09   :  { %v6130_v28 = vpop.f32.mrf.mxu0  ;;  %v6201_v57 = vpop.f32.mrf.mxu1 }
 0xf0a   :  { %v6362_v6 = vadd.f32 %v6354_v9, %v8509_v27  ;;  %v6355_v4 = vrot.slane %v6130_v28, 2  ;;  %v6364_v53 = vadd.f32 %v6356_v45, %v8517_v3  ;;  %v6357_v50 = vrot.slane %v6201_v57, 2 }
 0xf0c   :  { %v6382_v14 = vmul.f32 0.5, %v6362_v6  ;;  %v6363_v48 = vadd.f32 %v6355_v4, %v8513_v24  ;;  %v6365_v43 = vadd.f32 %v6357_v50, %v8526_v21  ;;  %v6417_v50 = vrot.slane %v8928_v32, 1 }
 0xf0e   :  { %7215 = vtanh.f32 %v6382_v14  ;;  %v6386_v16 = vmul.f32 0.5, %v6363_v48  ;;  %v6391_v61 = vmul.f32 0.5, %v6365_v43 }
 0xf10   :  { %7217 = vtanh.f32 %v6386_v16 }
 0xf11   :  { %7219 = vtanh.f32 %v6364_v53 }
 0xf15   :  { %v6274_v51 = vpop.f32.mrf.mxu0  ;;  %v6345_v34 = vpop.f32.mrf.mxu1 }
 0xf16   :  { %v6370_v56 = vrot.slane %v6274_v51, 7  ;;  %v6372_v62 = vrot.slane %v6345_v34, 7 }
 0xf17   :  { %v6276_v7 = vpop.f32.mrf.mxu0  ;;  %v6347_v25 = vpop.f32.mrf.mxu1 }
 0xf18   :  { %v6378_v18 = vadd.f32 %v6370_v56, %v8528_v38  ;;  %v6371_v59 = vrot.slane %v6276_v7, 7  ;;  %v6380_v60 = vadd.f32 %v6372_v62, %v8537_v0  ;;  %v6373_v30 = vrot.slane %v6347_v25, 7 }
 0xf1a   :  { %v6395_v36 = vmul.f32 0.5, %v6378_v18  ;;  %v6379_v15 = vadd.f32 %v6371_v59, %v8532_v29  ;;  %v6381_v28 = vadd.f32 %v6373_v30, %v8542_v20 }
 0xf1b   :  { %v7216_v1 = vpop.eup %7215 }
 0xf1c   :  { %v6384_v63 = vmul.f32 0.5, %v7216_v1  ;;  %7221 = vtanh.f32 %v6395_v36  ;;  %v6399_v58 = vmul.f32 0.5, %v6379_v15  ;;  %v6404_v6 = vmul.f32 0.5, %v6381_v28 }
 0xf1d   :  { %v7218_v47 = vpop.eup %7217  ;;  %7223 = vtanh.f32 %v6391_v61 }
 0xf1e   :  { %v6385_v31 = vadd.f32 0.5, %v6384_v63  ;;  %v6388_v8 = vmul.f32 0.5, %v7218_v47  ;;  %7225 = vtanh.f32 %v6399_v58  ;;  %v7220_v17 = vpop.eup %7219 }
 0xf1f   :  { %7227 = vtanh.f32 %v6380_v60 }
 0xf20   :  { %v6389_v39 = vadd.f32 0.5, %v6388_v8  ;;  %v6412_v9 = vmul.f32 %v7220_v17, %v6385_v31 }
 0xf22   :  { %v6411_v42 = vmul.f32 %v6409_v49, %v6389_v39 }
 0xf24   :  { %v8986_v19 = vadd.f32 %v6412_v9, %v6411_v42 }
 0xf26   :  { %7229 = vtanh.f32 %v8986_v19 }
 0xf27   :  { %7231 = vtanh.f32 %v6404_v6 }
 0xf29   :  { %v7222_v4 = vpop.eup %7221 }
 0xf2a   :  { %v7224_v14 = vpop.eup %7223  ;;  %v6397_v45 = vmul.f32 0.5, %v7222_v4 }
 0xf2b   :  { %v7226_v48 = vpop.eup %7225  ;;  %v6393_v46 = vmul.f32 0.5, %v7224_v14 }
 0xf2c   :  { %v6398_v16 = vadd.f32 0.5, %v6397_v45  ;;  %v6401_v57 = vmul.f32 0.5, %v7226_v48  ;;  %v7228_v43 = vpop.eup %7227 }
 0xf2d   :  { %v6394_v34 = vadd.f32 0.5, %v6393_v46 }
 0xf2e   :  { %v6402_v53 = vadd.f32 0.5, %v6401_v57  ;;  %v6420_v56 = vmul.f32 %v7228_v43, %v6398_v16 }
 0xf30   :  { %v6419_v51 = vmul.f32 %v6417_v50, %v6402_v53 }
 0xf32   :  { %v8991_v7 = vadd.f32 %v6420_v56, %v6419_v51 }
 0xf33   :  { %v7230_v18 = vpop.eup %7229 }
 0xf34   :  { %v6415_v59 = vmul.f32 %v7230_v18, %v6394_v34  ;;  %7233 = vtanh.f32 %v8991_v7  ;;  %v7232_v32 = vpop.eup %7231 }
 0xf35   :  { %v6406_v62 = vmul.f32 0.5, %v7232_v32 }
 0xf36   :  { %v6425_v61 = vrot.slane %v6415_v59, 6  ;;  %v8996_v36 = vsel %vm3447_vm6, %v8933_v54, %v6415_v59 }
 0xf38   :  { %6913 = vmatmul.mubr.msk.f32.vlgmr.msra.gmra.mxu0 %vm217_vm0, %v6425_v61  ;;  %6914 = vmatmul.mubr.msk.f32.vlgmr.msra.gmra.mxu1 %vm217_vm0, %v6425_v61 }
 0xf39   :  { %6599 = vmatpush1.msra.mxu0 %v8846_v52  ;;  %6670 = vmatpush1.msra.mxu1 %v8849_v10  ;;  %v6407_v52 = vadd.f32 0.5, %v6406_v62 }
 0xf3a   :  { %6600 = vmatprep.subr.mxu0 %v8852_v40  ;;  %6671 = vmatprep.subr.mxu1 %v8855_v2 }
 0xf3b   :  { %6601 = vmatpush1.msra.mxu0 %v8858_v23  ;;  %6672 = vmatpush1.msra.mxu1 %v8861_v11 }
 0xf3c   :  { %6602 = vmatprep.subr.mxu0 %v8864_v13  ;;  %6673 = vmatprep.subr.mxu1 %v8867_v37 }
 0xf3d   :  { %6603 = vmatpush1.msra.mxu0 %v8870_v44  ;;  %6674 = vmatpush1.msra.mxu1 %v8873_v33 }
 0xf3e   :  { %6604 = vmatprep.subr.mxu0 %v8876_v12  ;;  %6675 = vmatprep.subr.mxu1 %v8879_v26 }
 0xf3f   :  { %6605 = vmatpush1.msra.mxu0 %v8882_v22  ;;  %6638 = vmatprep.mubr.f32.mxu0 %v9095_v5 }
 0xf40   :  { %6676 = vmatpush1.msra.mxu1 %v8886_v41  ;;  %6709 = vmatprep.mubr.f32.mxu1 %v9095_v5 }
 0xf41   :  { %v7234_v10 = vpop.eup %7233 }
 0xf42   :  { %v9016_v40 = vmul.f32 %v7234_v10, %v6407_v52 }
 0xf44   :  { %v6571_v2 = vrot.slane %v9016_v40, 1 }
 0xf46   :  { %6915 = vmatmul.mubr.msk.f32.vlgmr.msra.gmra.mxu0 %vm217_vm0, %v6571_v2  ;;  %6916 = vmatmul.mubr.msk.f32.vlgmr.msra.gmra.mxu1 %vm217_vm0, %v6571_v2 }
 0xff8   :  { %v6494_v23 = vpop.f32.mrf.mxu0  ;;  %v6565_v13 = vpop.f32.mrf.mxu1 }
 0xff9   :  { %v6720_v11 = vrot.slane %v6494_v23, 1  ;;  %v6722_v26 = vrot.slane %v6565_v13, 1 }
 0xffa   :  { %v6496_v37 = vpop.f32.mrf.mxu0  ;;  %v6567_v41 = vpop.f32.mrf.mxu1 }
 0xffb   :  { %v6728_v44 = vadd.f32 %v6720_v11, %v8509_v27  ;;  %v6721_v33 = vrot.slane %v6496_v37, 1  ;;  %v6730_v54 = vadd.f32 %v6722_v26, %v8517_v3  ;;  %v6723_v15 = vrot.slane %v6567_v41, 1 }
 0xffd   :  { %v6736_v12 = vmul.f32 0.5, %v6728_v44  ;;  %v6729_v5 = vadd.f32 %v6721_v33, %v8513_v24  ;;  %v6731_v63 = vadd.f32 %v6723_v15, %v8526_v21 }
 0xfff   :  { %7235 = vtanh.f32 %v6736_v12  ;;  %v6740_v22 = vmul.f32 0.5, %v6729_v5  ;;  %v6745_v8 = vmul.f32 0.5, %v6731_v63 }
0x1001   :  { %7237 = vtanh.f32 %v6740_v22 }
0x1002   :  { %7239 = vtanh.f32 %v6730_v54 }
0x1006   :  { %v6640_v1 = vpop.f32.mrf.mxu0  ;;  %v6711_v31 = vpop.f32.mrf.mxu1 }
0x1007   :  { %v6732_v58 = vadd.f32 %v6640_v1, %v8528_v38  ;;  %v6734_v3 = vadd.f32 %v6711_v31, %v8537_v0  ;;  %v6763_v38 = vrot.slane %v8986_v19, 7  ;;  %v6771_v19 = vrot.slane %v8991_v7, 1 }
0x1008   :  { %v6642_v47 = vpop.f32.mrf.mxu0  ;;  %v6713_v21 = vpop.f32.mrf.mxu1 }
0x1009   :  { %v6749_v27 = vmul.f32 0.5, %v6732_v58  ;;  %v6733_v25 = vadd.f32 %v6642_v47, %v8532_v29  ;;  %v6735_v6 = vadd.f32 %v6713_v21, %v8542_v20 }
0x100b   :  { %7241 = vtanh.f32 %v6749_v27  ;;  %v6753_v24 = vmul.f32 0.5, %v6733_v25  ;;  %v6758_v0 = vmul.f32 0.5, %v6735_v6 }
0x100c   :  { %v7236_v60 = vpop.eup %7235 }
0x100d   :  { %v6738_v39 = vmul.f32 0.5, %v7236_v60  ;;  %7243 = vtanh.f32 %v6753_v24 }
0x100e   :  { %v7238_v49 = vpop.eup %7237  ;;  %7245 = vtanh.f32 %v6745_v8 }
0x100f   :  { %v6739_v30 = vadd.f32 0.5, %v6738_v39  ;;  %v6742_v17 = vmul.f32 0.5, %v7238_v49  ;;  %7247 = vtanh.f32 %v6734_v3  ;;  %v7240_v9 = vpop.eup %7239 }
0x1011   :  { %v6743_v42 = vadd.f32 0.5, %v6742_v17  ;;  %v6766_v28 = vmul.f32 %v7240_v9, %v6739_v30 }
0x1013   :  { %v6765_v29 = vmul.f32 %v6763_v38, %v6743_v42 }
0x1015   :  { %v6767_v4 = vadd.f32 %v6766_v28, %v6765_v29 }
0x1017   :  { %7249 = vtanh.f32 %v6767_v4  ;;  %6783 = vst.msk [vmem:[#allocation19 - $0x5] sm:$0x80] %vm3429_vm7, %v6767_v4 }
0x1018   :  { %v7242_v14 = vpop.eup %7241  ;;  %7251 = vtanh.f32 %v6758_v0 }
0x1019   :  { %v6751_v45 = vmul.f32 0.5, %v7242_v14 }
0x101a   :  { %v7244_v48 = vpop.eup %7243 }
0x101b   :  { %v6752_v16 = vadd.f32 0.5, %v6751_v45  ;;  %v6755_v57 = vmul.f32 0.5, %v7244_v48  ;;  %v7246_v46 = vpop.eup %7245 }
0x101c   :  { %v7248_v50 = vpop.eup %7247  ;;  %v6747_v43 = vmul.f32 0.5, %v7246_v46 }
0x101d   :  { %v6756_v53 = vadd.f32 0.5, %v6755_v57  ;;  %v6774_v56 = vmul.f32 %v7248_v50, %v6752_v16 }
0x101e   :  { %v6748_v34 = vadd.f32 0.5, %v6747_v43 }
0x101f   :  { %v6773_v51 = vmul.f32 %v6771_v19, %v6756_v53 }
0x1021   :  { %v6775_v20 = vadd.f32 %v6774_v56, %v6773_v51 }
0x1023   :  { %7253 = vtanh.f32 %v6775_v20  ;;  %6785 = vst.msk [vmem:[#allocation19 + $0x3] sm:$0x1] %vm3432_vm8, %v6775_v20 }
0x1024   :  { %v7250_v18 = vpop.eup %7249 }
0x1025   :  { %v6769_v59 = vmul.f32 %v7250_v18, %v6748_v34  ;;  %v7252_v32 = vpop.eup %7251 }
0x1026   :  { %v6760_v62 = vmul.f32 0.5, %v7252_v32 }
0x1027   :  { %6779 = vst.msk [vmem:[#allocation17 - $0x5] sm:$0x80] %vm3429_vm7, %v6769_v59  ;;  %v6792_v61 = vsel %vm3449_vm9, %v8996_v36, %v6769_v59 }
0x1028   :  { %v6761_v7 = vadd.f32 0.5, %v6760_v62 }
0x1030   :  { %v7254_v52 = vpop.eup %7253 }
0x1031   :  { %v6777_v10 = vmul.f32 %v7254_v52, %v6761_v7 }
0x1033   :  { %6781 = vst.msk [vmem:[#allocation17 + $0x3] sm:$0x1] %vm3432_vm8, %v6777_v10  ;;  %v6793_v2 = vsel %vm3437_vm1, %v6777_v10, %v9016_v40 }
0x1034   :  { %v6794_v23 = vsel %vm3439_vm2, %v6793_v2, %v8955_v55 }
0x1035   :  { %7491 = shalt.err (!%p7488_p2)
}
0x1036   :  { %s7569_s19 = smov 16   ;;  %s7570_s22 = smov 1   ;;  %v6795_v36 = vsel %vm3441_vm3, %v6794_v23, %v8892_v35 }
0x1037   :  { %6824 = dma.vmem_to_hbm [thread:$0]  %s6819_s27, 64, %s9071_s10, [#allocation18], %s7569_s19, %s7569_s19, %s7570_s22  }
0x1038   :  { %s7500_s25 = scalar_lea.vmem %s6831_s3, 64  ;;  %p7505_p4 = scmp.lt.s32.totalorder %s6831_s3, %s6831_s3 }
0x1039   :  { %p7501_p3 = scmp.ne.s32.totalorder %s6831_s3, %s7500_s25  ;;  %p7506_p5 = scmp.lt.s32.totalorder %s7500_s25, %s7500_s25 }
0x103b   :  { %p7507_p6 = por %p7506_p5, %p7505_p4 }
0x103d   :  { %p7508_p7 = pnand %p7507_p6, %p7501_p3 }
0x103f   :  { %7511 = shalt.err (!%p7508_p7)
}
0x1040   :  { %6836 = dma.vmem_to_hbm [thread:$0]  %s6831_s3, 64, %s9072_s11, [#allocation18], %s7569_s19, %s7569_s19, %s7570_s22   ;;  %v9116_v55 = vld [vmem:[#allocation28_spill] sm:$0xff]  ;;  %v9117_v11 = vld [vmem:[#allocation29_spill] sm:$0xff]  ;;  %v9118_v37 = vld [vmem:[#allocation30_spill] sm:$0xff] }
0x1041   :  { %v6796_v40 = vsel %vm3443_vm4, %v6795_v36, %v9116_v55  ;;  %v9119_v44 = vld [vmem:[#allocation31_spill] sm:$0xff]  ;;  %s7571_s10 = smov [#allocation16]  }
0x1042   :  { %v6797_v13 = vsel %vm3445_vm5, %v6796_v40, %v9117_v11  ;;  %s6809_s20 = sshll.u32 %s7571_s10, 4  ;;  %v7319_v26 = vld [vmem:[#allocation2] sm:$0xff]  ;;  %s6810_s20 = int_to_ptr.vmem [resolvable:$true] %s6809_s20 }
0x1043   :  { %v6798_v35 = vsel %vm3447_vm6, %v6797_v13, %v9118_v37  ;;  %s7520_s11 = scalar_lea.vmem %s6810_s20, 128  ;;  %p7525_p9 = scmp.lt.s32.totalorder %s6810_s20, %s6810_s20 }
0x1044   :  { %v6799_v33 = vsel %vm3449_vm9, %v6798_v35, %v9119_v44  ;;  %p7521_p8 = scmp.ne.s32.totalorder %s6810_s20, %s7520_s11  ;;  %p7526_p10 = scmp.lt.s32.totalorder %s7520_s11, %s7520_s11 }
0x1045   :  { %v6800_v12 = vadd.f32 %v6799_v33, %v6792_v61 }
0x1046   :  { %p7527_p11 = por %p7526_p10, %p7525_p9 }
0x1047   :  { %v6801_v5 = vadd.f32 %v7319_v26, %v6800_v12 }
0x1048   :  { %p7528_p12 = pnand %p7527_p11, %p7521_p8 }
0x1049   :  { %6802 = vst.msk [vmem:[#allocation16] sm:$0xff] %vm217_vm0, %v6801_v5 }
0x104a   :  { %7531 = shalt.err (!%p7528_p12)
}
0x104b   :  { %6812 = dma.vmem_to_hbm [thread:$0]  %s6810_s20, 128, %s9070_s9, [#allocation4]  }
0x104c   :  { %7550 = dma.done.wait [#allocation4], 128  }
0x104d   :  { %7551 = vsyncadd [#allocation4], 4294967168 }
0x104e   :  { %7552 = dma.done.wait [#allocation18], 128  }
0x104f   :  { %7553 = vsyncadd [#allocation18], 4294967168 }
0x1050   :  { %6846 = vsyncpa [#allocation3], 1 }
0x1051   :  { %6847 = vsyncpa [#allocation6], 1 }
0x1052   :  { %6848 = vsyncpa [#allocation9], 1 }
0x1053   :  { %6849 = vsyncpa [#allocation12], 1 }
0x1054   :  { %6850 = vsyncpa [#allocation15], 1 }
0x1055   :  { %6851 = vsyncpa [#allocation4], 1 }
0x1056   :  { %6852 = vsyncpa [#allocation18], 1 }

</bundles_post_ra>
